<compile_context>
chip_gen: v7x
topology: tpu7x:2x2x1
jax: 0.10.0
libtpu: 0.0.40
codegen_flags: <defaults>
</compile_context>

<pallas_src>
import math

import jax
import jax.numpy as jnp
from jax.experimental import pallas as pl
from jax.experimental.pallas import tpu as pltpu

_EPS = 1e-12           # F.normalize default eps
_HALF_PI = math.pi / 2.0
_PI = math.pi
_MB = 1024 * 1024


def _cdiv(a, b):
    return (a + b - 1) // b


def _round_up(v, m):
    return _cdiv(v, m) * m


def _acos_f32(x):
    """float32 arccos (Cephes asin poly); safe for |x| slightly above 1.

    The |x|<=0.5 branch evaluates the (odd) asin poly on *signed* x, so the
    sign fixup only touches the |x|>0.5 branch; that branch's sqrt is routed
    through the (otherwise idle) EUP as z*rsqrt(z).
    """
    z_small = x * x
    big = z_small > 0.25
    z_big = jnp.maximum(0.5 - 0.5 * jnp.abs(x), 0.0)
    s_big = z_big * jax.lax.rsqrt(z_big + 1e-30)          # ~= sqrt(z_big), EUP
    z = jnp.where(big, z_big, z_small)
    s = jnp.where(big, s_big, x)
    p = ((((4.2163199048e-2 * z + 2.4181311049e-2) * z + 4.5470025998e-2) * z
          + 7.4953002686e-2) * z + 1.6666752422e-1) * z * s + s
    #  |x| <= 0.5 : acos(x) = pi/2 - asin(x)        = pi/2 - p
    #   x >  0.5  : acos(x) = 2*asin(sqrt((1-x)/2)) = 2p
    #   x < -0.5  : acos(x) = pi - 2p
    big_val = jnp.where(x < 0.0, _PI - 2.0 * p, 2.0 * p)
    return jnp.where(big, big_val, _HALF_PI - p)


def _prompt_mdl_kernel(xn_ref, et_ref, o_ref):
    j = pl.program_id(1)                 # inner N-block (reduction) index

    # Output block index is constant across the N (reduction) axis, so it
    # stays resident in VMEM; init once per M-block.
    @pl.when(j == 0)
    def _init():
        o_ref[...] = jnp.zeros_like(o_ref)

    # cos(theta): both operands were L2-normalized once in the wrapper.
    cos = jnp.dot(xn_ref[...], et_ref[...],
                  preferred_element_type=jnp.float32,
                  precision=jax.lax.Precision.HIGHEST)       # (tn, tm) f32
    theta = _acos_f32(cos)
    t2 = theta * theta
    # Lane-dense per-column partials; scalar collapse + scaling deferred to
    # the XLA epilogue.
    o_ref[...] += jnp.sum(t2, axis=0, keepdims=True)[None]   # (1, 1, tm)


def _l2_normalize(a):
    sq = jnp.sum(a * a, axis=-1, keepdims=True)
    return a * jax.lax.rsqrt(jnp.maximum(sq, _EPS * _EPS))


def prompt_mdl_forward(x, embed, weight, *, tn=None, tm=None):
    """Pallas implementation of PromptMDL.forward.  Returns a scalar f32."""
    # TODO(synk): CustomGrad / `stop` only shape the backward pass (gradient
    # clamp); autodiff through this forward would need a jax.custom_vjp.
    n, d = x.shape
    m, d2 = embed.shape
    assert d == d2
    x = x.astype(jnp.float32)
    embed = embed.astype(jnp.float32)
    w = jnp.asarray(weight, jnp.float32)

    # ---- generation-aware budgets -------------------------------------------
    try:
        phys_vmem = int(pltpu.get_tpu_info().vmem_capacity_bytes)
    except Exception:                      # no TPU info available -> be safe
        phys_vmem = 64 * _MB               # v7x-sized fallback
    vmem_limit = max(min(phys_vmem - 16 * _MB, 112 * _MB), 32 * _MB)
    tm_cap = 2048 if phys_vmem >= 96 * _MB else 1024
    tn_cap = 256

    # ---- tile selection ------------------------------------------------------
    user_tn, user_tm = tn is not None, tm is not None
    if not user_tn:
        n8 = _round_up(n, 8)
        tn = _round_up(_cdiv(n8, _cdiv(n8, tn_cap)), 8)
    if not user_tm:
        m128 = _round_up(m, 128)
        nb_m = _cdiv(m128, tm_cap)
        if nb_m == 1 and m128 >= 256 and m128 % 256 == 0:
            nb_m = 2        # free 2-way split -> both v7x TensorCores get work
        tm = _round_up(_cdiv(m128, nb_m), 128)
    assert tn % 8 == 0, "tn must be a multiple of 8"
    assert tm % 128 == 0, "tm must be a multiple of 128"

    # Shrink auto-picked tiles until a (generous) VMEM estimate fits:
    # double-buffered input tiles + output block + elementwise temporaries.
    def est_vmem(a, b):
        return 4 * (2 * (a * d + d * b) + 2 * b + 10 * a * b)

    while est_vmem(tn, tm) > 0.7 * vmem_limit:
        if not user_tm and tm > 128:
            tm = max(128, _round_up(tm // 2, 128))
        elif not user_tn and tn > 8:
            tn = max(8, _round_up(tn // 2, 8))
        else:
            break

    n_pad = _round_up(n, tn)
    m_pad = _round_up(m, tm)
    grid_n = n_pad // tn
    grid_m = m_pad // tm

    # ---- one-time prep (layout plumbing, not per grid step) ------------------
    # Normalize BOTH operands once; store the codebook as (D, M) so the kernel
    # is a plain MXU contraction.  Zero padding (applied after normalization)
    # makes every padded element contribute exactly (pi/2)^2, corrected
    # analytically below -- no in-kernel masking.
    xn = _l2_normalize(x)
    en_t = _l2_normalize(embed).T                               # (D, M)
    if n_pad != n:
        xn = jnp.pad(xn, ((0, n_pad - n), (0, 0)))
    if m_pad != m:
        en_t = jnp.pad(en_t, ((0, 0), (0, m_pad - m)))

    partials = pl.pallas_call(
        _prompt_mdl_kernel,
        out_shape=jax.ShapeDtypeStruct((grid_m, 1, tm), jnp.float32),
        grid_spec=pltpu.PrefetchScalarGridSpec(
            num_scalar_prefetch=0,
            grid=(grid_m, grid_n),
            in_specs=[
                pl.BlockSpec((tn, d), lambda i, j: (j, 0)),   # normalized x
                pl.BlockSpec((d, tm), lambda i, j: (0, i)),   # normalized E^T
            ],
            out_specs=pl.BlockSpec((1, 1, tm), lambda i, j: (i, 0, 0)),
        ),
        compiler_params=pltpu.CompilerParams(
            dimension_semantics=("parallel", "arbitrary"),
            vmem_limit_bytes=int(vmem_limit),
        ),
    )(xn, en_t)

    total = jnp.sum(partials)
    pad_count = n_pad * m_pad - n * m
    if pad_count:
        # Every padded (row, col) pair has cos == 0 exactly -> theta = pi/2.
        total = total - jnp.float32(pad_count) * jnp.square(jnp.float32(_HALF_PI))
    # dists element = theta^2 / 2, scaled by |w|*sign(w) == w, mean over N*M.
    return (w * (0.5 / float(n * m))) * total


def _reference(x, embed, weight):
    """Pure-JAX mirror of the PyTorch forward (broadcast-difference form)."""
    xn = x / jnp.maximum(jnp.linalg.norm(x, axis=-1, keepdims=True), _EPS)
    en = embed / jnp.maximum(jnp.linalg.norm(embed, axis=-1, keepdims=True), _EPS)
    diff = xn[:, None, :] - en[None, :, :]
    dnorm = jnp.linalg.norm(diff, axis=2)
    dists = 2.0 * jnp.square(jnp.arcsin(dnorm / 2.0)) * jnp.sign(weight)
    return jnp.abs(weight) * jnp.mean(dists)


if __name__ == "__main__":
    key = jax.random.PRNGKey(0)
    k_in, k_emb = jax.random.split(key)

    # Small shapes consistent with the module: input (N, D), codebook (M, D).
    # Chosen so the auto-tiler produces a 2x2 grid (2 parallel M blocks for
    # v7x's two TensorCores, 2 reduction N blocks) with padding on both axes,
    # exercising the analytic padding correction.
    N, M, D = 300, 500, 64
    x = jax.random.normal(k_in, (N, D), dtype=jnp.float32)
    embed = jax.random.normal(k_emb, (M, D), dtype=jnp.float32)
    weight = 0.75  # buffer from __init__; stop=-inf is forward-inert

    out = prompt_mdl_forward(x, embed, weight)
    out = jax.block_until_ready(out)

    ref = _reference(x, embed, jnp.float32(weight))
    err = abs(float(out) - float(ref))
    assert err < 1e-4 * max(1.0, abs(float(ref))), (float(out), float(ref))

    print("KERNEL_OK")
</pallas_src>

<mosaic_0001>
module attributes {stable_mosaic.version = 11 : i64} {
  func.func @_prompt_mdl_kernel(%arg0: i32, %arg1: i32, %arg2: memref<152x64xf32, #tpu.memory_space<vmem>>, %arg3: memref<64x256xf32, #tpu.memory_space<vmem>>, %arg4: memref<1x1x256xf32, #tpu.memory_space<vmem>>) attributes {dimension_semantics = [#tpu.dimension_semantics<parallel>, #tpu.dimension_semantics<arbitrary>], iteration_bounds = array<i64: 2, 2>, scalar_prefetch = 0 : i64, scratch_operands = 0 : i64, tpu.core_type = #tpu.core_type<tc>, window_params = [{transform_indices = @transform_0, window_bounds = array<i64: 152, 64>}, {transform_indices = @transform_1, window_bounds = array<i64: 64, 256>}, {transform_indices = @transform_2, window_bounds = array<i64: 1, 1, 256>}]} {
    %c0_i32 = arith.constant 0 : i32
    %0 = arith.cmpi eq, %arg1, %c0_i32 : i32
    %1 = arith.extui %0 : i1 to i32
    %c0_i32_0 = arith.constant 0 : i32
    %2 = arith.cmpi ne, %1, %c0_i32_0 : i32
    scf.if %2 {
      %cst_26 = arith.constant 0.000000e+00 : f32
      %57 = vector.broadcast %cst_26 : f32 to vector<1x1x256xf32>
      %c0_27 = arith.constant 0 : index
      %c0_28 = arith.constant 0 : index
      %c0_29 = arith.constant 0 : index
      %58 = vector.load %arg4[%c0_27, %c0_28, %c0_29] : memref<1x1x256xf32, #tpu.memory_space<vmem>>, vector<1x1x256xf32>
      tpu.vector_store %arg4[%c0_27, %c0_28, %c0_29], %57 {strides = array<i32>} : memref<1x1x256xf32, #tpu.memory_space<vmem>>, vector<1x1x256xf32>,
    } else {
    }
    %c0 = arith.constant 0 : index
    %c0_1 = arith.constant 0 : index
    %3 = vector.load %arg2[%c0, %c0_1] : memref<152x64xf32, #tpu.memory_space<vmem>>, vector<152x64xf32>
    %c0_2 = arith.constant 0 : index
    %c0_3 = arith.constant 0 : index
    %4 = vector.load %arg3[%c0_2, %c0_3] : memref<64x256xf32, #tpu.memory_space<vmem>>, vector<64x256xf32>
    %cst = arith.constant dense<0.000000e+00> : vector<152x256xf32>
    %5 = tpu.matmul %3, %4, %cst {dimension_numbers = #tpu.dot_dimension_numbers<[1], [0], [0], [1], [0, 0, 1, 1], [], []>, precision = #tpu.contract_precision<fp32>} : vector<152x64xf32>, vector<64x256xf32>, vector<152x256xf32> -> vector<152x256xf32>
    %6 = arith.mulf %5, %5 : vector<152x256xf32>
    %cst_4 = arith.constant 2.500000e-01 : f32
    %7 = vector.broadcast %cst_4 : f32 to vector<152x256xf32>
    %8 = arith.cmpf ogt, %6, %7 : vector<152x256xf32>
    %9 = math.absf %5 : vector<152x256xf32>
    %cst_5 = arith.constant 5.000000e-01 : f32
    %10 = vector.broadcast %cst_5 : f32 to vector<152x256xf32>
    %11 = arith.mulf %10, %9 : vector<152x256xf32>
    %cst_6 = arith.constant 5.000000e-01 : f32
    %12 = vector.broadcast %cst_6 : f32 to vector<152x256xf32>
    %13 = arith.subf %12, %11 : vector<152x256xf32>
    %cst_7 = arith.constant 0.000000e+00 : f32
    %14 = vector.broadcast %cst_7 : f32 to vector<152x256xf32>
    %15 = arith.maximumf %13, %14 : vector<152x256xf32>
    %cst_8 = arith.constant 1.000000e-30 : f32
    %16 = vector.broadcast %cst_8 : f32 to vector<152x256xf32>
    %17 = arith.addf %15, %16 : vector<152x256xf32>
    %18 = math.rsqrt %17 : vector<152x256xf32>
    %19 = arith.mulf %15, %18 : vector<152x256xf32>
    %20 = arith.select %8, %15, %6 : vector<152x256xi1>, vector<152x256xf32>
    %21 = arith.select %8, %19, %5 : vector<152x256xi1>, vector<152x256xf32>
    %cst_9 = arith.constant 4.216320e-02 : f32
    %22 = vector.broadcast %cst_9 : f32 to vector<152x256xf32>
    %23 = arith.mulf %22, %20 : vector<152x256xf32>
    %cst_10 = arith.constant 0.024181312 : f32
    %24 = vector.broadcast %cst_10 : f32 to vector<152x256xf32>
    %25 = arith.addf %23, %24 : vector<152x256xf32>
    %26 = arith.mulf %25, %20 : vector<152x256xf32>
    %cst_11 = arith.constant 0.0454700254 : f32
    %27 = vector.broadcast %cst_11 : f32 to vector<152x256xf32>
    %28 = arith.addf %26, %27 : vector<152x256xf32>
    %29 = arith.mulf %28, %20 : vector<152x256xf32>
    %cst_12 = arith.constant 0.0749530047 : f32
    %30 = vector.broadcast %cst_12 : f32 to vector<152x256xf32>
    %31 = arith.addf %29, %30 : vector<152x256xf32>
    %32 = arith.mulf %31, %20 : vector<152x256xf32>
    %cst_13 = arith.constant 0.166667521 : f32
    %33 = vector.broadcast %cst_13 : f32 to vector<152x256xf32>
    %34 = arith.addf %32, %33 : vector<152x256xf32>
    %35 = arith.mulf %34, %20 : vector<152x256xf32>
    %36 = arith.mulf %35, %21 : vector<152x256xf32>
    %37 = arith.addf %36, %21 : vector<152x256xf32>
    %cst_14 = arith.constant 0.000000e+00 : f32
    %38 = vector.broadcast %cst_14 : f32 to vector<152x256xf32>
    %39 = arith.cmpf olt, %5, %38 : vector<152x256xf32>
    %cst_15 = arith.constant 2.000000e+00 : f32
    %40 = vector.broadcast %cst_15 : f32 to vector<152x256xf32>
    %41 = arith.mulf %40, %37 : vector<152x256xf32>
    %cst_16 = arith.constant 3.14159274 : f32
    %42 = vector.broadcast %cst_16 : f32 to vector<152x256xf32>
    %43 = arith.subf %42, %41 : vector<152x256xf32>
    %cst_17 = arith.constant 2.000000e+00 : f32
    %44 = vector.broadcast %cst_17 : f32 to vector<152x256xf32>
    %45 = arith.mulf %44, %37 : vector<152x256xf32>
    %46 = arith.select %39, %43, %45 : vector<152x256xi1>, vector<152x256xf32>
    %cst_18 = arith.constant 1.57079637 : f32
    %47 = vector.broadcast %cst_18 : f32 to vector<152x256xf32>
    %48 = arith.subf %47, %37 : vector<152x256xf32>
    %49 = arith.select %8, %46, %48 : vector<152x256xi1>, vector<152x256xf32>
    %50 = arith.mulf %49, %49 : vector<152x256xf32>
    %c0_19 = arith.constant 0 : index
    %c0_20 = arith.constant 0 : index
    %c0_21 = arith.constant 0 : index
    %51 = vector.load %arg4[%c0_19, %c0_20, %c0_21] : memref<1x1x256xf32, #tpu.memory_space<vmem>>, vector<1x1x256xf32>
    %cst_22 = arith.constant dense<0.000000e+00> : vector<256xf32>
    %52 = vector.multi_reduction <add>, %50, %cst_22 [0] : vector<152x256xf32> to vector<256xf32>
    %53 = vector.shape_cast %52 : vector<256xf32> to vector<1x256xf32>
    %54 = vector.shape_cast %53 : vector<1x256xf32> to vector<1x1x256xf32>
    %55 = arith.addf %51, %54 : vector<1x1x256xf32>
    %c0_23 = arith.constant 0 : index
    %c0_24 = arith.constant 0 : index
    %c0_25 = arith.constant 0 : index
    %56 = vector.load %arg4[%c0_23, %c0_24, %c0_25] : memref<1x1x256xf32, #tpu.memory_space<vmem>>, vector<1x1x256xf32>
    tpu.vector_store %arg4[%c0_23, %c0_24, %c0_25], %55 {strides = array<i32>} : memref<1x1x256xf32, #tpu.memory_space<vmem>>, vector<1x1x256xf32>,
    return
  }
  func.func @transform_0(%arg0: i32, %arg1: i32) -> (i32, i32) {
    %c0_i32 = arith.constant 0 : i32
    %c0_i32_0 = arith.constant 0 : i32
    return %arg1, %c0_i32 : i32, i32
  }
  func.func @transform_1(%arg0: i32, %arg1: i32) -> (i32, i32) {
    %c0_i32 = arith.constant 0 : i32
    %c0_i32_0 = arith.constant 0 : i32
    return %c0_i32, %arg0 : i32, i32
  }
  func.func @transform_2(%arg0: i32, %arg1: i32) -> (i32, i32, i32) {
    %c0_i32 = arith.constant 0 : i32
    %c0_i32_0 = arith.constant 0 : i32
    %c0_i32_1 = arith.constant 0 : i32
    return %arg0, %c0_i32, %c0_i32_0 : i32, i32, i32
  }
}

</mosaic_0001>

<bundles_post_ra>
// kernel: tpu_custom_call.1
= control target key start
LH: loop header
LB: loop body
LE: loop exit
PB: predicated region body
PF: predicated region fallthrough
CT: control target
= control target key end

     0   :  { %7 = vsyncpa [#allocation4], 0  ;;  %s5826_s0 = inlined_call_operand.vmem [shape: f32[304,64], index: 0, kind: input, shape index: {}]   ;;  %s5827_s1 = inlined_call_operand.vmem [shape: f32[64,512], index: 1, kind: input, shape index: {}]   ;;  %s5828_s2 = inlined_call_operand.hbm [shape: f32[2,1,256], index: 2, kind: output, shape index: {}]  }
   0x1   :  { %9 = vsyncpa [#allocation4 + $0x1], 0  ;;  %s3706_s9 = smov 0   ;;  %s3708_s10 = smov 0  }
   0x2   :  { %s3710_s11 = smov 0   ;;  %s3712_s12 = smov 0  }
   0x3   :  { %s3714_s13 = smov 0   ;;  %s3716_s14 = smov 0  }
   0x4   :  { %s3718_s15 = smov 0   ;;  %s3720_s16 = smov 0  }
   0x5 LB: > { %s3136_s17 = sadd.s32 4294967295, %s3685_s16   ;;  %s3137_s18 = sadd.s32 4294967294, %s3685_s16   ;;  %s3685_s16 = sphi %s3720_s16, %s15_s16   ;;  %s3681_s15 = sphi %s3718_s15, %s5908_s15   ;;  %s3677_s14 = sphi %s3716_s14, %s5907_s14   ;;  %s3673_s13 = sphi %s3714_s13, %s5906_s13   ;;  %s3669_s12 = sphi %s3712_s12, %s5905_s12   ;;  %s3665_s11 = sphi %s3710_s11, %s5904_s11   ;;  %s3661_s10 = sphi %s3708_s10, %s5903_s10   ;;  %s3657_s9 = sphi %s3706_s9, %s5902_s9  }
   0x6   : > { %s24_s19 = sadd.s32 1, %s3677_s14  ;;  %s27_s20 = sadd.s32 1, %s3681_s15 }
   0x7   : > { %p25_p0 = scmp.ge.s32.totalorder %s24_s19, 2  ;;  %p67_p1 = scmp.ne.s32.totalorder %s3665_s11, %s3661_s10 }
   0x8   : > { %p68_p2 = scmp.eq.s32.totalorder %s3685_s16, 0  ;;  %p97_p4 = scmp.eq.s32.totalorder %s3136_s17, 3 }
   0x9   : > { %s5910_s19 = smov (%p25_p0, %s24_s19), 0  ;;  %s5912_s20 = smov (!%p25_p0, %s27_s20), %s3681_s15 }
   0xa   : > { %p3756_p3 = por %p68_p2, %p67_p1  ;;  %p29_p5 = scmp.ge.s32.totalorder %s5912_s20, 2 }
   0xb   : > { %p102_p6 = scmp.ne.s32.totalorder %s3661_s10, %s3657_s9  ;;  %p3762_p7 = por %p97_p4, %p67_p1 }
   0xc   : > { %p103_p8 = scmp.eq.s32.totalorder %s3137_s18, 3  ;;  %s5914_s20 = smov (%p29_p5, %s5912_s20), 0 }
   0xd   : > { %s57_s24 = ssub.s32 %s3681_s15, %s5914_s20  ;;  %s60_s25 = sadd.s32 1, %s3665_s11 }
   0xe   : > { %p3768_p9 = por %p103_p8, %p102_p6  ;;  %p58_p10 = scmp.eq.s32.totalorder %s57_s24, 0 }
   0xf   : > { %p3139_p11 = scmp.ge.s32.totalorder %s3685_s16, 4 }
  0x10   : > { %s3776_s26 = scalar_select %p58_p10, %s3665_s11, %s60_s25  }
  0x11   : > { %119 = sbr.rel (%p3139_p11) target bundleno = 36 (0x24), region = 16 }
  0x18   : > { %131 = sbr.rel (!%p3756_p3) target bundleno = 36 (0x24), region = 24  ;;  %s133_s27 = sand.u32 (%p3756_p3), 1, %s3665_s11  }
  0x19   : > { %s3153_s28 = sshll.u32 (%p3756_p3), %s3681_s15, 4  ;;  %s3140_s29 = sshll.u32 (%p3756_p3), %s133_s27, 7 }
  0x1a   : > { %s3786_s4 = scalar_lea.vmem (%p3756_p3), %s5827_s1, %s3153_s28  ;;  %s135_s5 = scalar_lea.vmem (%p3756_p3), [#allocation2], %s3140_s29 }
  0x1b   : > { %v151_v0 = vld [vmem:[%s3786_s4] sm:$0xff] (%p3756_p3)  ;;  %v153_v1 = vld [vmem:[%s3786_s4 + $0x8] sm:$0xff] (%p3756_p3) }
  0x1c   : > { %v155_v2 = vld [vmem:[%s3786_s4 + $0x20] sm:$0xff] (%p3756_p3)  ;;  %152 = vst [vmem:[%s135_s5] sm:$0xff] (%p3756_p3), %v151_v0  ;;  %154 = vst [vmem:[%s135_s5 + $0x8] sm:$0xff] (%p3756_p3), %v153_v1  ;;  %v157_v3 = vld [vmem:[%s3786_s4 + $0x28] sm:$0xff] (%p3756_p3) }
  0x1d   : > { %156 = vst [vmem:[%s135_s5 + $0x10] sm:$0xff] (%p3756_p3), %v155_v2  ;;  %v159_v4 = vld [vmem:[%s3786_s4 + $0x40] sm:$0xff] (%p3756_p3)  ;;  %v161_v5 = vld [vmem:[%s3786_s4 + $0x48] sm:$0xff] (%p3756_p3)  ;;  %158 = vst [vmem:[%s135_s5 + $0x18] sm:$0xff] (%p3756_p3), %v157_v3 }
  0x1e   : > { %160 = vst [vmem:[%s135_s5 + $0x20] sm:$0xff] (%p3756_p3), %v159_v4  ;;  %162 = vst [vmem:[%s135_s5 + $0x28] sm:$0xff] (%p3756_p3), %v161_v5  ;;  %v163_v6 = vld [vmem:[%s3786_s4 + $0x60] sm:$0xff] (%p3756_p3)  ;;  %v165_v7 = vld [vmem:[%s3786_s4 + $0x68] sm:$0xff] (%p3756_p3) }
  0x1f   : > { %v167_v8 = vld [vmem:[%s3786_s4 + $0x80] sm:$0xff]  ;;  %164 = vst [vmem:[%s135_s5 + $0x30] sm:$0xff] %v163_v6  ;;  %166 = vst [vmem:[%s135_s5 + $0x38] sm:$0xff] %v165_v7  ;;  %v169_v9 = vld [vmem:[%s3786_s4 + $0x88] sm:$0xff] }
  0x20   : > { %168 = vst [vmem:[%s135_s5 + $0x40] sm:$0xff] %v167_v8  ;;  %v171_v10 = vld [vmem:[%s3786_s4 + $0xa0] sm:$0xff]  ;;  %v173_v11 = vld [vmem:[%s3786_s4 + $0xa8] sm:$0xff]  ;;  %170 = vst [vmem:[%s135_s5 + $0x48] sm:$0xff] %v169_v9 }
  0x21   : > { %172 = vst [vmem:[%s135_s5 + $0x50] sm:$0xff] %v171_v10  ;;  %174 = vst [vmem:[%s135_s5 + $0x58] sm:$0xff] %v173_v11  ;;  %v175_v12 = vld [vmem:[%s3786_s4 + $0xc0] sm:$0xff]  ;;  %v177_v13 = vld [vmem:[%s3786_s4 + $0xc8] sm:$0xff] }
  0x22   : > { %v179_v14 = vld [vmem:[%s3786_s4 + $0xe0] sm:$0xff]  ;;  %176 = vst [vmem:[%s135_s5 + $0x60] sm:$0xff] %v175_v12  ;;  %178 = vst [vmem:[%s135_s5 + $0x68] sm:$0xff] %v177_v13  ;;  %v181_v15 = vld [vmem:[%s3786_s4 + $0xe8] sm:$0xff] }
  0x23   : > { %180 = vst [vmem:[%s135_s5 + $0x70] sm:$0xff] %v179_v14  ;;  %182 = vst [vmem:[%s135_s5 + $0x78] sm:$0xff] %v181_v15 }
  0x24 PF: > { %p3143_p12 = scmp.ge.s32.totalorder %s3685_s16, 1  ;;  %p187_p13 = scmp.lt.s32.totalorder %s3685_s16, 5 }
  0x26   : > { %p188_p0 = pnand %p3143_p12, %p187_p13 }
  0x28   : > { %191 = sbr.rel (%p188_p0) target bundleno = 792 (0x318), region = 47 }
  0x2f   : > { %s3807_s6 = sand.u32 1, %s3661_s10   ;;  %s220_s7 = smul.u32 19, %s3669_s12 }
  0x30   : > { %s3144_s8 = sshll.u32 %s3807_s6, 7  ;;  %s3145_s17 = sshll.u32 %s3807_s6, 1 }
  0x31   : > { %p221_p1 = scmp.lt.s32.totalorder %s220_s7, 37  ;;  %s3817_s27 = scalar_lea.vmem [#allocation2], %s3144_s8 }
  0x32   : > { %s3819_s28 = scalar_lea.vmem [#allocation3], %s3145_s17  ;;  %p3147_p2 = scmp.ne.s32.totalorder %s3669_s12, 0 }
  0x33   : > { %s5916_s7 = smov (!%p221_p1, %s220_s7), 37  ;;  %v231_v16 = vlaneseq (!%p3147_p2)  ;;  %v3687_v17 = vmov (!%p3147_p2), 0.0  }
  0x34   : > { %s3146_s18 = sshll.u32 %s5916_s7, 3  ;;  %230 = sbr.rel (%p3147_p2) target bundleno = 59 (0x3b), region = 55 }
  0x35   : > { %s3815_s25 = scalar_lea.vmem %s5826_s0, %s3146_s18  ;;  %vm233_vm0 = vcmp.lt.s32.totalorder (!%p3147_p2), %v231_v16, 256 }
  0x36   : > { %235 = vst.msk [vmem:[%s3819_s28] sm:$0x3] (!%p3147_p2), %vm233_vm0, %v3687_v17 }
  0x3b PF: > { %v256_v18 = vld [vmem:[%s3817_s27 + $0x8] sm:$0xff]  ;;  %v258_v19 = vld [vmem:[%s3817_s27 + $0x18] sm:$0xff]  ;;  %v255_v20 = vld [vmem:[%s3817_s27] sm:$0xff]  ;;  %v5832_v27 = vmov 0.0   ;;  %vm271_vm1 = vcmask 523264   ;;  %s3154_s12 = sshll.u32 %s3673_s13, 5 }
  0x3c   : > { %v329_v21 = vand.u32 4294901760, %v256_v18  ;;  %v333_v22 = vand.u32 4294901760, %v258_v19  ;;  %v257_v23 = vld [vmem:[%s3817_s27 + $0x10] sm:$0xff]  ;;  %v331_v24 = vand.u32 4294901760, %v255_v20  ;;  %v260_v25 = vld [vmem:[%s3817_s27 + $0x28] sm:$0xff]  ;;  %v262_v26 = vld [vmem:[%s3817_s27 + $0x38] sm:$0xff]  ;;  %409 = vmatprep.mubr.f32.mxu1 %v5832_v27  ;;  %1226 = vmatprep.mubr.f32.mxu0 %v5832_v27  ;;  %s5771_s4 = scalar_lea.hbm %s5828_s2, %s3154_s12 }
  0x3d   : > { %v335_v28 = vand.u32 4294901760, %v257_v23  ;;  %v337_v29 = vand.u32 4294901760, %v260_v25  ;;  %v341_v30 = vand.u32 4294901760, %v262_v26  ;;  %v259_v31 = vld [vmem:[%s3817_s27 + $0x20] sm:$0xff]  ;;  %v261_v32 = vld [vmem:[%s3817_s27 + $0x30] sm:$0xff]  ;;  %v3834_v33 = vld [vmem:[%s3817_s27 + $0x48] sm:$0xff] }
  0x3e   : > { %v3836_v34 = vpack.c.bf16 %v333_v22, %v329_v21  ;;  %v3839_v35 = vld [vmem:[%s3817_s27 + $0x58] sm:$0xff]  ;;  %v3842_v36 = vld [vmem:[%s3817_s27 + $0x40] sm:$0xff]  ;;  %v3845_v37 = vld [vmem:[%s3817_s27 + $0x50] sm:$0xff]  ;;  %v3858_v42 = vsub.f32 %v256_v18, %v329_v21  ;;  %v339_v43 = vand.u32 4294901760, %v259_v31  ;;  %v343_v44 = vand.u32 4294901760, %v261_v32  ;;  %s3048_s29 = sshll.u32 %s3819_s28, 4  ;;  %s5773_s29 = int_to_ptr.vmem [resolvable:$true] %s3048_s29 }
  0x3f   : > { %v3847_v38 = vpack.c.bf16 %v335_v28, %v331_v24  ;;  %v3849_v39 = vpack.c.bf16 %v341_v30, %v337_v29  ;;  %v3852_v40 = vld [vmem:[%s3817_s27 + $0x68] sm:$0xff]  ;;  %v3855_v41 = vld [vmem:[%s3817_s27 + $0x78] sm:$0xff]  ;;  %v345_v45 = vand.u32 4294901760, %v3834_v33  ;;  %v349_v46 = vand.u32 4294901760, %v3839_v35  ;;  %v3878_v54 = vld [vmem:[%s3817_s27 + $0x60] sm:$0xff]  ;;  %s3034_s5 = scalar_lea.sflag [#allocation4], %s3807_s6 }
  0x40   : > { %3156 = vmatprep.subr.bf16.mxu1 %v3836_v34  ;;  %3204 = vmatprep.subr.bf16.mxu0 %v3836_v34  ;;  %v347_v47 = vand.u32 4294901760, %v3842_v36  ;;  %v351_v48 = vand.u32 4294901760, %v3845_v37  ;;  %v353_v49 = vand.u32 4294901760, %v3852_v40  ;;  %v3868_v50 = vsub.f32 %v258_v19, %v333_v22  ;;  %v3881_v55 = vld [vmem:[%s3817_s27 + $0x70] sm:$0xff]  ;;  %v236_v56 = vld [vmem:[%s3815_s25] sm:$0xff]  ;;  %v237_v6 = vld [vmem:[%s3815_s25 + $0x8] sm:$0xff] }
  0x41   : > { %3158 = vmatpush1.bf16.msra.mxu1 %v3847_v38  ;;  %3206 = vmatpush1.bf16.msra.mxu0 %v3847_v38  ;;  %v3870_v51 = vsub.f32 %v255_v20, %v331_v24  ;;  %v3874_v52 = vpack.c.bf16 %v343_v44, %v339_v43  ;;  %v5831_v53 = vand.u32 4294901760, %v3855_v41  ;;  %v3884_v57 = vsub.f32 %v257_v23, %v335_v28  ;;  %v238_v15 = vld [vmem:[%s3815_s25 + $0x10] sm:$0xff]  ;;  %v239_v16 = vld [vmem:[%s3815_s25 + $0x18] sm:$0xff]  ;;  %s3591_s7 = scalar_lea.vmem %s5773_s29, 32  ;;  %s3690_s13 = smov [#allocation3]  }
  0x42   : > { %3160 = vmatprep.subr.bf16.mxu1 %v3849_v39  ;;  %3208 = vmatprep.subr.bf16.mxu0 %v3849_v39  ;;  %v3890_v58 = vpack.c.bf16 %v349_v46, %v345_v45  ;;  %v3892_v59 = vsub.f32 %v260_v25, %v337_v29  ;;  %v3894_v60 = vsub.f32 %v262_v26, %v341_v30  ;;  %v5830_v63 = vand.u32 4294901760, %v3878_v54  ;;  %v240_v25 = vld [vmem:[%s3815_s25 + $0x20] sm:$0xff]  ;;  %p3592_p3 = scmp.ne.s32.totalorder %s5773_s29, %s3591_s7  ;;  %s3595_s8 = sshll.u32 %s3690_s13, 4  ;;  %s3596_s8 = int_to_ptr.vmem [resolvable:$false] %s3595_s8 }
  0x43   : > { %v3900_v61 = vpack.c.bf16 %v351_v48, %v347_v47  ;;  %v3908_v62 = vpack.c.bf16 %v5831_v53, %v353_v49  ;;  %v5829_v0 = vand.u32 4294901760, %v3881_v55  ;;  %v273_v1 = vsel %vm271_vm1, %v236_v56, 0  ;;  %v241_v56 = vld [vmem:[%s3815_s25 + $0x28] sm:$0xff]  ;;  %s3597_s17 = scalar_lea.vmem %s3596_s8, 64  ;;  %p3598_p6 = scmp.lt.s32.totalorder %s5773_s29, %s3596_s8 }
  0x44   : > { %v3915_v2 = vand.u32 4294901760, %v273_v1  ;;  %v621_v3 = vand.u32 4294901760, %v3858_v42  ;;  %v633_v4 = vand.u32 4294901760, %v3868_v50  ;;  %v627_v5 = vand.u32 4294901760, %v3870_v51  ;;  %p3593_p4 = pnand %p3592_p3, %p3762_p7  ;;  %p3599_p8 = scmp.lt.s32.totalorder %s3597_s17, %s3591_s7 }
  0x45   : > { %3162 = vmatpush1.bf16.msra.mxu1 %v3874_v52  ;;  %3210 = vmatpush1.bf16.msra.mxu0 %v3874_v52  ;;  %v3921_v7 = vsub.f32 %v259_v31, %v339_v43  ;;  %v3923_v8 = vsub.f32 %v261_v32, %v343_v44  ;;  %v3929_v9 = vpack.c.bf16 %v5829_v0, %v5830_v63  ;;  %v639_v10 = vand.u32 4294901760, %v3884_v57  ;;  %v245_v0 = vld [vmem:[%s3815_s25 + $0x48] sm:$0xff] }
  0x46   : > { %3164 = vmatprep.subr.bf16.mxu1 %v3890_v58  ;;  %3212 = vmatprep.subr.bf16.mxu0 %v3890_v58  ;;  %v3933_v11 = vsub.f32 %v273_v1, %v3915_v2  ;;  %v622_v12 = vsub.f32 %v3858_v42, %v621_v3  ;;  %v634_v13 = vsub.f32 %v3868_v50, %v633_v4  ;;  %v276_v20 = vsel %vm271_vm1, %v237_v6, 0  ;;  %p3594_p5 = pneg %p3593_p4  ;;  %p3600_p10 = por %p3599_p8, %p3598_p6 }
  0x47   : > { %v3219_v14 = vpack.c.bf16 %v633_v4, %v621_v3  ;;  %v628_v17 = vsub.f32 %v3870_v51, %v627_v5  ;;  %v640_v18 = vsub.f32 %v3884_v57, %v639_v10  ;;  %v3221_v19 = vpack.c.bf16 %v639_v10, %v627_v5 }
  0x48   : > { %v412_v21 = vand.u32 4294901760, %v3933_v11  ;;  %v623_v22 = vand.u32 4294901760, %v622_v12  ;;  %v635_v23 = vand.u32 4294901760, %v634_v13  ;;  %v3947_v24 = vand.u32 4294901760, %v276_v20  ;;  %p3601_p11 = pnand %p3600_p10, %p3594_p5 }
  0x49   : > { %3166 = vmatpush1.bf16.msra.mxu1 %v3900_v61  ;;  %3214 = vmatpush1.bf16.msra.mxu0 %v3900_v61  ;;  %v629_v26 = vand.u32 4294901760, %v628_v17  ;;  %v641_v28 = vand.u32 4294901760, %v640_v18  ;;  %v279_v29 = vsel %vm271_vm1, %v238_v15, 0  ;;  %v282_v30 = vsel %vm271_vm1, %v239_v16, 0 }
  0x4a   : > { %3168 = vmatprep.subr.bf16.mxu1 %v3908_v62  ;;  %3216 = vmatprep.subr.bf16.mxu0 %v3908_v62  ;;  %v413_v31 = vsub.f32 %v3933_v11, %v412_v21  ;;  %v3171_v32 = vpack.c.bf16 %v635_v23, %v623_v22  ;;  %v3954_v43 = vsub.f32 %v276_v20, %v3947_v24  ;;  %v3956_v44 = vand.u32 4294901760, %v279_v29 }
  0x4b   : > { %v3173_v1 = vpack.c.bf16 %v641_v28, %v629_v26  ;;  %v3961_v3 = vand.u32 4294901760, %v282_v30  ;;  %v285_v4 = vsel %vm271_vm1, %v240_v25, 0  ;;  %v645_v5 = vand.u32 4294901760, %v3892_v59 }
  0x4c   : > { %5847 = vst [vmem:[#allocation6_spill] sm:$0xff] %v3954_v43  ;;  %v414_v6 = vand.u32 4294901760, %v413_v31  ;;  %v423_v10 = vand.u32 4294901760, %v3954_v43  ;;  %v3967_v12 = vsub.f32 %v279_v29, %v3956_v44  ;;  %v3969_v13 = vand.u32 4294901760, %v285_v4 }
  0x4d   : > { %3170 = vmatpush1.bf16.msra.mxu1 %v3929_v9  ;;  %3218 = vmatpush1.bf16.msra.mxu0 %v3929_v9  ;;  %v3972_v15 = vsub.f32 %v282_v30, %v3961_v3  ;;  %v646_v16 = vsub.f32 %v3892_v59, %v645_v5  ;;  %v657_v17 = vand.u32 4294901760, %v3894_v60  ;;  %v288_v18 = vsel %vm271_vm1, %v241_v56, 0  ;;  %v242_v30 = vld [vmem:[%s3815_s25 + $0x30] sm:$0xff] }
  0x4e   : > { %3172 = vmatprep.subr.bf16.mxu1 %v3171_v32  ;;  %3220 = vmatprep.subr.bf16.mxu0 %v3219_v14  ;;  %5848 = vst [vmem:[#allocation7_spill] sm:$0xff] %v3967_v12  ;;  %v424_v14 = vsub.f32 %v3954_v43, %v423_v10  ;;  %v434_v20 = vand.u32 4294901760, %v3967_v12  ;;  %v3980_v22 = vsub.f32 %v285_v4, %v3969_v13  ;;  %v3982_v23 = vand.u32 4294901760, %v288_v18 }
  0x4f   : > { %5849 = vst [vmem:[#allocation8_spill] sm:$0xff] %v3972_v15  ;;  %v445_v25 = vand.u32 4294901760, %v3972_v15  ;;  %v647_v26 = vand.u32 4294901760, %v646_v16  ;;  %v658_v28 = vsub.f32 %v3894_v60, %v657_v17  ;;  %v3223_v29 = vpack.c.bf16 %v657_v17, %v645_v5  ;;  %v243_v17 = vld [vmem:[%s3815_s25 + $0x38] sm:$0xff] }
  0x50   : > { %415 = vmatmul.mubr.f32.vlgmr.msra.gmra.mrb[0].mxu1 %v414_v6  ;;  %1230 = vmatmul.mubr.f32.vlgmr.msra.gmra.mrb[0].mxu0 %v412_v21  ;;  %5850 = vst [vmem:[#allocation9_spill] sm:$0xff] %v3980_v22  ;;  %v3990_v21 = vsub.f32 %v3834_v33, %v345_v45  ;;  %v425_v31 = vand.u32 4294901760, %v424_v14  ;;  %v456_v32 = vand.u32 4294901760, %v3980_v22  ;;  %v3999_v56 = vsub.f32 %v3839_v35, %v349_v46  ;;  %v244_v35 = vld [vmem:[%s3815_s25 + $0x40] sm:$0xff] }
  0x51   : > { %3174 = vmatpush1.bf16.msra.mxu1 %v3173_v1  ;;  %3222 = vmatpush1.bf16.msra.mxu0 %v3221_v19  ;;  %v435_v19 = vsub.f32 %v3967_v12, %v434_v20  ;;  %v659_v1 = vand.u32 4294901760, %v658_v28  ;;  %v651_v33 = vand.u32 4294901760, %v3921_v7  ;;  %v663_v45 = vand.u32 4294901760, %v3923_v8 }
  0x52   : > { %420 = vmatprep.mubr.f32.mxu1 %v5832_v27  ;;  %1235 = vmatprep.mubr.f32.mxu0 %v5832_v27  ;;  %v446_v5 = vsub.f32 %v3972_v15, %v445_v25  ;;  %v4005_v6 = vsub.f32 %v288_v18, %v3982_v23  ;;  %v291_v16 = vsel %vm271_vm1, %v242_v30, 0  ;;  %v4017_v28 = vsub.f32 %v3842_v36, %v347_v47 }
  0x53   : > { %3224 = vmatprep.subr.bf16.mxu0 %v3223_v29  ;;  %v436_v4 = vand.u32 4294901760, %v435_v19  ;;  %v3175_v46 = vpack.c.bf16 %v659_v1, %v647_v26  ;;  %v652_v14 = vsub.f32 %v3921_v7, %v651_v33  ;;  %v457_v18 = vsub.f32 %v3980_v22, %v456_v32  ;;  %v249_v22 = vld [vmem:[%s3815_s25 + $0x68] sm:$0xff] }
  0x54   : > { %426 = vmatmul.mubr.f32.gmra.mrb[2].mxu1 %v425_v31  ;;  %1239 = vmatmul.mubr.f32.gmra.mrb[2].mxu0 %v423_v10  ;;  %5851 = vst [vmem:[#allocation10_spill] sm:$0xff] %v4005_v6  ;;  %v664_v10 = vsub.f32 %v3923_v8, %v663_v45  ;;  %v3225_v29 = vpack.c.bf16 %v663_v45, %v651_v33  ;;  %v4022_v30 = vand.u32 4294901760, %v291_v16  ;;  %v294_v26 = vsel %vm271_vm1, %v243_v17, 0 }
  0x55   : > { %431 = vmatprep.mubr.f32.mxu1 %v5832_v27  ;;  %1244 = vmatprep.mubr.f32.mxu0 %v5832_v27  ;;  %v653_v31 = vand.u32 4294901760, %v652_v14  ;;  %v297_v1 = vsel %vm271_vm1, %v244_v35, 0  ;;  %v447_v63 = vand.u32 4294901760, %v446_v5  ;;  %v467_v36 = vand.u32 4294901760, %v4005_v6 }
  0x56   : > { %3176 = vmatprep.subr.bf16.mxu1 %v3175_v46  ;;  %v665_v19 = vand.u32 4294901760, %v664_v10  ;;  %v4029_v47 = vsub.f32 %v291_v16, %v4022_v30  ;;  %v4031_v53 = vand.u32 4294901760, %v294_v26  ;;  %v4036_v33 = vsub.f32 %v3845_v37, %v351_v48  ;;  %3226 = vmatpush1.bf16.msra.mxu0 %v3225_v29 }
  0x57   : > { %v4043_v16 = vand.u32 4294901760, %v297_v1  ;;  %v300_v17 = vsel %vm271_vm1, %v245_v0, 0  ;;  %v675_v46 = vand.u32 4294901760, %v4017_v28  ;;  %v458_v14 = vand.u32 4294901760, %v457_v18 }
  0x58   : > { %437 = vmatmul.mubr.f32.gmra.mrb[4].mxu1 %v436_v4  ;;  %1248 = vmatmul.mubr.f32.gmra.mrb[4].mxu0 %v434_v20  ;;  %5852 = vst [vmem:[#allocation11_spill] sm:$0xff] %v4029_v47  ;;  %v3177_v45 = vpack.c.bf16 %v665_v19, %v653_v31  ;;  %v669_v20 = vand.u32 4294901760, %v3990_v21  ;;  %v681_v4 = vand.u32 4294901760, %v3999_v56  ;;  %v5834_v5 = vand.u32 4294901760, %v4029_v47 }
  0x59   : > { %442 = vmatprep.mubr.f32.mxu1 %v5832_v27  ;;  %1253 = vmatprep.mubr.f32.mxu0 %v5832_v27  ;;  %v468_v10 = vsub.f32 %v4005_v6, %v467_v36  ;;  %v4051_v29 = vsub.f32 %v294_v26, %v4031_v53  ;;  %v676_v19 = vsub.f32 %v4017_v28, %v675_v46  ;;  %v4063_v18 = vand.u32 4294901760, %v300_v17  ;;  %v246_v26 = vld [vmem:[%s3815_s25 + $0x50] sm:$0xff] }
  0x5a   : > { %3178 = vmatpush1.bf16.msra.mxu1 %v3177_v45  ;;  %v670_v37 = vsub.f32 %v3990_v21, %v669_v20  ;;  %v682_v48 = vsub.f32 %v3999_v56, %v681_v4  ;;  %v3227_v35 = vpack.c.bf16 %v681_v4, %v669_v20  ;;  %v687_v45 = vand.u32 4294901760, %v4036_v33 }
  0x5b   : > { %5853 = vst [vmem:[#allocation12_spill] sm:$0xff] %v4051_v29  ;;  %v677_v4 = vand.u32 4294901760, %v676_v19  ;;  %v5856_v19 = vmov 0.0   ;;  %v5859_v6 = vand.u32 4294901760, %v4029_v47 }
  0x5c   : > { %448 = vmatmul.mubr.f32.gmra.mrb[6].mxu1 %v447_v63  ;;  %1257 = vmatmul.mubr.f32.gmra.mrb[6].mxu0 %v445_v25  ;;  %v671_v0 = vand.u32 4294901760, %v670_v37  ;;  %v683_v31 = vand.u32 4294901760, %v682_v48  ;;  %v479_v63 = vsub.f32 %v4029_v47, %v5834_v5  ;;  %v4061_v25 = vsub.f32 %v297_v1, %v4043_v16 }
  0x5d   : > { %453 = vmatprep.mubr.f32.mxu1 %v5832_v27  ;;  %1262 = vmatprep.mubr.f32.mxu0 %v5832_v27  ;;  %v688_v37 = vsub.f32 %v4036_v33, %v687_v45  ;;  %v3229_v48 = vpack.c.bf16 %v687_v45, %v675_v46  ;;  %v4070_v27 = vsub.f32 %v3852_v40, %v353_v49  ;;  %v469_v1 = vand.u32 4294901760, %v468_v10 }
  0x5e   : > { %3228 = vmatprep.subr.bf16.mxu0 %v3227_v35  ;;  %v3179_v20 = vpack.c.bf16 %v683_v31, %v671_v0  ;;  %v489_v5 = vand.u32 4294901760, %v4051_v29  ;;  %v5854_v35 = vand.u32 4294901760, %v3855_v41  ;;  %v5855_v31 = vand.u32 4294901760, %v3878_v54 }
  0x5f   : > { %v689_v40 = vand.u32 4294901760, %v688_v37  ;;  %v303_v49 = vsel %vm271_vm1, %v246_v26, 0  ;;  %v4091_v10 = vsub.f32 %v300_v17, %v4063_v18  ;;  %3230 = vmatpush1.bf16.msra.mxu0 %v3229_v48  ;;  %v693_v26 = vand.u32 4294901760, %v4070_v27  ;;  %v248_v17 = vld [vmem:[%s3815_s25 + $0x60] sm:$0xff] }
  0x60   : > { %459 = vmatmul.mubr.f32.gmra.mrb[8].mxu1 %v458_v14  ;;  %1266 = vmatmul.mubr.f32.gmra.mrb[8].mxu0 %v456_v32  ;;  %v4078_v0 = vsub.f32 %v3855_v41, %v5854_v35  ;;  %v4083_v46 = vsub.f32 %v3878_v54, %v5855_v31  ;;  %v247_v32 = vld [vmem:[%s3815_s25 + $0x58] sm:$0xff]  ;;  %v5837_v14 = vand.u32 4294901760, %v4061_v25  ;;  %v480_v41 = vand.u32 4294901760, %v479_v63 }
  0x61   : > { %464 = vmatprep.mubr.f32.mxu1 %v5856_v19  ;;  %1271 = vmatprep.mubr.f32.mxu0 %v5856_v19  ;;  %5857 = vst [vmem:[#allocation13_spill] sm:$0xff] %v4091_v10  ;;  %v3181_v45 = vpack.c.bf16 %v689_v40, %v677_v4  ;;  %v490_v54 = vsub.f32 %v4051_v29, %v489_v5  ;;  %v4094_v35 = vand.u32 4294901760, %v303_v49  ;;  %v306_v37 = vsel %vm271_vm1, %v247_v32, 0 }
  0x62   : > { %3180 = vmatprep.subr.bf16.mxu1 %v3179_v20  ;;  %v705_v20 = vand.u32 4294901760, %v4078_v0  ;;  %v699_v63 = vand.u32 4294901760, %v4083_v46  ;;  %v501_v48 = vsub.f32 %v4061_v25, %v5837_v14  ;;  %v694_v31 = vsub.f32 %v4070_v27, %v693_v26 }
  0x63   : > { %3182 = vmatpush1.bf16.msra.mxu1 %v3181_v45  ;;  %v4113_v40 = vand.u32 4294901760, %v306_v37  ;;  %v309_v14 = vsel %vm271_vm1, %v248_v17, 0  ;;  %v312_v17 = vsel %vm271_vm1, %v249_v22, 0 }
  0x64   : > { %470 = vmatmul.mubr.f32.gmra.mrb[10].mxu1 %v469_v1  ;;  %1275 = vmatmul.mubr.f32.gmra.mrb[10].mxu0 %v467_v36  ;;  %v5858_v36 = vand.u32 4294901760, %v3881_v55  ;;  %v511_v1 = vand.u32 4294901760, %v4091_v10  ;;  %v706_v32 = vsub.f32 %v4078_v0, %v705_v20  ;;  %v3231_v29 = vpack.c.bf16 %v705_v20, %v693_v26 }
  0x65   : > { %475 = vmatprep.mubr.f32.mxu1 %v5856_v19  ;;  %1280 = vmatprep.mubr.f32.mxu0 %v5856_v19  ;;  %v695_v45 = vand.u32 4294901760, %v694_v31  ;;  %v700_v26 = vsub.f32 %v4083_v46, %v699_v63  ;;  %v250_v31 = vld [vmem:[%s3815_s25 + $0x70] sm:$0xff] }
  0x66   : > { %v4106_v4 = vsub.f32 %v3881_v55, %v5858_v36  ;;  %v491_v55 = vand.u32 4294901760, %v490_v54  ;;  %v4119_v36 = vsub.f32 %v303_v49, %v4094_v35  ;;  %v707_v15 = vand.u32 4294901760, %v706_v32  ;;  %3232 = vmatprep.subr.bf16.mxu0 %v3231_v29 }
  0x67   : > { %v512_v20 = vsub.f32 %v4091_v10, %v511_v1  ;;  %v4129_v49 = vsub.f32 %v306_v37, %v4113_v40  ;;  %v4131_v54 = vand.u32 4294901760, %v309_v14  ;;  %v701_v12 = vand.u32 4294901760, %v700_v26 }
  0x68   : > { %481 = vmatmul.mubr.f32.gmra.mrb[12].mxu1 %v480_v41  ;;  %1284 = vmatmul.mubr.f32.gmra.mrb[12].mxu0 %v5859_v6  ;;  %v502_v41 = vand.u32 4294901760, %v501_v48  ;;  %v711_v6 = vand.u32 4294901760, %v4106_v4  ;;  %v3183_v47 = vpack.c.bf16 %v707_v15, %v695_v45  ;;  %v522_v32 = vand.u32 4294901760, %v4119_v36 }
  0x69   : > { %486 = vmatprep.mubr.f32.mxu1 %v5856_v19  ;;  %1289 = vmatprep.mubr.f32.mxu0 %v5856_v19  ;;  %v513_v29 = vand.u32 4294901760, %v512_v20  ;;  %v4139_v37 = vand.u32 4294901760, %v312_v17  ;;  %v315_v43 = vsel %vm271_vm1, %v250_v31, 0  ;;  %v3187_v15 = vpack.c.bf16 %v3868_v50, %v3858_v42 }
  0x6a   : > { %v712_v48 = vsub.f32 %v4106_v4, %v711_v6  ;;  %v3233_v10 = vpack.c.bf16 %v711_v6, %v699_v63  ;;  %3184 = vmatprep.subr.bf16.mxu1 %v3183_v47  ;;  %v5860_v47 = vand.u32 4294901760, %v4061_v25  ;;  %v533_v42 = vand.u32 4294901760, %v4129_v49 }
  0x6b   : > { %v4156_v50 = vsub.f32 %v309_v14, %v4131_v54  ;;  %v4167_v6 = vand.u32 4294901760, %v315_v43 }
  0x6c   : > { %492 = vmatmul.mubr.f32.gmra.mrb[14].mxu1 %v491_v55  ;;  %1293 = vmatmul.mubr.f32.gmra.mrb[14].mxu0 %v489_v5  ;;  %v713_v22 = vand.u32 4294901760, %v712_v48  ;;  %v3189_v5 = vpack.c.bf16 %v3884_v57, %v3870_v51  ;;  %v534_v14 = vsub.f32 %v4129_v49, %v533_v42  ;;  %v4172_v48 = vsub.f32 %v312_v17, %v4139_v37 }
  0x6d   : > { %497 = vmatprep.mubr.f32.mxu1 %v5856_v19  ;;  %1298 = vmatprep.mubr.f32.mxu0 %v5856_v19  ;;  %v544_v31 = vand.u32 4294901760, %v4156_v50  ;;  %v5863_v51 = vpack.c.bf16 %v3999_v56, %v3990_v21  ;;  %v5865_v57 = vpack.c.bf16 %v4078_v0, %v4070_v27  ;;  %v5866_v27 = vld [vmem:[#allocation6_spill] sm:$0xff] }
  0x6e   : > { %3234 = vmatpush1.bf16.msra.mxu0 %v3233_v10  ;;  %v523_v10 = vsub.f32 %v4119_v36, %v522_v32 }
  0x6f   : > { %3236 = vmatprep.subr.bf16.mxu0 %v3836_v34  ;;  %v3185_v34 = vpack.c.bf16 %v713_v22, %v701_v12 }
  0x70   : > { %503 = vmatmul.mubr.f32.gmra.mrb[16].mxu1 %v502_v41  ;;  %1302 = vmatmul.mubr.f32.gmra.mrb[16].mxu0 %v5860_v47  ;;  %v251_v41 = vld [vmem:[%s3815_s25 + $0x78] sm:$0xff]  ;;  %v524_v12 = vand.u32 4294901760, %v523_v10  ;;  %v252_v47 = vld [vmem:[%s3815_s25 + $0x80] sm:$0xff]  ;;  %v555_v10 = vand.u32 4294901760, %v4172_v48 }
  0x71   : > { %508 = vmatprep.mubr.f32.mxu1 %v5856_v19  ;;  %1307 = vmatprep.mubr.f32.mxu0 %v5856_v19  ;;  %v318_v22 = vsel %vm271_vm1, %v251_v41, 0  ;;  %v253_v41 = vld [vmem:[%s3815_s25 + $0x88] sm:$0xff] }
  0x72   : > { %3186 = vmatpush1.bf16.msra.mxu1 %v3185_v34  ;;  %v4183_v17 = vand.u32 4294901760, %v318_v22  ;;  %v321_v34 = vsel %vm271_vm1, %v252_v47, 0  ;;  %v324_v26 = vsel %vm271_vm1, %v253_v41, 0  ;;  %v254_v47 = vld [vmem:[%s3815_s25 + $0x90] sm:$0xff] }
  0x73   : > { %3188 = vmatprep.subr.bf16.mxu1 %v3187_v15  ;;  %v4179_v15 = vsub.f32 %v315_v43, %v4167_v6  ;;  %v4194_v20 = vand.u32 4294901760, %v321_v34  ;;  %v327_v55 = vsel %vm271_vm1, %v254_v47, 0 }
  0x74   : > { %514 = vmatmul.mubr.f32.gmra.mrb[18].mxu1 %v513_v29  ;;  %1311 = vmatmul.mubr.f32.gmra.mrb[18].mxu0 %v511_v1  ;;  %v535_v1 = vand.u32 4294901760, %v534_v14  ;;  %v545_v29 = vsub.f32 %v4156_v50, %v544_v31  ;;  %v4192_v14 = vsub.f32 %v318_v22, %v4183_v17  ;;  %v4205_v22 = vand.u32 4294901760, %v324_v26 }
  0x75   : > { %519 = vmatprep.mubr.f32.mxu1 %v5856_v19  ;;  %1316 = vmatprep.mubr.f32.mxu0 %v5856_v19  ;;  %v566_v43 = vand.u32 4294901760, %v4179_v15 }
  0x77   : > { %v567_v45 = vsub.f32 %v4179_v15, %v566_v43 }
  0x78   : > { %525 = vmatmul.mubr.f32.gmra.mrb[20].mxu1 %v524_v12  ;;  %1320 = vmatmul.mubr.f32.gmra.mrb[20].mxu0 %v522_v32  ;;  %v546_v32 = vand.u32 4294901760, %v545_v29  ;;  %v556_v12 = vsub.f32 %v4172_v48, %v555_v10  ;;  %v4203_v29 = vsub.f32 %v321_v34, %v4194_v20  ;;  %v4215_v34 = vand.u32 4294901760, %v327_v55 }
  0x79   : > { %530 = vmatprep.mubr.f32.mxu1 %v5856_v19  ;;  %1325 = vmatprep.mubr.f32.mxu0 %v5856_v19  ;;  %v568_v41 = vand.u32 4294901760, %v567_v45 }
  0x7a   : > { %v4222_v47 = vsub.f32 %v327_v55, %v4215_v34 }
  0x7c   : > { %536 = vmatmul.mubr.f32.gmra.mrb[22].mxu1 %v535_v1  ;;  %1329 = vmatmul.mubr.f32.gmra.mrb[22].mxu0 %v533_v42  ;;  %v557_v42 = vand.u32 4294901760, %v556_v12  ;;  %v577_v1 = vand.u32 4294901760, %v4192_v14  ;;  %v4213_v12 = vsub.f32 %v324_v26, %v4205_v22 }
  0x7d   : > { %541 = vmatprep.mubr.f32.mxu1 %v5856_v19  ;;  %1334 = vmatprep.mubr.f32.mxu0 %v5856_v19 }
  0x80   : > { %547 = vmatmul.mubr.f32.gmra.mrb[24].mxu1 %v546_v32  ;;  %1338 = vmatmul.mubr.f32.gmra.mrb[24].mxu0 %v544_v31  ;;  %v578_v32 = vsub.f32 %v4192_v14, %v577_v1  ;;  %v588_v31 = vand.u32 4294901760, %v4203_v29 }
  0x81   : > { %552 = vmatprep.mubr.f32.mxu1 %v5856_v19  ;;  %1343 = vmatprep.mubr.f32.mxu0 %v5856_v19 }
  0x82   : > { %v579_v63 = vand.u32 4294901760, %v578_v32  ;;  %v589_v45 = vsub.f32 %v4203_v29, %v588_v31 }
  0x84   : > { %558 = vmatmul.mubr.f32.gmra.mrb[26].mxu1 %v557_v42  ;;  %1347 = vmatmul.mubr.f32.gmra.mrb[26].mxu0 %v555_v10  ;;  %v599_v10 = vand.u32 4294901760, %v4213_v12  ;;  %v590_v26 = vand.u32 4294901760, %v589_v45 }
  0x85   : > { %563 = vmatprep.mubr.f32.mxu1 %v5856_v19  ;;  %1352 = vmatprep.mubr.f32.mxu0 %v5856_v19 }
  0x86   : > { %v600_v42 = vsub.f32 %v4213_v12, %v599_v10 }
  0x88   : > { %569 = vmatmul.mubr.f32.gmra.mrb[28].mxu1 %v568_v41  ;;  %1356 = vmatmul.mubr.f32.gmra.mrb[28].mxu0 %v566_v43  ;;  %v610_v41 = vand.u32 4294901760, %v4222_v47  ;;  %v601_v43 = vand.u32 4294901760, %v600_v42 }
  0x89   : > { %574 = vmatprep.mubr.f32.mxu1 %v5856_v19  ;;  %1361 = vmatprep.mubr.f32.mxu0 %v5856_v19 }
  0x8a   : > { %v611_v55 = vsub.f32 %v4222_v47, %v610_v41 }
  0x8c   : > { %580 = vmatmul.mubr.f32.gmra.mrb[30].mxu1 %v579_v63  ;;  %1365 = vmatmul.mubr.f32.gmra.mrb[30].mxu0 %v577_v1  ;;  %v612_v63 = vand.u32 4294901760, %v611_v55  ;;  %v5861_v1 = vpack.c.bf16 %v3894_v60, %v3892_v59  ;;  %v5868_v59 = vld [vmem:[#allocation8_spill] sm:$0xff]  ;;  %v5869_v60 = vld [vmem:[#allocation9_spill] sm:$0xff] }
  0x8d   : > { %585 = vmatprep.mubr.f32.mxu1 %v5856_v19  ;;  %1370 = vmatprep.mubr.f32.mxu0 %v5856_v19 }
  0x90   : > { %591 = vmatmul.mubr.f32.gmra.mrb[32].mxu1 %v590_v26  ;;  %1374 = vmatmul.mubr.f32.gmra.mrb[32].mxu0 %v588_v31 }
  0x91   : > { %596 = vmatprep.mubr.f32.mxu1 %v5856_v19  ;;  %1379 = vmatprep.mubr.f32.mxu0 %v5856_v19 }
  0x94   : > { %602 = vmatmul.mubr.f32.gmra.mrb[34].mxu1 %v601_v43  ;;  %1383 = vmatmul.mubr.f32.gmra.mrb[34].mxu0 %v599_v10 }
  0x95   : > { %607 = vmatprep.mubr.f32.mxu1 %v5856_v19  ;;  %1388 = vmatprep.mubr.f32.mxu0 %v5856_v19 }
  0x98   : > { %613 = vmatmul.mubr.f32.gmra.mrb[36].mxu1 %v612_v63  ;;  %1392 = vmatmul.mubr.f32.gmra.mrb[36].mxu0 %v610_v41 }
  0x99   : > { %763 = vmatprep.mubr.f32.mxu1 %v5856_v19  ;;  %1510 = vmatprep.mubr.f32.mxu0 %v5856_v19 }
  0x9c   : > { %765 = vmatmul.mubr.f32.vlgmr.msra.gmra.mrb[0].mxu1 %v3915_v2  ;;  %1512 = vmatmul.mubr.f32.vlgmr.msra.gmra.mrb[0].mxu0 %v3915_v2 }
  0x9d   : > { %3190 = vmatpush1.bf16.msra.mxu1 %v3189_v5  ;;  %3238 = vmatpush1.bf16.msra.mxu0 %v3847_v38  ;;  %v5862_v38 = vpack.c.bf16 %v3923_v8, %v3921_v7  ;;  %v5873_v7 = vld [vmem:[#allocation13_spill] sm:$0xff] }
  0x9e   : > { %770 = vmatprep.mubr.f32.mxu1 %v5856_v19  ;;  %1517 = vmatprep.mubr.f32.mxu0 %v5856_v19 }
  0x9f   : > { %3192 = vmatprep.subr.bf16.mxu1 %v5861_v1  ;;  %3240 = vmatprep.subr.bf16.mxu0 %v3849_v39  ;;  %v5864_v39 = vpack.c.bf16 %v4036_v33, %v4017_v28 }
  0xa0   : > { %772 = vmatmul.mubr.f32.gmra.mrb[2].mxu1 %v3947_v24  ;;  %1519 = vmatmul.mubr.f32.gmra.mrb[2].mxu0 %v3947_v24 }
  0xa1   : > { %777 = vmatprep.mubr.f32.mxu1 %v5856_v19  ;;  %1524 = vmatprep.mubr.f32.mxu0 %v5856_v19 }
  0xa2   : > { %3194 = vmatpush1.bf16.msra.mxu1 %v5862_v38  ;;  %3242 = vmatpush1.bf16.msra.mxu0 %v3874_v52  ;;  %v3201_v52 = vpack.c.bf16 %v4106_v4, %v4083_v46 }
  0xa3   : > { %3196 = vmatprep.subr.bf16.mxu1 %v5863_v51  ;;  %3244 = vmatprep.subr.bf16.mxu0 %v3890_v58  ;;  %v5867_v58 = vld [vmem:[#allocation7_spill] sm:$0xff] }
  0xa4   : > { %779 = vmatmul.mubr.f32.gmra.mrb[4].mxu1 %v3956_v44  ;;  %1526 = vmatmul.mubr.f32.gmra.mrb[4].mxu0 %v3956_v44 }
  0xa5   : > { %784 = vmatprep.mubr.f32.mxu1 %v5856_v19  ;;  %1531 = vmatprep.mubr.f32.mxu0 %v5856_v19 }
  0xa6   : > { %3198 = vmatpush1.bf16.msra.mxu1 %v5864_v39  ;;  %3246 = vmatpush1.bf16.msra.mxu0 %v3900_v61  ;;  %v5870_v61 = vld [vmem:[#allocation10_spill] sm:$0xff] }
  0xa7   : > { %3200 = vmatprep.subr.bf16.mxu1 %v5865_v57  ;;  %3248 = vmatprep.subr.bf16.mxu0 %v3908_v62  ;;  %v5871_v62 = vld [vmem:[#allocation11_spill] sm:$0xff] }
  0xa8   : > { %786 = vmatmul.mubr.f32.gmra.mrb[6].mxu1 %v3961_v3  ;;  %1533 = vmatmul.mubr.f32.gmra.mrb[6].mxu0 %v3961_v3 }
  0xa9   : > { %791 = vmatprep.mubr.f32.mxu1 %v5856_v19  ;;  %1538 = vmatprep.mubr.f32.mxu0 %v5856_v19 }
  0xaa   : > { %3202 = vmatpush1.bf16.msra.mxu1 %v3201_v52  ;;  %3250 = vmatpush1.bf16.msra.mxu0 %v3929_v9 }
  0xac   : > { %793 = vmatmul.mubr.f32.gmra.mrb[8].mxu1 %v3969_v13  ;;  %1540 = vmatmul.mubr.f32.gmra.mrb[8].mxu0 %v3969_v13 }
  0xad   : > { %798 = vmatprep.mubr.f32.mxu1 %v5856_v19  ;;  %1545 = vmatprep.mubr.f32.mxu0 %v5856_v19 }
  0xb0   : > { %800 = vmatmul.mubr.f32.gmra.mrb[10].mxu1 %v3982_v23  ;;  %1547 = vmatmul.mubr.f32.gmra.mrb[10].mxu0 %v3982_v23 }
  0xb1   : > { %805 = vmatprep.mubr.f32.mxu1 %v5856_v19  ;;  %1552 = vmatprep.mubr.f32.mxu0 %v5856_v19 }
  0xb4   : > { %807 = vmatmul.mubr.f32.gmra.mrb[12].mxu1 %v4022_v30  ;;  %1554 = vmatmul.mubr.f32.gmra.mrb[12].mxu0 %v4022_v30 }
  0xb5   : > { %812 = vmatprep.mubr.f32.mxu1 %v5856_v19  ;;  %1559 = vmatprep.mubr.f32.mxu0 %v5856_v19 }
  0xb8   : > { %814 = vmatmul.mubr.f32.gmra.mrb[14].mxu1 %v4031_v53  ;;  %1561 = vmatmul.mubr.f32.gmra.mrb[14].mxu0 %v4031_v53 }
  0xb9   : > { %819 = vmatprep.mubr.f32.mxu1 %v5856_v19  ;;  %1566 = vmatprep.mubr.f32.mxu0 %v5856_v19 }
  0xbc   : > { %821 = vmatmul.mubr.f32.gmra.mrb[16].mxu1 %v4043_v16  ;;  %1568 = vmatmul.mubr.f32.gmra.mrb[16].mxu0 %v4043_v16 }
  0xbd   : > { %826 = vmatprep.mubr.f32.mxu1 %v5856_v19  ;;  %1573 = vmatprep.mubr.f32.mxu0 %v5856_v19 }
  0xc0   : > { %828 = vmatmul.mubr.f32.gmra.mrb[18].mxu1 %v4063_v18  ;;  %1575 = vmatmul.mubr.f32.gmra.mrb[18].mxu0 %v4063_v18 }
  0xc1   : > { %833 = vmatprep.mubr.f32.mxu1 %v5856_v19  ;;  %1580 = vmatprep.mubr.f32.mxu0 %v5856_v19 }
  0xc4   : > { %835 = vmatmul.mubr.f32.gmra.mrb[20].mxu1 %v4094_v35  ;;  %1582 = vmatmul.mubr.f32.gmra.mrb[20].mxu0 %v4094_v35 }
  0xc5   : > { %840 = vmatprep.mubr.f32.mxu1 %v5856_v19  ;;  %1587 = vmatprep.mubr.f32.mxu0 %v5856_v19 }
  0xc8   : > { %842 = vmatmul.mubr.f32.gmra.mrb[22].mxu1 %v4113_v40  ;;  %1589 = vmatmul.mubr.f32.gmra.mrb[22].mxu0 %v4113_v40 }
  0xc9   : > { %847 = vmatprep.mubr.f32.mxu1 %v5856_v19  ;;  %1594 = vmatprep.mubr.f32.mxu0 %v5856_v19 }
  0xcc   : > { %849 = vmatmul.mubr.f32.gmra.mrb[24].mxu1 %v4131_v54  ;;  %1596 = vmatmul.mubr.f32.gmra.mrb[24].mxu0 %v4131_v54 }
  0xcd   : > { %854 = vmatprep.mubr.f32.mxu1 %v5856_v19  ;;  %1601 = vmatprep.mubr.f32.mxu0 %v5856_v19 }
  0xd0   : > { %856 = vmatmul.mubr.f32.gmra.mrb[26].mxu1 %v4139_v37  ;;  %1603 = vmatmul.mubr.f32.gmra.mrb[26].mxu0 %v4139_v37 }
  0xd1   : > { %861 = vmatprep.mubr.f32.mxu1 %v5856_v19  ;;  %1608 = vmatprep.mubr.f32.mxu0 %v5856_v19 }
  0xd4   : > { %863 = vmatmul.mubr.f32.gmra.mrb[28].mxu1 %v4167_v6  ;;  %1610 = vmatmul.mubr.f32.gmra.mrb[28].mxu0 %v4167_v6 }
  0xd5   : > { %868 = vmatprep.mubr.f32.mxu1 %v5856_v19  ;;  %1615 = vmatprep.mubr.f32.mxu0 %v5856_v19 }
  0xd8   : > { %870 = vmatmul.mubr.f32.gmra.mrb[30].mxu1 %v4183_v17  ;;  %1617 = vmatmul.mubr.f32.gmra.mrb[30].mxu0 %v4183_v17 }
  0xd9   : > { %875 = vmatprep.mubr.f32.mxu1 %v5856_v19  ;;  %1622 = vmatprep.mubr.f32.mxu0 %v5856_v19 }
  0xdc   : > { %877 = vmatmul.mubr.f32.gmra.mrb[32].mxu1 %v4194_v20  ;;  %1624 = vmatmul.mubr.f32.gmra.mrb[32].mxu0 %v4194_v20 }
  0xdd   : > { %882 = vmatprep.mubr.f32.mxu1 %v5856_v19  ;;  %1629 = vmatprep.mubr.f32.mxu0 %v5856_v19 }
  0xe0   : > { %884 = vmatmul.mubr.f32.gmra.mrb[34].mxu1 %v4205_v22  ;;  %1631 = vmatmul.mubr.f32.gmra.mrb[34].mxu0 %v4205_v22 }
  0xe1   : > { %889 = vmatprep.mubr.f32.mxu1 %v5856_v19  ;;  %1636 = vmatprep.mubr.f32.mxu0 %v5856_v19 }
  0xe4   : > { %891 = vmatmul.mubr.f32.gmra.mrb[36].mxu1 %v4215_v34  ;;  %1638 = vmatmul.mubr.f32.gmra.mrb[36].mxu0 %v4215_v34 }
  0xe5   : > { %993 = vmatprep.mubr.f32.mxu1 %v5856_v19  ;;  %1724 = vmatprep.mubr.f32.mxu0 %v5856_v19 }
  0xe8   : > { %996 = vmatmul.mubr.f32.vlgmr.msra.gmra.mrb[0].mxu1 %v3933_v11  ;;  %1726 = vmatmul.mubr.f32.vlgmr.msra.gmra.mrb[0].mxu0 %v3915_v2  ;;  %v5872_v2 = vld [vmem:[#allocation12_spill] sm:$0xff] }
  0xe9   : > { %1001 = vmatprep.mubr.f32.mxu1 %v5856_v19  ;;  %1731 = vmatprep.mubr.f32.mxu0 %v5856_v19 }
  0xec   : > { %1004 = vmatmul.mubr.f32.gmra.mrb[2].mxu1 %v5866_v27  ;;  %1733 = vmatmul.mubr.f32.gmra.mrb[2].mxu0 %v3947_v24 }
  0xed   : > { %1009 = vmatprep.mubr.f32.mxu1 %v5856_v19  ;;  %1738 = vmatprep.mubr.f32.mxu0 %v5856_v19 }
  0xf0   : > { %1012 = vmatmul.mubr.f32.gmra.mrb[4].mxu1 %v5867_v58  ;;  %1740 = vmatmul.mubr.f32.gmra.mrb[4].mxu0 %v3956_v44 }
  0xf1   : > { %1017 = vmatprep.mubr.f32.mxu1 %v5856_v19  ;;  %1745 = vmatprep.mubr.f32.mxu0 %v5856_v19 }
  0xf4   : > { %1020 = vmatmul.mubr.f32.gmra.mrb[6].mxu1 %v5868_v59  ;;  %1747 = vmatmul.mubr.f32.gmra.mrb[6].mxu0 %v3961_v3 }
  0xf5   : > { %1025 = vmatprep.mubr.f32.mxu1 %v5856_v19  ;;  %1752 = vmatprep.mubr.f32.mxu0 %v5856_v19 }
  0xf8   : > { %1028 = vmatmul.mubr.f32.gmra.mrb[8].mxu1 %v5869_v60  ;;  %1754 = vmatmul.mubr.f32.gmra.mrb[8].mxu0 %v3969_v13 }
  0xf9   : > { %1033 = vmatprep.mubr.f32.mxu1 %v5856_v19  ;;  %1759 = vmatprep.mubr.f32.mxu0 %v5856_v19 }
  0xfc   : > { %1036 = vmatmul.mubr.f32.gmra.mrb[10].mxu1 %v5870_v61  ;;  %1761 = vmatmul.mubr.f32.gmra.mrb[10].mxu0 %v3982_v23 }
  0xfd   : > { %1041 = vmatprep.mubr.f32.mxu1 %v5856_v19  ;;  %1766 = vmatprep.mubr.f32.mxu0 %v5856_v19 }
 0x100   : > { %1044 = vmatmul.mubr.f32.gmra.mrb[12].mxu1 %v5871_v62  ;;  %1768 = vmatmul.mubr.f32.gmra.mrb[12].mxu0 %v4022_v30 }
 0x101   : > { %1049 = vmatprep.mubr.f32.mxu1 %v5856_v19  ;;  %1773 = vmatprep.mubr.f32.mxu0 %v5856_v19 }
 0x104   : > { %1052 = vmatmul.mubr.f32.gmra.mrb[14].mxu1 %v5872_v2  ;;  %1775 = vmatmul.mubr.f32.gmra.mrb[14].mxu0 %v4031_v53 }
 0x105   : > { %1057 = vmatprep.mubr.f32.mxu1 %v5856_v19  ;;  %1780 = vmatprep.mubr.f32.mxu0 %v5856_v19 }
 0x108   : > { %1060 = vmatmul.mubr.f32.gmra.mrb[16].mxu1 %v4061_v25  ;;  %1782 = vmatmul.mubr.f32.gmra.mrb[16].mxu0 %v4043_v16 }
 0x109   : > { %1065 = vmatprep.mubr.f32.mxu1 %v5856_v19  ;;  %1787 = vmatprep.mubr.f32.mxu0 %v5856_v19 }
 0x10c   : > { %1068 = vmatmul.mubr.f32.gmra.mrb[18].mxu1 %v5873_v7  ;;  %1789 = vmatmul.mubr.f32.gmra.mrb[18].mxu0 %v4063_v18 }
 0x10d   : > { %1073 = vmatprep.mubr.f32.mxu1 %v5856_v19  ;;  %1794 = vmatprep.mubr.f32.mxu0 %v5856_v19 }
 0x110   : > { %1076 = vmatmul.mubr.f32.gmra.mrb[20].mxu1 %v4119_v36  ;;  %1796 = vmatmul.mubr.f32.gmra.mrb[20].mxu0 %v4094_v35 }
 0x111   : > { %1081 = vmatprep.mubr.f32.mxu1 %v5856_v19  ;;  %1801 = vmatprep.mubr.f32.mxu0 %v5856_v19 }
 0x114   : > { %1084 = vmatmul.mubr.f32.gmra.mrb[22].mxu1 %v4129_v49  ;;  %1803 = vmatmul.mubr.f32.gmra.mrb[22].mxu0 %v4113_v40 }
 0x115   : > { %1089 = vmatprep.mubr.f32.mxu1 %v5856_v19  ;;  %1808 = vmatprep.mubr.f32.mxu0 %v5856_v19 }
 0x118   : > { %1092 = vmatmul.mubr.f32.gmra.mrb[24].mxu1 %v4156_v50  ;;  %1810 = vmatmul.mubr.f32.gmra.mrb[24].mxu0 %v4131_v54 }
 0x119   : > { %1097 = vmatprep.mubr.f32.mxu1 %v5856_v19  ;;  %1815 = vmatprep.mubr.f32.mxu0 %v5856_v19 }
 0x11c   : > { %1100 = vmatmul.mubr.f32.gmra.mrb[26].mxu1 %v4172_v48  ;;  %1817 = vmatmul.mubr.f32.gmra.mrb[26].mxu0 %v4139_v37 }
 0x11d   : > { %1105 = vmatprep.mubr.f32.mxu1 %v5856_v19  ;;  %1822 = vmatprep.mubr.f32.mxu0 %v5856_v19 }
 0x120   : > { %1108 = vmatmul.mubr.f32.gmra.mrb[28].mxu1 %v4179_v15  ;;  %1824 = vmatmul.mubr.f32.gmra.mrb[28].mxu0 %v4167_v6 }
 0x121   : > { %1113 = vmatprep.mubr.f32.mxu1 %v5856_v19  ;;  %1829 = vmatprep.mubr.f32.mxu0 %v5856_v19 }
 0x124   : > { %1116 = vmatmul.mubr.f32.gmra.mrb[30].mxu1 %v4192_v14  ;;  %1831 = vmatmul.mubr.f32.gmra.mrb[30].mxu0 %v4183_v17 }
 0x125   : > { %1121 = vmatprep.mubr.f32.mxu1 %v5856_v19  ;;  %1836 = vmatprep.mubr.f32.mxu0 %v5856_v19 }
 0x128   : > { %1124 = vmatmul.mubr.f32.gmra.mrb[32].mxu1 %v4203_v29  ;;  %1838 = vmatmul.mubr.f32.gmra.mrb[32].mxu0 %v4194_v20 }
 0x129   : > { %1129 = vmatprep.mubr.f32.mxu1 %v5856_v19  ;;  %1843 = vmatprep.mubr.f32.mxu0 %v5856_v19 }
 0x12c   : > { %1132 = vmatmul.mubr.f32.gmra.mrb[34].mxu1 %v4213_v12  ;;  %1845 = vmatmul.mubr.f32.gmra.mrb[34].mxu0 %v4205_v22 }
 0x12d   : > { %1137 = vmatprep.mubr.f32.mxu1 %v5856_v19  ;;  %1850 = vmatprep.mubr.f32.mxu0 %v5856_v19 }
 0x130   : > { %1140 = vmatmul.mubr.f32.gmra.mrb[36].mxu1 %v4222_v47  ;;  %1852 = vmatmul.mubr.f32.gmra.mrb[36].mxu0 %v4215_v34 }
 0x1bb   : > { %v997_v53 = vpop.f32.mrb[0].mxu1  ;;  %v1727_v8 = vpop.f32.mrb[0].mxu0 }
 0x1bc   : > { %v4414_v9 = vadd.f32 %v1727_v8, %v997_v53  ;;  %v999_v11 = vpop.f32.mrb[1].mxu1  ;;  %v1729_v24 = vpop.f32.mrb[1].mxu0 }
 0x1bd   : > { %v4416_v44 = vadd.f32 %v1729_v24, %v999_v11 }
 0x1be   : > { %v1934_v3 = vand.u32 2147483647, %v4414_v9  ;;  %v4421_v13 = vmul.f32 %v4414_v9, %v4414_v9  ;;  %vm2694_vm8 = vcmp.lt.f32.partialorder %v4414_v9, 0.0 }
 0x1bf   : > { %v1935_v23 = vand.u32 2147483647, %v4416_v44  ;;  %v1005_v21 = vpop.f32.mrb[2].mxu1  ;;  %v1734_v56 = vpop.f32.mrb[2].mxu0  ;;  %v4428_v25 = vmul.f32 %v4416_v44, %v4416_v44  ;;  %vm2695_vm9 = vcmp.lt.f32.partialorder %v4416_v44, 0.0 }
 0x1c0   : > { %v1972_v28 = vmul.f32 0.5, %v1934_v3  ;;  %v4424_v30 = vadd.f32 %v1734_v56, %v1005_v21  ;;  %v1007_v33 = vpop.f32.mrb[3].mxu1  ;;  %v1736_v16 = vpop.f32.mrb[3].mxu0  ;;  %vm1896_vm2 = vcmp.gt.f32.partialorder %v4421_v13, 0.25 }
 0x1c1   : > { %v1973_v18 = vmul.f32 0.5, %v1935_v23  ;;  %v4430_v0 = vadd.f32 %v1736_v16, %v1007_v33  ;;  %vm1897_vm3 = vcmp.gt.f32.partialorder %v4428_v25, 0.25 }
 0x1c2   : > { %v2010_v46 = vsub.f32 0.5, %v1972_v28  ;;  %v4434_v19 = vmul.f32 %v4424_v30, %v4424_v30  ;;  %v1936_v35 = vand.u32 2147483647, %v4424_v30  ;;  %vm2696_vm10 = vcmp.lt.f32.partialorder %v4424_v30, 0.0 }
 0x1c3   : > { %v2011_v4 = vsub.f32 0.5, %v1973_v18  ;;  %v1937_v40 = vand.u32 2147483647, %v4430_v0  ;;  %v1013_v36 = vpop.f32.mrb[4].mxu1  ;;  %v1741_v49 = vpop.f32.mrb[4].mxu0  ;;  %v4443_v5 = vmul.f32 %v4430_v0, %v4430_v0  ;;  %vm2697_vm11 = vcmp.lt.f32.partialorder %v4430_v0, 0.0 }
 0x1c4   : > { %v4439_v54 = vmax.f32 %v2010_v46, 0.0  ;;  %v1974_v37 = vmul.f32 0.5, %v1936_v35  ;;  %v4445_v50 = vadd.f32 %v1741_v49, %v1013_v36  ;;  %v1015_v20 = vpop.f32.mrb[5].mxu1  ;;  %v1743_v6 = vpop.f32.mrb[5].mxu0  ;;  %vm1898_vm4 = vcmp.gt.f32.partialorder %v4434_v19, 0.25 }
 0x1c5   : > { %v4448_v48 = vmax.f32 %v2011_v4, 0.0  ;;  %v1975_v15 = vmul.f32 0.5, %v1937_v40  ;;  %v4450_v17 = vadd.f32 %v1743_v6, %v1015_v20  ;;  %vm1899_vm5 = vcmp.gt.f32.partialorder %v4443_v5, 0.25 }
 0x1c6   : > { %v2086_v14 = vadd.f32 1e-30, %v4439_v54  ;;  %v4457_v29 = vsel %vm1896_vm2, %v4439_v54, %v4421_v13  ;;  %v2012_v22 = vsub.f32 0.5, %v1974_v37  ;;  %v1938_v55 = vand.u32 2147483647, %v4445_v50 }
 0x1c7   : > { %v2276_v32 = vmul.f32 0.0421632, %v4457_v29  ;;  %v2087_v31 = vadd.f32 1e-30, %v4448_v48  ;;  %v4466_v12 = vsel %vm1897_vm3, %v4448_v48, %v4428_v25  ;;  %v2013_v34 = vsub.f32 0.5, %v1975_v15  ;;  %v1021_v45 = vpop.f32.mrb[6].mxu1 }
 0x1c8   : > { %3515 = vrsqrt.f32 %v2086_v14  ;;  %v2277_v10 = vmul.f32 0.0421632, %v4466_v12  ;;  %v4469_v47 = vmax.f32 %v2012_v22, 0.0  ;;  %v1748_v26 = vpop.f32.mrb[6].mxu0  ;;  %v1023_v42 = vpop.f32.mrb[7].mxu1  ;;  %v4484_v39 = vmul.f32 %v4445_v50, %v4445_v50 }
 0x1c9   : > { %v2314_v41 = vadd.f32 0.024181312, %v2276_v32  ;;  %3517 = vrsqrt.f32 %v2087_v31  ;;  %v4472_v43 = vmax.f32 %v2013_v34, 0.0  ;;  %v1750_v63 = vpop.f32.mrb[7].mxu0  ;;  %v1976_v2 = vmul.f32 0.5, %v1938_v55 }
 0x1ca   : > { %v2315_v1 = vadd.f32 0.024181312, %v2277_v10  ;;  %v2088_v38 = vadd.f32 1e-30, %v4469_v47  ;;  %v4480_v51 = vsel %vm1898_vm4, %v4469_v47, %v4434_v19  ;;  %v4507_v21 = vmul.f32 %v4450_v17, %v4450_v17 }
 0x1cb   : > { %v2352_v52 = vmul.f32 %v2314_v41, %v4457_v29  ;;  %v2278_v57 = vmul.f32 0.0421632, %v4480_v51  ;;  %v2089_v27 = vadd.f32 1e-30, %v4472_v43  ;;  %v4493_v58 = vsel %vm1899_vm5, %v4472_v43, %v4443_v5  ;;  %v4495_v59 = vpop.f32.mrb[8].mxu1  ;;  %v4497_v60 = vpop.f32.mrb[8].mxu0 }
 0x1cc   : > { %v2353_v61 = vmul.f32 %v2315_v1, %v4466_v12  ;;  %3519 = vrsqrt.f32 %v2088_v38  ;;  %v2279_v62 = vmul.f32 0.0421632, %v4493_v58  ;;  %v4501_v7 = vpop.f32.mrb[9].mxu1  ;;  %v4503_v53 = vpop.f32.mrb[9].mxu0  ;;  %v2014_v23 = vsub.f32 0.5, %v1976_v2 }
 0x1cd   : > { %v2390_v8 = vadd.f32 0.045470025, %v2352_v52  ;;  %v2316_v11 = vadd.f32 0.024181312, %v2278_v57  ;;  %3521 = vrsqrt.f32 %v2089_v27  ;;  %vm1900_vm6 = vcmp.gt.f32.partialorder %v4484_v39, 0.25 }
 0x1ce   : > { %v2391_v24 = vadd.f32 0.045470025, %v2353_v61  ;;  %v2317_v3 = vadd.f32 0.024181312, %v2279_v62  ;;  %v1939_v33 = vand.u32 2147483647, %v4450_v17  ;;  %v4521_v40 = vadd.f32 %v1748_v26, %v1021_v45 }
 0x1cf   : > { %v2428_v56 = vmul.f32 %v2390_v8, %v4457_v29  ;;  %v2354_v28 = vmul.f32 %v2316_v11, %v4480_v51  ;;  %v4513_v16 = vpop.f32.mrb[10].mxu1  ;;  %v4515_v18 = vpop.f32.mrb[10].mxu0  ;;  %v4519_v4 = vmax.f32 %v2014_v23, 0.0  ;;  %v4527_v15 = vadd.f32 %v1750_v63, %v1023_v42 }
 0x1d0   : > { %v2429_v46 = vmul.f32 %v2391_v24, %v4466_v12  ;;  %v2355_v35 = vmul.f32 %v2317_v3, %v4493_v58  ;;  %v4523_v36 = vpop.f32.mrb[11].mxu1  ;;  %v4525_v49 = vpop.f32.mrb[11].mxu0  ;;  %v1977_v6 = vmul.f32 0.5, %v1939_v33  ;;  %vm1901_vm7 = vcmp.gt.f32.partialorder %v4507_v21, 0.25 }
 0x1d1   : > { %v2466_v37 = vadd.f32 0.074953005, %v2428_v56  ;;  %v2392_v20 = vadd.f32 0.045470025, %v2354_v28  ;;  %v2090_v31 = vadd.f32 1e-30, %v4519_v4  ;;  %v4534_v34 = vsel %vm1900_vm6, %v4519_v4, %v4484_v39 }
 0x1d2   : > { %v3516_v14 = vpop.eup %3515  ;;  %v2467_v22 = vadd.f32 0.074953005, %v2429_v46  ;;  %v2393_v32 = vadd.f32 0.045470025, %v2355_v35  ;;  %v2280_v41 = vmul.f32 0.0421632, %v4534_v34 }
 0x1d3   : > { %v3518_v45 = vpop.eup %3517  ;;  %v2162_v10 = vmul.f32 %v3516_v14, %v4439_v54  ;;  %v2504_v26 = vmul.f32 %v2466_v37, %v4457_v29  ;;  %v2430_v42 = vmul.f32 %v2392_v20, %v4480_v51  ;;  %v4541_v55 = vpop.f32.mrb[12].mxu1  ;;  %3523 = vrsqrt.f32 %v2090_v31 }
 0x1d4   : > { %v4543_v63 = vpop.f32.mrb[12].mxu0  ;;  %v2163_v1 = vmul.f32 %v3518_v45, %v4448_v48  ;;  %v2505_v38 = vmul.f32 %v2467_v22, %v4466_v12  ;;  %v2431_v52 = vmul.f32 %v2393_v32, %v4493_v58  ;;  %v4548_v57 = vpop.f32.mrb[13].mxu1  ;;  %v2318_v62 = vadd.f32 0.024181312, %v2280_v41 }
 0x1d5   : > { %v4550_v54 = vpop.f32.mrb[13].mxu0  ;;  %v2542_v27 = vadd.f32 0.16666752, %v2504_v26  ;;  %v2468_v61 = vadd.f32 0.074953005, %v2430_v42  ;;  %v2238_v8 = vsel %vm1896_vm2, %v2162_v10, %v4414_v9  ;;  %v2015_v48 = vsub.f32 0.5, %v1977_v6 }
 0x1d6   : > { %v3520_v2 = vpop.eup %3519  ;;  %v2543_v11 = vadd.f32 0.16666752, %v2505_v38  ;;  %v2469_v24 = vadd.f32 0.074953005, %v2431_v52  ;;  %v2356_v33 = vmul.f32 %v2318_v62, %v4534_v34  ;;  %v2239_v37 = vsel %vm1897_vm3, %v2163_v1, %v4416_v44 }
 0x1d7   : > { %v3522_v3 = vpop.eup %3521  ;;  %v2580_v23 = vmul.f32 %v2542_v27, %v4457_v29  ;;  %v2164_v56 = vmul.f32 %v3520_v2, %v4469_v47  ;;  %v2506_v28 = vmul.f32 %v2468_v61, %v4480_v51  ;;  %v4559_v46 = vpop.f32.mrb[14].mxu1  ;;  %v4569_v6 = vmax.f32 %v2015_v48, 0.0 }
 0x1d8   : > { %v4561_v35 = vpop.f32.mrb[14].mxu0  ;;  %v2581_v20 = vmul.f32 %v2543_v11, %v4466_v12  ;;  %v2507_v29 = vmul.f32 %v2469_v24, %v4493_v58  ;;  %v4571_v47 = vpop.f32.mrb[15].mxu1  ;;  %v2165_v31 = vmul.f32 %v3522_v3, %v4472_v43  ;;  %v2394_v45 = vadd.f32 0.045470025, %v2356_v33 }
 0x1d9   : > { %v4573_v14 = vpop.f32.mrb[15].mxu0  ;;  %v2618_v22 = vmul.f32 %v2580_v23, %v2238_v8  ;;  %v2544_v32 = vadd.f32 0.16666752, %v2506_v28  ;;  %v2240_v12 = vsel %vm1898_vm4, %v2164_v56, %v4424_v30  ;;  %v2091_v42 = vadd.f32 1e-30, %v4569_v6 }
 0x1da   : > { %v2619_v10 = vmul.f32 %v2581_v20, %v2239_v37  ;;  %v2545_v26 = vadd.f32 0.16666752, %v2507_v29  ;;  %v2432_v38 = vmul.f32 %v2394_v45, %v4534_v34  ;;  %v4587_v52 = vsel %vm1901_vm7, %v4569_v6, %v4507_v21 }
 0x1db   : > { %v2656_v41 = vadd.f32 %v2618_v22, %v2238_v8  ;;  %v2582_v1 = vmul.f32 %v2544_v32, %v4480_v51  ;;  %v4589_v43 = vpop.f32.mrb[16].mxu1  ;;  %v4591_v27 = vpop.f32.mrb[16].mxu0  ;;  %3525 = vrsqrt.f32 %v2091_v42  ;;  %v2281_v2 = vmul.f32 0.0421632, %v4587_v52 }
 0x1dc   : > { %v2657_v61 = vadd.f32 %v2619_v10, %v2239_v37  ;;  %v2583_v62 = vmul.f32 %v2545_v26, %v4493_v58  ;;  %v4595_v8 = vpop.f32.mrb[17].mxu1  ;;  %v4597_v51 = vpop.f32.mrb[17].mxu0  ;;  %v2241_v48 = vsel %vm1899_vm5, %v2165_v31, %v4430_v0  ;;  %v2470_v3 = vadd.f32 0.074953005, %v2432_v38 }
 0x1dd   : > { %v2732_v11 = vmul.f32 2.0, %v2656_v41  ;;  %v2620_v24 = vmul.f32 %v2582_v1, %v2240_v12  ;;  %v3524_v23 = vpop.eup %3523  ;;  %v2319_v58 = vadd.f32 0.024181312, %v2281_v2  ;;  %v2846_v1 = vsub.f32 1.5707964, %v2656_v41 }
 0x1de   : > { %v2733_v56 = vmul.f32 2.0, %v2657_v61  ;;  %v2621_v28 = vmul.f32 %v2583_v62, %v2241_v48  ;;  %v2508_v20 = vmul.f32 %v2470_v3, %v4534_v34  ;;  %v2166_v31 = vmul.f32 %v3524_v23, %v4519_v4 }
 0x1df   : > { %v2770_v33 = vsub.f32 3.1415927, %v2732_v11  ;;  %v2658_v37 = vadd.f32 %v2620_v24, %v2240_v12  ;;  %v4605_v29 = vpop.f32.mrb[18].mxu1  ;;  %v4607_v22 = vpop.f32.mrb[18].mxu0  ;;  %v2357_v10 = vmul.f32 %v2319_v58, %v4587_v52  ;;  %v2847_v38 = vsub.f32 1.5707964, %v2657_v61 }
 0x1e0   : > { %v2771_v32 = vsub.f32 3.1415927, %v2733_v56  ;;  %v2659_v45 = vadd.f32 %v2621_v28, %v2241_v48  ;;  %v4611_v26 = vpop.f32.mrb[19].mxu1  ;;  %v4613_v42 = vpop.f32.mrb[19].mxu0  ;;  %v2546_v28 = vadd.f32 0.16666752, %v2508_v20  ;;  %v2242_v41 = vsel %vm1900_vm6, %v2166_v31, %v4445_v50 }
 0x1e1   : > { %5874 = vst [vmem:[#allocation6_spill] sm:$0xff] %v4613_v42  ;;  %v2808_v12 = vsel %vm2694_vm8, %v2770_v33, %v2732_v11  ;;  %v2734_v62 = vmul.f32 2.0, %v2658_v37  ;;  %v2848_v24 = vsub.f32 1.5707964, %v2658_v37  ;;  %v2395_v61 = vadd.f32 0.045470025, %v2357_v10 }
 0x1e2   : > { %v2809_v2 = vsel %vm2695_vm9, %v2771_v32, %v2733_v56  ;;  %v2735_v3 = vmul.f32 2.0, %v2659_v45  ;;  %v2849_v48 = vsub.f32 1.5707964, %v2659_v45  ;;  %v2884_v4 = vsel %vm1896_vm2, %v2808_v12, %v2846_v1 }
 0x1e3   : > { %v2772_v23 = vsub.f32 3.1415927, %v2734_v62  ;;  %v4621_v58 = vpop.f32.mrb[20].mxu1  ;;  %v4623_v42 = vpop.f32.mrb[20].mxu0  ;;  %v4630_v44 = vmul.f32 %v4521_v40, %v4521_v40  ;;  %v2885_v13 = vsel %vm1897_vm3, %v2809_v2, %v2847_v38  ;;  %v2584_v33 = vmul.f32 %v2546_v28, %v4534_v34 }
 0x1e4   : > { %v2773_v9 = vsub.f32 3.1415927, %v2735_v3  ;;  %v4632_v11 = vpop.f32.mrb[21].mxu1  ;;  %v1940_v37 = vand.u32 2147483647, %v4521_v40  ;;  %v4640_v20 = vpop.f32.mrb[21].mxu0  ;;  %v2922_v45 = vmul.f32 %v2884_v4, %v2884_v4  ;;  %v2433_v25 = vmul.f32 %v2395_v61, %v4587_v52 }
 0x1e5   : > { %v2810_v56 = vsel %vm2696_vm10, %v2772_v23, %v2734_v62  ;;  %v3526_v32 = vpop.eup %3525  ;;  %vm2698_vm12 = vcmp.lt.f32.partialorder %v4445_v50, 0.0  ;;  %v2622_v12 = vmul.f32 %v2584_v33, %v2242_v41  ;;  %v4652_v1 = vmul.f32 %v4527_v15, %v4527_v15 }
 0x1e6   : > { %v2886_v31 = vsel %vm1898_vm4, %v2810_v56, %v2848_v24  ;;  %v2811_v10 = vsel %vm2697_vm11, %v2773_v9, %v2735_v3  ;;  %v2923_v62 = vmul.f32 %v2885_v13, %v2885_v13  ;;  %v2471_v2 = vadd.f32 0.074953005, %v2433_v25 }
 0x1e7   : > { %v2924_v30 = vmul.f32 %v2886_v31, %v2886_v31  ;;  %v2887_v34 = vsel %vm1899_vm5, %v2811_v10, %v2849_v48  ;;  %v4654_v38 = vpop.f32.mrb[22].mxu1  ;;  %v4656_v19 = vpop.f32.mrb[22].mxu0  ;;  %v1978_v24 = vmul.f32 0.5, %v1940_v37  ;;  %v2660_v5 = vadd.f32 %v2622_v12, %v2242_v41 }
 0x1e8   : > { %v2925_v0 = vmul.f32 %v2887_v34, %v2887_v34  ;;  %v4658_v3 = vpop.f32.mrb[23].mxu1  ;;  %v4660_v4 = vpop.f32.mrb[23].mxu0  ;;  %v2167_v48 = vmul.f32 %v3526_v32, %v4569_v6  ;;  %v1941_v28 = vand.u32 2147483647, %v4527_v15  ;;  %v2509_v61 = vmul.f32 %v2471_v2, %v4587_v52 }
 0x1e9   : > { %5875 = vst [vmem:[#allocation7_spill] sm:$0xff] %v4660_v4  ;;  %v2961_v23 = vadd.f32 %v2924_v30, %v2922_v45  ;;  %vm1902_vm13 = vcmp.gt.f32.partialorder %v4630_v44, 0.25  ;;  %v2016_v13 = vsub.f32 0.5, %v1978_v24  ;;  %v2736_v56 = vmul.f32 2.0, %v2660_v5 }
 0x1ea   : > { %v4664_v9 = vadd.f32 %v2925_v0, %v2923_v62  ;;  %vm1903_vm14 = vcmp.gt.f32.partialorder %v4652_v1, 0.25  ;;  %v1979_v33 = vmul.f32 0.5, %v1941_v28  ;;  %v4671_v37 = vadd.f32 %v4497_v60, %v4495_v59 }
 0x1eb   : > { %v4673_v41 = vpop.f32.mrb[24].mxu1  ;;  %v4675_v6 = vpop.f32.mrb[24].mxu0  ;;  %v2547_v32 = vadd.f32 0.16666752, %v2509_v61  ;;  %v4677_v45 = vmax.f32 %v2016_v13, 0.0  ;;  %v4681_v31 = vadd.f32 %v4503_v53, %v4501_v7  ;;  %v4685_v10 = vadd.f32 %v4515_v18, %v4513_v16 }
 0x1ec   : > { %5876 = vst [vmem:[#allocation8_spill] sm:$0xff] %v4673_v41  ;;  %5877 = vst [vmem:[#allocation9_spill] sm:$0xff] %v4675_v6  ;;  %v4687_v25 = vpop.f32.mrb[25].mxu1  ;;  %v4689_v30 = vpop.f32.mrb[25].mxu0  ;;  %v2774_v59 = vsub.f32 3.1415927, %v2736_v56  ;;  %v2243_v60 = vsel %vm1901_vm7, %v2167_v48, %v4450_v17  ;;  %v4710_v24 = vmul.f32 %v4671_v37, %v4671_v37 }
 0x1ed   : > { %5878 = vst [vmem:[#allocation10_spill] sm:$0xff] %v4687_v25  ;;  %5879 = vst [vmem:[#allocation11_spill] sm:$0xff] %v4689_v30  ;;  %v2017_v34 = vsub.f32 0.5, %v1979_v33  ;;  %v1942_v12 = vand.u32 2147483647, %v4671_v37  ;;  %v2585_v7 = vmul.f32 %v2547_v32, %v4587_v52  ;;  %v4701_v16 = vsel %vm1902_vm13, %v4677_v45, %v4630_v44 }
 0x1ee   : > { %v2850_v62 = vsub.f32 1.5707964, %v2660_v5  ;;  %v2092_v53 = vadd.f32 1e-30, %v4677_v45  ;;  %v2812_v18 = vsel %vm2698_vm12, %v2774_v59, %v2736_v56  ;;  %v2282_v0 = vmul.f32 0.0421632, %v4701_v16 }
 0x1ef   : > { %v4706_v2 = vmax.f32 %v2017_v34, 0.0  ;;  %v2623_v5 = vmul.f32 %v2585_v7, %v2243_v60  ;;  %v1980_v48 = vmul.f32 0.5, %v1942_v12  ;;  %v4724_v39 = vmul.f32 %v4681_v31, %v4681_v31  ;;  %v4732_v7 = vpop.f32.mrb[26].mxu0 }
 0x1f0   : > { %v2888_v52 = vsel %vm1900_vm6, %v2812_v18, %v2850_v62  ;;  %3527 = vrsqrt.f32 %v2092_v53  ;;  %v2320_v61 = vadd.f32 0.024181312, %v2282_v0  ;;  %v1943_v12 = vand.u32 2147483647, %v4681_v31  ;;  %v4730_v62 = vpop.f32.mrb[26].mxu1  ;;  %5881 = vst [vmem:[#allocation13_spill] sm:$0xff] %v4732_v7 }
 0x1f1   : > { %v2926_v28 = vmul.f32 %v2888_v52, %v2888_v52  ;;  %v2093_v13 = vadd.f32 1e-30, %v4706_v2  ;;  %v4719_v50 = vsel %vm1903_vm14, %v4706_v2, %v4652_v1  ;;  %v2661_v56 = vadd.f32 %v2623_v5, %v2243_v60  ;;  %5880 = vst [vmem:[#allocation12_spill] sm:$0xff] %v4730_v62 }
 0x1f2   : > { %v2283_v33 = vmul.f32 0.0421632, %v4719_v50  ;;  %v2018_v32 = vsub.f32 0.5, %v1980_v48  ;;  %v2358_v34 = vmul.f32 %v2320_v61, %v4701_v16  ;;  %vm2699_vm15 = vcmp.lt.f32.partialorder %v4450_v17, 0.0 }
 0x1f3   : > { %v4726_v59 = vadd.f32 %v2961_v23, %v2926_v28  ;;  %3529 = vrsqrt.f32 %v2093_v13  ;;  %v2737_v60 = vmul.f32 2.0, %v2661_v56  ;;  %v2851_v0 = vsub.f32 1.5707964, %v2661_v56 }
 0x1f4   : > { %v2321_v53 = vadd.f32 0.024181312, %v2283_v33  ;;  %v4735_v18 = vmax.f32 %v2018_v32, 0.0  ;;  %v2396_v52 = vadd.f32 0.045470025, %v2358_v34  ;;  %vm1904_vm0 = vcmp.gt.f32.partialorder %v4710_v24, 0.25 }
 0x1f5   : > { %v1981_v23 = vmul.f32 0.5, %v1943_v12  ;;  %v2775_v5 = vsub.f32 3.1415927, %v2737_v60  ;;  %vm1905_vm1 = vcmp.gt.f32.partialorder %v4724_v39, 0.25  ;;  %v1944_v12 = vand.u32 2147483647, %v4685_v10 }
 0x1f6   : > { %v2359_v48 = vmul.f32 %v2321_v53, %v4719_v50  ;;  %v2094_v28 = vadd.f32 1e-30, %v4735_v18  ;;  %v4744_v61 = vsel %vm1904_vm0, %v4735_v18, %v4710_v24  ;;  %v2434_v13 = vmul.f32 %v2396_v52, %v4701_v16 }
 0x1f7   : > { %v2284_v33 = vmul.f32 0.0421632, %v4744_v61  ;;  %v2019_v56 = vsub.f32 0.5, %v1981_v23  ;;  %v2813_v32 = vsel %vm2699_vm15, %v2775_v5, %v2737_v60  ;;  %v4759_v23 = vmul.f32 %v4685_v10, %v4685_v10 }
 0x1f8   : > { %v2397_v34 = vadd.f32 0.045470025, %v2359_v48  ;;  %3531 = vrsqrt.f32 %v2094_v28  ;;  %v2889_v53 = vsel %vm1901_vm7, %v2813_v32, %v2851_v0  ;;  %v2472_v7 = vadd.f32 0.074953005, %v2434_v13  ;;  %v4765_v48 = vpop.f32.mrb[27].mxu1  ;;  %v4767_v28 = vpop.f32.mrb[27].mxu0 }
 0x1f9   : > { %v2322_v62 = vadd.f32 0.024181312, %v2284_v33  ;;  %v4754_v30 = vmax.f32 %v2019_v56, 0.0  ;;  %v2927_v25 = vmul.f32 %v2889_v53, %v2889_v53  ;;  %v1982_v17 = vmul.f32 0.5, %v1944_v12  ;;  %5882 = vst [vmem:[#allocation14_spill] sm:$0xff] %v4765_v48  ;;  %5883 = vst [vmem:[#allocation15_spill] sm:$0xff] %v4767_v28 }
 0x1fa   : > { %v3528_v52 = vpop.eup %3527  ;;  %v2435_v6 = vmul.f32 %v2397_v34, %v4719_v50  ;;  %v2510_v5 = vmul.f32 %v2472_v7, %v4701_v16  ;;  %vm1906_vm2 = vcmp.gt.f32.partialorder %v4759_v23, 0.25  ;;  %vm2700_vm3 = vcmp.lt.f32.partialorder %v4521_v40, 0.0 }
 0x1fb   : > { %v2168_v60 = vmul.f32 %v3528_v52, %v4677_v45  ;;  %v2360_v21 = vmul.f32 %v2322_v62, %v4744_v61  ;;  %v2095_v0 = vadd.f32 1e-30, %v4754_v30  ;;  %v4770_v13 = vadd.f32 %v4664_v9, %v2927_v25 }
 0x1fc   : > { %v2473_v33 = vadd.f32 0.074953005, %v2435_v6  ;;  %v4776_v56 = vsel %vm1905_vm1, %v4754_v30, %v4724_v39  ;;  %v2020_v45 = vsub.f32 0.5, %v1982_v17  ;;  %v2548_v32 = vadd.f32 0.16666752, %v2510_v5 }
 0x1fd   : > { %v3530_v7 = vpop.eup %3529  ;;  %v2398_v62 = vadd.f32 0.045470025, %v2360_v21  ;;  %3533 = vrsqrt.f32 %v2095_v0  ;;  %v2285_v53 = vmul.f32 0.0421632, %v4776_v56  ;;  %v4788_v52 = vadd.f32 %v4525_v49, %v4523_v36 }
 0x1fe   : > { %v2169_v34 = vmul.f32 %v3530_v7, %v4706_v2  ;;  %v2511_v12 = vmul.f32 %v2473_v33, %v4719_v50  ;;  %v4781_v9 = vmax.f32 %v2020_v45, 0.0  ;;  %v2586_v6 = vmul.f32 %v2548_v32, %v4701_v16  ;;  %v4807_v32 = vpop.f32.mrb[28].mxu1 }
 0x1ff   : > { %v2436_v25 = vmul.f32 %v2398_v62, %v4744_v61  ;;  %v2244_v2 = vsel %vm1902_vm13, %v2168_v60, %v4521_v40  ;;  %v2323_v5 = vadd.f32 0.024181312, %v2285_v53  ;;  %5884 = vst [vmem:[#allocation16_spill] sm:$0xff] %v4807_v32  ;;  %v4809_v62 = vpop.f32.mrb[28].mxu0  ;;  %vm2701_vm4 = vcmp.lt.f32.partialorder %v4527_v15, 0.0 }
 0x200   : > { %v2549_v17 = vadd.f32 0.16666752, %v2511_v12  ;;  %v2096_v21 = vadd.f32 1e-30, %v4781_v9  ;;  %v2624_v0 = vmul.f32 %v2586_v6, %v2244_v2  ;;  %v4799_v33 = vsel %vm1906_vm2, %v4781_v9, %v4759_v23  ;;  %5885 = vst [vmem:[#allocation17_spill] sm:$0xff] %v4809_v62 }
 0x201   : > { %v2474_v16 = vadd.f32 0.074953005, %v2436_v25  ;;  %v2245_v49 = vsel %vm1903_vm14, %v2169_v34, %v4527_v15  ;;  %v2361_v45 = vmul.f32 %v2323_v5, %v4776_v56  ;;  %v2286_v7 = vmul.f32 0.0421632, %v4799_v33 }
 0x202   : > { %v3532_v36 = vpop.eup %3531  ;;  %v2587_v60 = vmul.f32 %v2549_v17, %v4719_v50  ;;  %v2662_v12 = vadd.f32 %v2624_v0, %v2244_v2  ;;  %3535 = vrsqrt.f32 %v2096_v21  ;;  %v1945_v34 = vand.u32 2147483647, %v4788_v52 }
 0x203   : > { %v2170_v53 = vmul.f32 %v3532_v36, %v4735_v18  ;;  %v2512_v6 = vmul.f32 %v2474_v16, %v4744_v61  ;;  %v2399_v28 = vadd.f32 0.045470025, %v2361_v45  ;;  %v2324_v48 = vadd.f32 0.024181312, %v2286_v7  ;;  %v4826_v7 = vpop.f32.mrb[29].mxu1 }
 0x204   : > { %v2625_v25 = vmul.f32 %v2587_v60, %v2245_v49  ;;  %v2738_v50 = vmul.f32 2.0, %v2662_v12  ;;  %v4817_v5 = vmul.f32 %v4788_v52, %v4788_v52  ;;  %v1983_v0 = vmul.f32 0.5, %v1945_v34  ;;  %5886 = vst [vmem:[#allocation18_spill] sm:$0xff] %v4826_v7 }
 0x205   : > { %v2550_v17 = vadd.f32 0.16666752, %v2512_v6  ;;  %v2437_v2 = vmul.f32 %v2399_v28, %v4776_v56  ;;  %v2362_v18 = vmul.f32 %v2324_v48, %v4799_v33  ;;  %v2852_v36 = vsub.f32 1.5707964, %v2662_v12  ;;  %v4828_v6 = vpop.f32.mrb[29].mxu0 }
 0x206   : > { %v2663_v62 = vadd.f32 %v2625_v25, %v2245_v49  ;;  %v2776_v16 = vsub.f32 3.1415927, %v2738_v50  ;;  %v4824_v45 = vadd.f32 %v4543_v63, %v4541_v55  ;;  %5887 = vst [vmem:[#allocation19_spill] sm:$0xff] %v4828_v6  ;;  %v2246_v28 = vsel %vm1904_vm0, %v2170_v53, %v4671_v37 }
 0x207   : > { %v3534_v21 = vpop.eup %3533  ;;  %v2588_v60 = vmul.f32 %v2550_v17, %v4744_v61  ;;  %vm2702_vm5 = vcmp.lt.f32.partialorder %v4671_v37, 0.0  ;;  %v2475_v49 = vadd.f32 0.074953005, %v2437_v2  ;;  %v2400_v55 = vadd.f32 0.045470025, %v2362_v18 }
 0x208   : > { %v2739_v32 = vmul.f32 2.0, %v2663_v62  ;;  %v2171_v48 = vmul.f32 %v3534_v21, %v4754_v30  ;;  %v2814_v61 = vsel %vm2700_vm3, %v2776_v16, %v2738_v50  ;;  %v2021_v63 = vsub.f32 0.5, %v1983_v0 }
 0x209   : > { %v2626_v12 = vmul.f32 %v2588_v60, %v2246_v28  ;;  %v2890_v25 = vsel %vm1902_vm13, %v2814_v61, %v2852_v36  ;;  %v2853_v17 = vsub.f32 1.5707964, %v2663_v62  ;;  %v2513_v6 = vmul.f32 %v2475_v49, %v4776_v56 }
 0x20a   : > { %v2777_v34 = vsub.f32 3.1415927, %v2739_v32  ;;  %v2928_v7 = vmul.f32 %v2890_v25, %v2890_v25  ;;  %v2438_v41 = vmul.f32 %v2400_v55, %v4799_v33  ;;  %v4841_v4 = vmax.f32 %v2021_v63, 0.0 }
 0x20b   : > { %v2664_v53 = vadd.f32 %v2626_v12, %v2246_v28  ;;  %v2247_v30 = vsel %vm1905_vm1, %v2171_v48, %v4681_v31  ;;  %v2551_v50 = vadd.f32 0.16666752, %v2513_v6  ;;  %vm1907_vm6 = vcmp.gt.f32.partialorder %v4817_v5, 0.25 }
 0x20c   : > { %v2815_v40 = vsel %vm2701_vm4, %v2777_v34, %v2739_v32  ;;  %v3536_v44 = vpop.eup %3535  ;;  %v2963_v62 = vadd.f32 %v4726_v59, %v2928_v7  ;;  %v1946_v0 = vand.u32 2147483647, %v4824_v45  ;;  %v2476_v32 = vadd.f32 0.074953005, %v2438_v41 }
 0x20d   : > { %v2891_v2 = vsel %vm1903_vm14, %v2815_v40, %v2853_v17  ;;  %v2740_v18 = vmul.f32 2.0, %v2664_v53  ;;  %v2589_v15 = vmul.f32 %v2551_v50, %v4776_v56  ;;  %v4856_v16 = vmul.f32 %v4824_v45, %v4824_v45  ;;  %v4888_v40 = vpop.f32.mrb[30].mxu0 }
 0x20e   : > { %v2929_v21 = vmul.f32 %v2891_v2, %v2891_v2  ;;  %v2854_v60 = vsub.f32 1.5707964, %v2664_v53  ;;  %v2097_v6 = vadd.f32 1e-30, %v4841_v4  ;;  %v4863_v1 = vsel %vm1907_vm6, %v4841_v4, %v4817_v5  ;;  %v4886_v53 = vpop.f32.mrb[30].mxu1 }
 0x20f   : > { %v2778_v36 = vsub.f32 3.1415927, %v2740_v18  ;;  %v2627_v7 = vmul.f32 %v2589_v15, %v2247_v30  ;;  %v2172_v56 = vmul.f32 %v3536_v44, %v4781_v9  ;;  %v2514_v41 = vmul.f32 %v2476_v32, %v4799_v33 }
 0x210   : > { %v2987_v59 = vadd.f32 %v4770_v13, %v2929_v21  ;;  %3537 = vrsqrt.f32 %v2097_v6  ;;  %v2287_v48 = vmul.f32 0.0421632, %v4863_v1  ;;  %v1984_v49 = vmul.f32 0.5, %v1946_v0  ;;  %v4906_v0 = vpop.f32.mrb[31].mxu1 }
 0x211   : > { %v2816_v28 = vsel %vm2702_vm5, %v2778_v36, %v2740_v18  ;;  %v2665_v12 = vadd.f32 %v2627_v7, %v2247_v30  ;;  %v2552_v55 = vadd.f32 0.16666752, %v2514_v41  ;;  %vm1908_vm7 = vcmp.gt.f32.partialorder %v4856_v16, 0.25 }
 0x212   : > { %v2892_v61 = vsel %vm1904_vm0, %v2816_v28, %v2854_v60  ;;  %v2325_v63 = vadd.f32 0.024181312, %v2287_v48  ;;  %v2022_v25 = vsub.f32 0.5, %v1984_v49  ;;  %v4876_v9 = vadd.f32 %v4550_v54, %v4548_v57  ;;  %v4909_v60 = vpop.f32.mrb[31].mxu0 }
 0x213   : > { %v2930_v13 = vmul.f32 %v2892_v61, %v2892_v61  ;;  %v2741_v37 = vmul.f32 2.0, %v2665_v12  ;;  %v2248_v34 = vsel %vm1906_vm2, %v2172_v56, %v4685_v10  ;;  %v2590_v17 = vmul.f32 %v2552_v55, %v4799_v33 }
 0x214   : > { %v4884_v24 = vadd.f32 %v4561_v35, %v4559_v46  ;;  %v2855_v50 = vsub.f32 1.5707964, %v2665_v12  ;;  %v2363_v57 = vmul.f32 %v2325_v63, %v4863_v1  ;;  %v4891_v54 = vmax.f32 %v2022_v25, 0.0 }
 0x215   : > { %v2964_v30 = vadd.f32 %v2963_v62, %v2930_v13  ;;  %v2779_v44 = vsub.f32 3.1415927, %v2741_v37  ;;  %v2628_v2 = vmul.f32 %v2590_v17, %v2248_v34  ;;  %v4895_v18 = vmul.f32 %v4876_v9, %v4876_v9 }
 0x216   : > { %v1947_v33 = vand.u32 2147483647, %v4876_v9  ;;  %vm2703_vm8 = vcmp.lt.f32.partialorder %v4681_v31, 0.0  ;;  %v2401_v46 = vadd.f32 0.045470025, %v2363_v57  ;;  %v4904_v62 = vsel %vm1908_vm7, %v4891_v54, %v4856_v16 }
 0x217   : > { %v2098_v35 = vadd.f32 1e-30, %v4891_v54  ;;  %v2817_v21 = vsel %vm2703_vm8, %v2779_v44, %v2741_v37  ;;  %v2666_v15 = vadd.f32 %v2628_v2, %v2248_v34  ;;  %v2288_v32 = vmul.f32 0.0421632, %v4904_v62 }
 0x218   : > { %v1985_v36 = vmul.f32 0.5, %v1947_v33  ;;  %v2893_v31 = vsel %vm1905_vm1, %v2817_v21, %v2855_v50  ;;  %vm2704_vm9 = vcmp.lt.f32.partialorder %v4685_v10, 0.0  ;;  %v2439_v6 = vmul.f32 %v2401_v46, %v4863_v1 }
 0x219   : > { %3539 = vrsqrt.f32 %v2098_v35  ;;  %v2931_v7 = vmul.f32 %v2893_v31, %v2893_v31  ;;  %v2742_v56 = vmul.f32 2.0, %v2666_v15  ;;  %v2326_v41 = vadd.f32 0.024181312, %v2288_v32 }
 0x21a   : > { %vm1909_vm10 = vcmp.gt.f32.partialorder %v4895_v18, 0.25  ;;  %v3538_v28 = vpop.eup %3537  ;;  %v2477_v48 = vadd.f32 0.074953005, %v2439_v6  ;;  %v2023_v49 = vsub.f32 0.5, %v1985_v36  ;;  %v4918_v61 = vmul.f32 %v4884_v24, %v4884_v24 }
 0x21b   : > { %v1948_v39 = vand.u32 2147483647, %v4884_v24  ;;  %v4921_v12 = vadd.f32 %v2987_v59, %v2931_v7  ;;  %v2780_v55 = vsub.f32 3.1415927, %v2742_v56  ;;  %v2173_v13 = vmul.f32 %v3538_v28, %v4841_v4  ;;  %v4962_v28 = vpop.f32.mrb[32].mxu0 }
 0x21c   : > { %v2364_v63 = vmul.f32 %v2326_v41, %v4904_v62  ;;  %v2856_v25 = vsub.f32 1.5707964, %v2666_v15  ;;  %v2515_v37 = vmul.f32 %v2477_v48, %v4863_v1  ;;  %v4926_v34 = vmax.f32 %v2023_v49, 0.0  ;;  %v4960_v41 = vpop.f32.mrb[32].mxu1 }
 0x21d   : > { %v1986_v17 = vmul.f32 0.5, %v1948_v39  ;;  %v2818_v50 = vsel %vm2704_vm9, %v2780_v55, %v2742_v56  ;;  %v2249_v57 = vsel %vm1907_vm6, %v2173_v13, %v4788_v52  ;;  %v4935_v44 = vadd.f32 %v4573_v14, %v4571_v47 }
 0x21e   : > { %v2402_v59 = vadd.f32 0.045470025, %v2364_v63  ;;  %v2894_v4 = vsel %vm1906_vm2, %v2818_v50, %v2856_v25  ;;  %v2553_v2 = vadd.f32 0.16666752, %v2515_v37  ;;  %v2099_v33 = vadd.f32 1e-30, %v4926_v34 }
 0x21f   : > { %v4944_v10 = vsel %vm1909_vm10, %v4926_v34, %v4895_v18  ;;  %v2932_v46 = vmul.f32 %v2894_v4, %v2894_v4  ;;  %v2024_v15 = vsub.f32 0.5, %v1986_v17  ;;  %v4951_v14 = vmul.f32 %v4935_v44, %v4935_v44 }
 0x220   : > { %v2440_v35 = vmul.f32 %v2402_v59, %v4904_v62  ;;  %v2289_v21 = vmul.f32 0.0421632, %v4944_v10  ;;  %v2591_v47 = vmul.f32 %v2553_v2, %v4863_v1  ;;  %3541 = vrsqrt.f32 %v2099_v33 }
 0x221   : > { %v1949_v23 = vand.u32 2147483647, %v4935_v44  ;;  %v4954_v32 = vadd.f32 %v2964_v30, %v2932_v46  ;;  %v4956_v6 = vmax.f32 %v2024_v15, 0.0  ;;  %vm2705_vm11 = vcmp.lt.f32.partialorder %v4788_v52, 0.0 }
 0x222   : > { %v2478_v36 = vadd.f32 0.074953005, %v2440_v35  ;;  %v2327_v31 = vadd.f32 0.024181312, %v2289_v21  ;;  %v2629_v56 = vmul.f32 %v2591_v47, %v2249_v57  ;;  %vm1910_vm12 = vcmp.gt.f32.partialorder %v4918_v61, 0.25 }
 0x223   : > { %v3540_v7 = vpop.eup %3539  ;;  %v1987_v1 = vmul.f32 0.5, %v1949_v23  ;;  %v2100_v39 = vadd.f32 1e-30, %v4956_v6  ;;  %v4972_v13 = vsel %vm1910_vm12, %v4956_v6, %v4918_v61  ;;  %v4976_v25 = vadd.f32 %v4591_v27, %v4589_v43 }
 0x224   : > { %v2174_v48 = vmul.f32 %v3540_v7, %v4891_v54  ;;  %v2516_v30 = vmul.f32 %v2478_v36, %v4904_v62  ;;  %v2365_v49 = vmul.f32 %v2327_v31, %v4944_v10  ;;  %v2667_v55 = vadd.f32 %v2629_v56, %v2249_v57  ;;  %v5000_v36 = vpop.f32.mrb[33].mxu1 }
 0x225   : > { %v2025_v63 = vsub.f32 0.5, %v1987_v1  ;;  %3543 = vrsqrt.f32 %v2100_v39  ;;  %vm1911_vm13 = vcmp.gt.f32.partialorder %v4951_v14, 0.25  ;;  %v2290_v57 = vmul.f32 0.0421632, %v4972_v13 }
 0x226   : > { %v2554_v37 = vadd.f32 0.16666752, %v2516_v30  ;;  %v2403_v54 = vadd.f32 0.045470025, %v2365_v49  ;;  %v2743_v17 = vmul.f32 2.0, %v2667_v55  ;;  %v2250_v50 = vsel %vm1908_vm7, %v2174_v48, %v4824_v45  ;;  %v5005_v48 = vpop.f32.mrb[33].mxu0 }
 0x227   : > { %v4983_v59 = vmax.f32 %v2025_v63, 0.0  ;;  %v2857_v4 = vsub.f32 1.5707964, %v2667_v55  ;;  %v1950_v27 = vand.u32 2147483647, %v4976_v25  ;;  %vm2706_vm14 = vcmp.lt.f32.partialorder %v4824_v45, 0.0 }
 0x228   : > { %v2592_v2 = vmul.f32 %v2554_v37, %v4904_v62  ;;  %v2441_v43 = vmul.f32 %v2403_v54, %v4944_v10  ;;  %v2781_v33 = vsub.f32 3.1415927, %v2743_v17  ;;  %v2328_v46 = vadd.f32 0.024181312, %v2290_v57 }
 0x229   : > { %v2101_v35 = vadd.f32 1e-30, %v4983_v59  ;;  %v4993_v21 = vsel %vm1911_vm13, %v4983_v59, %v4951_v14  ;;  %v4998_v62 = vmul.f32 %v4976_v25, %v4976_v25  ;;  %v1988_v1 = vmul.f32 0.5, %v1950_v27 }
 0x22a   : > { %v2630_v15 = vmul.f32 %v2592_v2, %v2250_v50  ;;  %v2479_v47 = vadd.f32 0.074953005, %v2441_v43  ;;  %v2291_v23 = vmul.f32 0.0421632, %v4993_v21  ;;  %v3542_v31 = vpop.eup %3541  ;;  %v2819_v7 = vsel %vm2705_vm11, %v2781_v33, %v2743_v17 }
 0x22b   : > { %v2366_v56 = vmul.f32 %v2328_v46, %v4972_v13  ;;  %3545 = vrsqrt.f32 %v2101_v35  ;;  %v2895_v30 = vsel %vm1907_vm6, %v2819_v7, %v2857_v4  ;;  %v2175_v39 = vmul.f32 %v3542_v31, %v4926_v34  ;;  %v5025_v35 = vpop.f32.mrb[34].mxu1 }
 0x22c   : > { %v2668_v49 = vadd.f32 %v2630_v15, %v2250_v50  ;;  %v2517_v55 = vmul.f32 %v2479_v47, %v4944_v10  ;;  %v2933_v63 = vmul.f32 %v2895_v30, %v2895_v30  ;;  %v2329_v54 = vadd.f32 0.024181312, %v2291_v23  ;;  %v5027_v15 = vpop.f32.mrb[34].mxu0 }
 0x22d   : > { %v2404_v37 = vadd.f32 0.045470025, %v2366_v56  ;;  %v2026_v57 = vsub.f32 0.5, %v1988_v1  ;;  %vm1912_vm15 = vcmp.gt.f32.partialorder %v4998_v62, 0.25  ;;  %v5023_v46 = vadd.f32 %v4597_v51, %v4595_v8 }
 0x22e   : > { %v2744_v52 = vmul.f32 2.0, %v2668_v49  ;;  %v2555_v17 = vadd.f32 0.16666752, %v2517_v55  ;;  %v5014_v2 = vadd.f32 %v4921_v12, %v2933_v63  ;;  %v2367_v50 = vmul.f32 %v2329_v54, %v4993_v21 }
 0x22f   : > { %v2442_v5 = vmul.f32 %v2404_v37, %v4972_v13  ;;  %v5018_v34 = vmax.f32 %v2026_v57, 0.0  ;;  %v3544_v4 = vpop.eup %3543  ;;  %v2858_v27 = vsub.f32 1.5707964, %v2668_v49  ;;  %v2251_v12 = vsel %vm1909_vm10, %v2175_v39, %v4876_v9 }
 0x230   : > { %v2782_v43 = vsub.f32 3.1415927, %v2744_v52  ;;  %v2593_v33 = vmul.f32 %v2555_v17, %v4944_v10  ;;  %v2405_v23 = vadd.f32 0.045470025, %v2367_v50  ;;  %v2176_v56 = vmul.f32 %v3544_v4, %v4956_v6 }
 0x231   : > { %v2480_v47 = vadd.f32 0.074953005, %v2442_v5  ;;  %v2102_v31 = vadd.f32 1e-30, %v5018_v34  ;;  %v5040_v8 = vsel %vm1912_vm15, %v5018_v34, %v4998_v62  ;;  %vm2707_vm0 = vcmp.lt.f32.partialorder %v4876_v9, 0.0 }
 0x232   : > { %v2820_v7 = vsel %vm2706_vm14, %v2782_v43, %v2744_v52  ;;  %v2631_v10 = vmul.f32 %v2593_v33, %v2251_v12  ;;  %v2443_v30 = vmul.f32 %v2405_v23, %v4993_v21  ;;  %v2292_v45 = vmul.f32 0.0421632, %v5040_v8 }
 0x233   : > { %v2896_v51 = vsel %vm1908_vm7, %v2820_v7, %v2858_v27  ;;  %v2518_v1 = vmul.f32 %v2480_v47, %v4972_v13  ;;  %3547 = vrsqrt.f32 %v2102_v31  ;;  %v2252_v57 = vsel %vm1910_vm12, %v2176_v56, %v4884_v24  ;;  %v5888_v27 = vld [vmem:[#allocation6_spill] sm:$0xff] }
 0x234   : > { %v2934_v49 = vmul.f32 %v2896_v51, %v2896_v51  ;;  %v2669_v39 = vadd.f32 %v2631_v10, %v2251_v12  ;;  %v2481_v63 = vadd.f32 0.074953005, %v2443_v30  ;;  %v2330_v5 = vadd.f32 0.024181312, %v2292_v45  ;;  %v5067_v12 = vpop.f32.mrb[35].mxu1 }
 0x235   : > { %v3546_v55 = vpop.eup %3545  ;;  %v2556_v6 = vadd.f32 0.16666752, %v2518_v1  ;;  %v1951_v50 = vand.u32 2147483647, %v5023_v46  ;;  %vm2708_vm1 = vcmp.lt.f32.partialorder %v4884_v24, 0.0  ;;  %v5065_v33 = vadd.f32 %v5888_v27, %v4611_v26 }
 0x236   : > { %v5049_v37 = vadd.f32 %v4954_v32, %v2934_v49  ;;  %v2745_v54 = vmul.f32 2.0, %v2669_v39  ;;  %v2859_v16 = vsub.f32 1.5707964, %v2669_v39  ;;  %v2519_v17 = vmul.f32 %v2481_v63, %v4993_v21 }
 0x237   : > { %v2594_v52 = vmul.f32 %v2556_v6, %v4972_v13  ;;  %v2177_v43 = vmul.f32 %v3546_v55, %v4983_v59  ;;  %v5061_v32 = vadd.f32 %v4607_v22, %v4605_v29  ;;  %v5069_v13 = vpop.f32.mrb[35].mxu0  ;;  %v2368_v31 = vmul.f32 %v2330_v5, %v5040_v8 }
 0x238   : > { %v2783_v4 = vsub.f32 3.1415927, %v2745_v54  ;;  %v2557_v23 = vadd.f32 0.16666752, %v2519_v17  ;;  %v1989_v7 = vmul.f32 0.5, %v1951_v50  ;;  %v5076_v29 = vmul.f32 %v5023_v46, %v5023_v46 }
 0x239   : > { %v2632_v47 = vmul.f32 %v2594_v52, %v2252_v57  ;;  %v5080_v22 = vmul.f32 %v5061_v32, %v5061_v32  ;;  %v1952_v26 = vand.u32 2147483647, %v5061_v32  ;;  %v2406_v1 = vadd.f32 0.045470025, %v2368_v31 }
 0x23a   : > { %v2821_v59 = vsel %vm2707_vm0, %v2783_v4, %v2745_v54  ;;  %v2595_v51 = vmul.f32 %v2557_v23, %v4993_v21  ;;  %v2253_v9 = vsel %vm1911_vm13, %v2177_v43, %v4935_v44  ;;  %v2027_v49 = vsub.f32 0.5, %v1989_v7 }
 0x23b   : > { %v2897_v10 = vsel %vm1909_vm10, %v2821_v59, %v2859_v16  ;;  %v2670_v56 = vadd.f32 %v2632_v47, %v2252_v57  ;;  %v1990_v39 = vmul.f32 0.5, %v1952_v26  ;;  %vm2709_vm2 = vcmp.lt.f32.partialorder %v4935_v44, 0.0 }
 0x23c   : > { %v2935_v30 = vmul.f32 %v2897_v10, %v2897_v10  ;;  %v2633_v55 = vmul.f32 %v2595_v51, %v2253_v9  ;;  %v2444_v6 = vmul.f32 %v2406_v1, %v5040_v8  ;;  %vm1913_vm3 = vcmp.gt.f32.partialorder %v5076_v29, 0.25 }
 0x23d   : > { %v2746_v45 = vmul.f32 2.0, %v2670_v56  ;;  %v3548_v63 = vpop.eup %3547  ;;  %v5093_v21 = vmax.f32 %v2027_v49, 0.0  ;;  %v2028_v54 = vsub.f32 0.5, %v1990_v39  ;;  %vm1914_vm4 = vcmp.gt.f32.partialorder %v5080_v22, 0.25 }
 0x23e   : > { %v2990_v18 = vadd.f32 %v5014_v2, %v2935_v30  ;;  %v2671_v57 = vadd.f32 %v2633_v55, %v2253_v9  ;;  %v2482_v52 = vadd.f32 0.074953005, %v2444_v6  ;;  %v2860_v17 = vsub.f32 1.5707964, %v2670_v56  ;;  %v5119_v56 = vpop.f32.mrb[36].mxu1 }
 0x23f   : > { %v2784_v16 = vsub.f32 3.1415927, %v2746_v45  ;;  %v2103_v5 = vadd.f32 1e-30, %v5093_v21  ;;  %v5101_v50 = vsel %vm1913_vm3, %v5093_v21, %v5076_v29  ;;  %v5103_v2 = vmax.f32 %v2028_v54, 0.0 }
 0x240   : > { %v2747_v43 = vmul.f32 2.0, %v2671_v57  ;;  %v2861_v27 = vsub.f32 1.5707964, %v2671_v57  ;;  %v2178_v47 = vmul.f32 %v3548_v63, %v5018_v34  ;;  %v2520_v31 = vmul.f32 %v2482_v52, %v5040_v8  ;;  %v5121_v34 = vpop.f32.mrb[36].mxu0 }
 0x241   : > { %v2822_v4 = vsel %vm2708_vm1, %v2784_v16, %v2746_v45  ;;  %3549 = vrsqrt.f32 %v2103_v5  ;;  %v2293_v7 = vmul.f32 0.0421632, %v5101_v50  ;;  %v2104_v10 = vadd.f32 1e-30, %v5103_v2  ;;  %v5134_v45 = vpop.f32.mrb[37].mxu1  ;;  %v5136_v55 = vpop.f32.mrb[37].mxu0 }
 0x242   : > { %v2898_v23 = vsel %vm1910_vm12, %v2822_v4, %v2860_v17  ;;  %v2785_v26 = vsub.f32 3.1415927, %v2747_v43  ;;  %v5117_v24 = vsel %vm1914_vm4, %v5103_v2, %v5080_v22  ;;  %v2558_v61 = vadd.f32 0.16666752, %v2520_v31 }
 0x243   : > { %v2936_v59 = vmul.f32 %v2898_v23, %v2898_v23  ;;  %v2331_v51 = vadd.f32 0.024181312, %v2293_v7  ;;  %v2294_v1 = vmul.f32 0.0421632, %v5117_v24  ;;  %v5126_v30 = vadd.f32 %v4623_v42, %v4621_v58 }
 0x244   : > { %v2823_v49 = vsel %vm2709_vm2, %v2785_v26, %v2747_v43  ;;  %3551 = vrsqrt.f32 %v2104_v10  ;;  %v1953_v39 = vand.u32 2147483647, %v5065_v33  ;;  %v2596_v63 = vmul.f32 %v2558_v61, %v5040_v8 }
 0x245   : > { %v5129_v9 = vadd.f32 %v5049_v37, %v2936_v59  ;;  %v2899_v6 = vsel %vm1911_vm13, %v2823_v49, %v2861_v27  ;;  %v2369_v42 = vmul.f32 %v2331_v51, %v5101_v50  ;;  %v2332_v58 = vadd.f32 0.024181312, %v2294_v1  ;;  %v5889_v59 = vld [vmem:[#allocation7_spill] sm:$0xff] }
 0x246   : > { %v2937_v37 = vmul.f32 %v2899_v6, %v2899_v6  ;;  %v2254_v44 = vsel %vm1912_vm15, %v2178_v47, %v4976_v25  ;;  %v5147_v54 = vmul.f32 %v5065_v33, %v5065_v33  ;;  %v1991_v16 = vmul.f32 0.5, %v1953_v39 }
 0x247   : > { %v2634_v57 = vmul.f32 %v2596_v63, %v2254_v44  ;;  %v2407_v52 = vadd.f32 0.045470025, %v2369_v42  ;;  %v2370_v14 = vmul.f32 %v2332_v58, %v5117_v24  ;;  %v1954_v17 = vand.u32 2147483647, %v5126_v30 }
 0x248   : > { %v5151_v8 = vadd.f32 %v2990_v18, %v2937_v37  ;;  %vm2710_vm5 = vcmp.lt.f32.partialorder %v4976_v25, 0.0  ;;  %v2029_v5 = vsub.f32 0.5, %v1991_v16  ;;  %v5156_v4 = vmul.f32 %v5126_v30, %v5126_v30 }
 0x249   : > { %v2672_v43 = vadd.f32 %v2634_v57, %v2254_v44  ;;  %v2445_v27 = vmul.f32 %v2407_v52, %v5101_v50  ;;  %v2408_v47 = vadd.f32 0.045470025, %v2370_v14  ;;  %v1992_v23 = vmul.f32 0.5, %v1954_v17 }
 0x24a   : > { %v5159_v31 = vmax.f32 %v2029_v5, 0.0  ;;  %v5163_v7 = vadd.f32 %v4640_v20, %v4632_v11  ;;  %v5167_v18 = vadd.f32 %v4656_v19, %v4654_v38  ;;  %v5171_v26 = vadd.f32 %v5889_v59, %v4658_v3 }
 0x24b   : > { %v3550_v10 = vpop.eup %3549  ;;  %v2748_v61 = vmul.f32 2.0, %v2672_v43  ;;  %v2483_v51 = vadd.f32 0.074953005, %v2445_v27  ;;  %v2446_v1 = vmul.f32 %v2408_v47, %v5117_v24  ;;  %vm1915_vm6 = vcmp.gt.f32.partialorder %v5147_v54, 0.25 }
 0x24c   : > { %v2179_v49 = vmul.f32 %v3550_v10, %v5093_v21  ;;  %v2105_v11 = vadd.f32 1e-30, %v5159_v31  ;;  %v5181_v20 = vsel %vm1915_vm6, %v5159_v31, %v5147_v54  ;;  %v2030_v38 = vsub.f32 0.5, %v1992_v23 }
 0x24d   : > { %v2786_v19 = vsub.f32 3.1415927, %v2748_v61  ;;  %v2521_v3 = vmul.f32 %v2483_v51, %v5101_v50  ;;  %v2484_v39 = vadd.f32 0.074953005, %v2446_v1  ;;  %v2295_v6 = vmul.f32 0.0421632, %v5181_v20 }
 0x24e   : > { %v3552_v63 = vpop.eup %3551  ;;  %v2862_v42 = vsub.f32 1.5707964, %v2672_v43  ;;  %3553 = vrsqrt.f32 %v2105_v11  ;;  %vm1916_vm7 = vcmp.gt.f32.partialorder %v5156_v4, 0.25  ;;  %v5186_v21 = vmax.f32 %v2030_v38, 0.0 }
 0x24f   : > { %v2824_v58 = vsel %vm2710_vm5, %v2786_v19, %v2748_v61  ;;  %v2559_v37 = vadd.f32 0.16666752, %v2521_v3  ;;  %v2180_v44 = vmul.f32 %v3552_v63, %v5103_v2  ;;  %v2522_v16 = vmul.f32 %v2484_v39, %v5117_v24 }
 0x250   : > { %v2900_v57 = vsel %vm1912_vm15, %v2824_v58, %v2862_v42  ;;  %v2333_v52 = vadd.f32 0.024181312, %v2295_v6  ;;  %v2106_v14 = vadd.f32 1e-30, %v5186_v21  ;;  %v5199_v17 = vsel %vm1916_vm7, %v5186_v21, %v5156_v4 }
 0x251   : > { %v2938_v5 = vmul.f32 %v2900_v57, %v2900_v57  ;;  %v2255_v25 = vsel %vm1913_vm3, %v2179_v49, %v5023_v46  ;;  %v2597_v2 = vmul.f32 %v2559_v37, %v5101_v50  ;;  %v2560_v43 = vadd.f32 0.16666752, %v2522_v16 }
 0x252   : > { %v2371_v62 = vmul.f32 %v2333_v52, %v5181_v20  ;;  %3555 = vrsqrt.f32 %v2106_v14  ;;  %v2296_v27 = vmul.f32 0.0421632, %v5199_v17  ;;  %v5209_v47 = vmul.f32 %v5163_v7, %v5163_v7 }
 0x253   : > { %v2968_v23 = vadd.f32 %v5129_v9, %v2938_v5  ;;  %v2635_v59 = vmul.f32 %v2597_v2, %v2255_v25  ;;  %v2598_v10 = vmul.f32 %v2560_v43, %v5117_v24  ;;  %v1955_v61 = vand.u32 2147483647, %v5163_v7 }
 0x254   : > { %v2256_v50 = vsel %vm1914_vm4, %v2180_v44, %v5061_v32  ;;  %v2409_v51 = vadd.f32 0.045470025, %v2371_v62  ;;  %v2334_v1 = vadd.f32 0.024181312, %v2296_v27  ;;  %v5219_v49 = vmul.f32 %v5167_v18, %v5167_v18 }
 0x255   : > { %v2673_v11 = vadd.f32 %v2635_v59, %v2255_v25  ;;  %v2636_v38 = vmul.f32 %v2598_v10, %v2256_v50  ;;  %v1993_v19 = vmul.f32 0.5, %v1955_v61  ;;  %v1956_v9 = vand.u32 2147483647, %v5167_v18 }
 0x256   : > { %vm2711_vm8 = vcmp.lt.f32.partialorder %v5023_v46, 0.0  ;;  %v2447_v24 = vmul.f32 %v2409_v51, %v5181_v20  ;;  %v2372_v3 = vmul.f32 %v2334_v1, %v5199_v17  ;;  %vm2712_vm9 = vcmp.lt.f32.partialorder %v5061_v32, 0.0 }
 0x257   : > { %v2749_v39 = vmul.f32 2.0, %v2673_v11  ;;  %v2674_v6 = vadd.f32 %v2636_v38, %v2256_v50  ;;  %v2031_v63 = vsub.f32 0.5, %v1993_v19  ;;  %vm1917_vm10 = vcmp.gt.f32.partialorder %v5209_v47, 0.25 }
 0x258   : > { %v3554_v42 = vpop.eup %3553  ;;  %v2485_v58 = vadd.f32 0.074953005, %v2447_v24  ;;  %v2410_v37 = vadd.f32 0.045470025, %v2372_v3  ;;  %v1994_v44 = vmul.f32 0.5, %v1956_v9  ;;  %vm1918_vm11 = vcmp.gt.f32.partialorder %v5219_v49, 0.25 }
 0x259   : > { %v2787_v16 = vsub.f32 3.1415927, %v2749_v39  ;;  %v2750_v57 = vmul.f32 2.0, %v2674_v6  ;;  %v2181_v52 = vmul.f32 %v3554_v42, %v5159_v31  ;;  %v2863_v14 = vsub.f32 1.5707964, %v2673_v11 }
 0x25a   : > { %v2523_v5 = vmul.f32 %v2485_v58, %v5181_v20  ;;  %v2448_v25 = vmul.f32 %v2410_v37, %v5199_v17  ;;  %v5231_v2 = vmax.f32 %v2031_v63, 0.0  ;;  %v2864_v27 = vsub.f32 1.5707964, %v2674_v6 }
 0x25b   : > { %v2825_v43 = vsel %vm2711_vm8, %v2787_v16, %v2749_v39  ;;  %v2788_v62 = vsub.f32 3.1415927, %v2750_v57  ;;  %v2032_v59 = vsub.f32 0.5, %v1994_v44  ;;  %v2257_v46 = vsel %vm1915_vm6, %v2181_v52, %v5065_v33  ;;  %v5890_v44 = vld [vmem:[#allocation8_spill] sm:$0xff] }
 0x25c   : > { %v3556_v10 = vpop.eup %3555  ;;  %v2901_v61 = vsel %vm1913_vm3, %v2825_v43, %v2863_v14  ;;  %v2561_v31 = vadd.f32 0.16666752, %v2523_v5  ;;  %v2486_v50 = vadd.f32 0.074953005, %v2448_v25  ;;  %v2107_v51 = vadd.f32 1e-30, %v5231_v2 }
 0x25d   : > { %v2939_v1 = vmul.f32 %v2901_v61, %v2901_v61  ;;  %v2826_v11 = vsel %vm2712_vm9, %v2788_v62, %v2750_v57  ;;  %v5247_v38 = vsel %vm1917_vm10, %v5231_v2, %v5209_v47  ;;  %vm2713_vm12 = vcmp.lt.f32.partialorder %v5065_v33, 0.0 }
 0x25e   : > { %v2902_v29 = vsel %vm1914_vm4, %v2826_v11, %v2864_v27  ;;  %v2599_v19 = vmul.f32 %v2561_v31, %v5181_v20  ;;  %v2524_v9 = vmul.f32 %v2486_v50, %v5199_v17  ;;  %3557 = vrsqrt.f32 %v2107_v51 }
 0x25f   : > { %v2992_v32 = vadd.f32 %v5151_v8, %v2939_v1  ;;  %v2940_v24 = vmul.f32 %v2902_v29, %v2902_v29  ;;  %v2182_v3 = vmul.f32 %v3556_v10, %v5186_v21  ;;  %v2297_v39 = vmul.f32 0.0421632, %v5247_v38  ;;  %v5891_v8 = vld [vmem:[#allocation9_spill] sm:$0xff]  ;;  %v5892_v29 = vld [vmem:[#allocation10_spill] sm:$0xff] }
 0x260   : > { %v2637_v6 = vmul.f32 %v2599_v19, %v2257_v46  ;;  %v2562_v63 = vadd.f32 0.16666752, %v2524_v9  ;;  %v2070_v42 = vmax.f32 %v2032_v59, 0.0  ;;  %v1957_v22 = vand.u32 2147483647, %v5171_v26  ;;  %v5893_v19 = vld [vmem:[#allocation11_spill] sm:$0xff] }
 0x261   : > { %v2969_v58 = vadd.f32 %v2968_v23, %v2940_v24  ;;  %v2335_v37 = vadd.f32 0.024181312, %v2297_v39  ;;  %v5260_v20 = vmul.f32 %v5171_v26, %v5171_v26  ;;  %v5264_v16 = vadd.f32 %v5891_v8, %v5890_v44 }
 0x262   : > { %v2675_v57 = vadd.f32 %v2637_v6, %v2257_v46  ;;  %v2600_v21 = vmul.f32 %v2562_v63, %v5199_v17  ;;  %v2108_v52 = vadd.f32 1e-30, %v2070_v42  ;;  %v5270_v14 = vsel %vm1918_vm11, %v2070_v42, %v5219_v49 }
 0x263   : > { %v2258_v23 = vsel %vm1916_vm7, %v2182_v3, %v5126_v30  ;;  %v2373_v5 = vmul.f32 %v2335_v37, %v5247_v38  ;;  %v2298_v25 = vmul.f32 0.0421632, %v5270_v14  ;;  %v1995_v43 = vmul.f32 0.5, %v1957_v22 }
 0x264   : > { %v2751_v62 = vmul.f32 2.0, %v2675_v57  ;;  %v2638_v27 = vmul.f32 %v2600_v21, %v2258_v23  ;;  %vm2714_vm13 = vcmp.lt.f32.partialorder %v5126_v30, 0.0  ;;  %3559 = vrsqrt.f32 %v2108_v52 }
 0x265   : > { %v2411_v17 = vadd.f32 0.045470025, %v2373_v5  ;;  %v2336_v59 = vadd.f32 0.024181312, %v2298_v25  ;;  %vm1919_vm14 = vcmp.gt.f32.partialorder %v5260_v20, 0.25  ;;  %v2033_v10 = vsub.f32 0.5, %v1995_v43 }
 0x266   : > { %v2789_v61 = vsub.f32 3.1415927, %v2751_v62  ;;  %v2865_v31 = vsub.f32 1.5707964, %v2675_v57  ;;  %v2676_v50 = vadd.f32 %v2638_v27, %v2258_v23  ;;  %v1958_v51 = vand.u32 2147483647, %v5264_v16 }
 0x267   : > { %v2449_v1 = vmul.f32 %v2411_v17, %v5247_v38  ;;  %v2374_v11 = vmul.f32 %v2336_v59, %v5270_v14  ;;  %v5282_v46 = vmax.f32 %v2033_v10, 0.0  ;;  %v5286_v9 = vadd.f32 %v5893_v19, %v5892_v29 }
 0x268   : > { %v3558_v24 = vpop.eup %3557  ;;  %v2827_v3 = vsel %vm2713_vm12, %v2789_v61, %v2751_v62  ;;  %v2752_v39 = vmul.f32 2.0, %v2676_v50  ;;  %v5292_v6 = vmul.f32 %v5264_v16, %v5264_v16  ;;  %v1996_v63 = vmul.f32 0.5, %v1958_v51 }
 0x269   : > { %v2903_v22 = vsel %vm1915_vm6, %v2827_v3, %v2865_v31  ;;  %v2866_v37 = vsub.f32 1.5707964, %v2676_v50  ;;  %v2487_v44 = vadd.f32 0.074953005, %v2449_v1  ;;  %v2412_v8 = vadd.f32 0.045470025, %v2374_v11 }
 0x26a   : > { %v2941_v57 = vmul.f32 %v2903_v22, %v2903_v22  ;;  %v2790_v21 = vsub.f32 3.1415927, %v2752_v39  ;;  %v2109_v52 = vadd.f32 1e-30, %v5282_v46  ;;  %v5301_v33 = vsel %vm1919_vm14, %v5282_v46, %v5260_v20 }
 0x26b   : > { %v2183_v23 = vmul.f32 %v3558_v24, %v5231_v2  ;;  %v2525_v5 = vmul.f32 %v2487_v44, %v5247_v38  ;;  %v2450_v54 = vmul.f32 %v2412_v8, %v5270_v14  ;;  %v2299_v25 = vmul.f32 0.0421632, %v5301_v33 }
 0x26c   : > { %v5307_v43 = vadd.f32 %v2992_v32, %v2941_v57  ;;  %v2828_v62 = vsel %vm2714_vm13, %v2790_v21, %v2752_v39  ;;  %3561 = vrsqrt.f32 %v2109_v52  ;;  %v2034_v27 = vsub.f32 0.5, %v1996_v63  ;;  %v5894_v57 = vld [vmem:[#allocation12_spill] sm:$0xff]  ;;  %v5895_v21 = vld [vmem:[#allocation13_spill] sm:$0xff] }
 0x26d   : > { %v2904_v17 = vsel %vm1916_vm7, %v2828_v62, %v2866_v37  ;;  %v2563_v59 = vadd.f32 0.16666752, %v2525_v5  ;;  %v2488_v10 = vadd.f32 0.074953005, %v2450_v54  ;;  %v2337_v61 = vadd.f32 0.024181312, %v2299_v25 }
 0x26e   : > { %v3560_v2 = vpop.eup %3559  ;;  %v2942_v31 = vmul.f32 %v2904_v17, %v2904_v17  ;;  %vm1920_vm15 = vcmp.gt.f32.partialorder %v5292_v6, 0.25  ;;  %v5314_v50 = vmax.f32 %v2034_v27, 0.0  ;;  %v1959_v32 = vand.u32 2147483647, %v5286_v9  ;;  %v5896_v54 = vld [vmem:[#allocation14_spill] sm:$0xff]  ;;  %v5897_v25 = vld [vmem:[#allocation15_spill] sm:$0xff] }
 0x26f   : > { %v2601_v51 = vmul.f32 %v2563_v59, %v5247_v38  ;;  %v2184_v30 = vmul.f32 %v3560_v2, %v2070_v42  ;;  %v2526_v1 = vmul.f32 %v2488_v10, %v5270_v14  ;;  %v2375_v11 = vmul.f32 %v2337_v61, %v5301_v33  ;;  %v5898_v27 = vld [vmem:[#allocation16_spill] sm:$0xff]  ;;  %v5899_v17 = vld [vmem:[#allocation17_spill] sm:$0xff] }
 0x270   : > { %v5320_v4 = vadd.f32 %v2969_v58, %v2942_v31  ;;  %v2259_v29 = vsel %vm1917_vm10, %v2183_v23, %v5163_v7  ;;  %vm2715_vm0 = vcmp.lt.f32.partialorder %v5163_v7, 0.0  ;;  %v2110_v19 = vadd.f32 1e-30, %v5314_v50 }
 0x271   : > { %v5331_v38 = vsel %vm1920_vm15, %v5314_v50, %v5292_v6  ;;  %v2639_v42 = vmul.f32 %v2601_v51, %v2259_v29  ;;  %v2564_v24 = vadd.f32 0.16666752, %v2526_v1  ;;  %v2413_v3 = vadd.f32 0.045470025, %v2375_v11 }
 0x272   : > { %v5335_v58 = vmul.f32 %v5286_v9, %v5286_v9  ;;  %v2260_v39 = vsel %vm1918_vm11, %v2184_v30, %v5167_v18  ;;  %3563 = vrsqrt.f32 %v2110_v19  ;;  %v2300_v63 = vmul.f32 0.0421632, %v5331_v38 }
 0x273   : > { %v1997_v22 = vmul.f32 0.5, %v1959_v32  ;;  %v2677_v37 = vadd.f32 %v2639_v42, %v2259_v29  ;;  %v2602_v44 = vmul.f32 %v2564_v24, %v5270_v14  ;;  %v2451_v8 = vmul.f32 %v2413_v3, %v5301_v33 }
 0x274   : > { %v5345_v52 = vadd.f32 %v5895_v21, %v5894_v57  ;;  %v2338_v23 = vadd.f32 0.024181312, %v2300_v63  ;;  %v5349_v62 = vadd.f32 %v5897_v25, %v5896_v54  ;;  %v5353_v59 = vadd.f32 %v5899_v17, %v5898_v27 }
 0x275   : > { %v2035_v5 = vsub.f32 0.5, %v1997_v22  ;;  %v2753_v10 = vmul.f32 2.0, %v2677_v37  ;;  %v2640_v61 = vmul.f32 %v2602_v44, %v2260_v39  ;;  %vm2716_vm1 = vcmp.lt.f32.partialorder %v5167_v18, 0.0 }
 0x276   : > { %v2489_v14 = vadd.f32 0.074953005, %v2451_v8  ;;  %v3562_v2 = vpop.eup %3561  ;;  %v2867_v31 = vsub.f32 1.5707964, %v2677_v37  ;;  %v2376_v32 = vmul.f32 %v2338_v23, %v5331_v38  ;;  %vm1921_vm2 = vcmp.gt.f32.partialorder %v5335_v58, 0.25 }
 0x277   : > { %v2073_v51 = vmax.f32 %v2035_v5, 0.0  ;;  %v2791_v30 = vsub.f32 3.1415927, %v2753_v10  ;;  %v2678_v1 = vadd.f32 %v2640_v61, %v2260_v39  ;;  %v1960_v29 = vand.u32 2147483647, %v5345_v52 }
 0x278   : > { %v2527_v11 = vmul.f32 %v2489_v14, %v5301_v33  ;;  %v2185_v19 = vmul.f32 %v3562_v2, %v5282_v46  ;;  %v2414_v42 = vadd.f32 0.045470025, %v2376_v32  ;;  %v5370_v39 = vmul.f32 %v5345_v52, %v5345_v52 }
 0x279   : > { %v2111_v24 = vadd.f32 1e-30, %v2073_v51  ;;  %v5364_v3 = vsel %vm1921_vm2, %v2073_v51, %v5335_v58  ;;  %v2829_v63 = vsel %vm2715_vm0, %v2791_v30, %v2753_v10  ;;  %v2754_v22 = vmul.f32 2.0, %v2678_v1 }
 0x27a   : > { %v2868_v37 = vsub.f32 1.5707964, %v2678_v1  ;;  %v2905_v44 = vsel %vm1917_vm10, %v2829_v63, %v2867_v31  ;;  %v2565_v46 = vadd.f32 0.16666752, %v2527_v11  ;;  %v2452_v8 = vmul.f32 %v2414_v42, %v5331_v38 }
 0x27b   : > { %3565 = vrsqrt.f32 %v2111_v24  ;;  %v2943_v57 = vmul.f32 %v2905_v44, %v2905_v44  ;;  %v2792_v21 = vsub.f32 3.1415927, %v2754_v22  ;;  %v2301_v23 = vmul.f32 0.0421632, %v5364_v3 }
 0x27c   : > { %v1998_v5 = vmul.f32 0.5, %v1960_v29  ;;  %v3564_v7 = vpop.eup %3563  ;;  %v2261_v54 = vsel %vm1919_vm14, %v2185_v19, %v5171_v26  ;;  %v2603_v25 = vmul.f32 %v2565_v46, %v5301_v33  ;;  %v2490_v27 = vadd.f32 0.074953005, %v2452_v8 }
 0x27d   : > { %v5382_v47 = vmul.f32 %v5349_v62, %v5349_v62  ;;  %v2994_v17 = vadd.f32 %v5307_v43, %v2943_v57  ;;  %v2830_v10 = vsel %vm2716_vm1, %v2792_v21, %v2754_v22  ;;  %v2186_v61 = vmul.f32 %v3564_v7, %v5314_v50 }
 0x27e   : > { %v2339_v14 = vadd.f32 0.024181312, %v2301_v23  ;;  %v2906_v2 = vsel %vm1918_vm11, %v2830_v10, %v2868_v37  ;;  %v2641_v31 = vmul.f32 %v2603_v25, %v2261_v54  ;;  %v2528_v32 = vmul.f32 %v2490_v27, %v5331_v38 }
 0x27f   : > { %v2036_v33 = vsub.f32 0.5, %v1998_v5  ;;  %v2944_v30 = vmul.f32 %v2906_v2, %v2906_v2  ;;  %vm2717_vm3 = vcmp.lt.f32.partialorder %v5171_v26, 0.0  ;;  %v1961_v18 = vand.u32 2147483647, %v5349_v62 }
 0x280   : > { %v2377_v1 = vmul.f32 %v2339_v14, %v5364_v3  ;;  %v2679_v11 = vadd.f32 %v2641_v31, %v2261_v54  ;;  %v2566_v43 = vadd.f32 0.16666752, %v2528_v32  ;;  %v2262_v49 = vsel %vm1920_vm15, %v2186_v61, %v5264_v16 }
 0x281   : > { %v5393_v29 = vmax.f32 %v2036_v33, 0.0  ;;  %v2971_v50 = vadd.f32 %v5320_v4, %v2944_v30  ;;  %vm1922_vm4 = vcmp.gt.f32.partialorder %v5370_v39, 0.25  ;;  %vm1923_vm5 = vcmp.gt.f32.partialorder %v5382_v47, 0.25 }
 0x282   : > { %v2415_v19 = vadd.f32 0.045470025, %v2377_v1  ;;  %v2755_v42 = vmul.f32 2.0, %v2679_v11  ;;  %v2604_v24 = vmul.f32 %v2566_v43, %v5331_v38  ;;  %v2869_v22 = vsub.f32 1.5707964, %v2679_v11 }
 0x283   : > { %v2112_v63 = vadd.f32 1e-30, %v5393_v29  ;;  %vm2718_vm6 = vcmp.lt.f32.partialorder %v5264_v16, 0.0  ;;  %v5410_v4 = vsel %vm1922_vm4, %v5393_v29, %v5370_v39  ;;  %v1999_v44 = vmul.f32 0.5, %v1961_v18 }
 0x284   : > { %v2453_v37 = vmul.f32 %v2415_v19, %v5364_v3  ;;  %v2793_v8 = vsub.f32 3.1415927, %v2755_v42  ;;  %v2642_v57 = vmul.f32 %v2604_v24, %v2262_v49  ;;  %v2302_v38 = vmul.f32 0.0421632, %v5410_v4 }
 0x285   : > { %v3566_v46 = vpop.eup %3565  ;;  %3567 = vrsqrt.f32 %v2112_v63  ;;  %v2037_v5 = vsub.f32 0.5, %v1999_v44  ;;  %v1962_v7 = vand.u32 2147483647, %v5353_v59  ;;  %v5418_v10 = vmul.f32 %v5353_v59, %v5353_v59  ;;  %v5900_v63 = vld [vmem:[#allocation18_spill] sm:$0xff] }
 0x286   : > { %v2187_v21 = vmul.f32 %v3566_v46, %v2073_v51  ;;  %v2491_v23 = vadd.f32 0.074953005, %v2453_v37  ;;  %v2831_v54 = vsel %vm2717_vm3, %v2793_v8, %v2755_v42  ;;  %v2680_v25 = vadd.f32 %v2642_v57, %v2262_v49 }
 0x287   : > { %v2340_v27 = vadd.f32 0.024181312, %v2302_v38  ;;  %v2907_v61 = vsel %vm1919_vm14, %v2831_v54, %v2869_v22  ;;  %v2075_v2 = vmax.f32 %v2037_v5, 0.0  ;;  %v2000_v20 = vmul.f32 0.5, %v1962_v7  ;;  %v5901_v22 = vld [vmem:[#allocation19_spill] sm:$0xff] }
 0x288   : > { %v2263_v51 = vsel %vm1921_vm2, %v2187_v21, %v5286_v9  ;;  %v2529_v14 = vmul.f32 %v2491_v23, %v5364_v3  ;;  %v2945_v31 = vmul.f32 %v2907_v61, %v2907_v61  ;;  %v2756_v32 = vmul.f32 2.0, %v2680_v25 }
 0x289   : > { %v2870_v26 = vsub.f32 1.5707964, %v2680_v25  ;;  %v2378_v33 = vmul.f32 %v2340_v27, %v5410_v4  ;;  %v2113_v1 = vadd.f32 1e-30, %v2075_v2  ;;  %v5430_v11 = vsel %vm1923_vm5, %v2075_v2, %v5382_v47 }
 0x28a   : > { %v2567_v30 = vadd.f32 0.16666752, %v2529_v14  ;;  %v2995_v43 = vadd.f32 %v2994_v17, %v2945_v31  ;;  %v2794_v18 = vsub.f32 3.1415927, %v2756_v32  ;;  %v2303_v19 = vmul.f32 0.0421632, %v5430_v11 }
 0x28b   : > { %v2416_v49 = vadd.f32 0.045470025, %v2378_v33  ;;  %3569 = vrsqrt.f32 %v2113_v1  ;;  %v2038_v24 = vsub.f32 0.5, %v2000_v20  ;;  %v5436_v37 = vadd.f32 %v5901_v22, %v5900_v63 }
 0x28c   : > { %v2605_v42 = vmul.f32 %v2567_v30, %v5364_v3  ;;  %v2832_v44 = vsel %vm2718_vm6, %v2794_v18, %v2756_v32  ;;  %v2341_v8 = vadd.f32 0.024181312, %v2303_v19  ;;  %v5443_v17 = vadd.f32 %v4888_v40, %v4886_v53 }
 0x28d   : > { %v2454_v46 = vmul.f32 %v2416_v49, %v5410_v4  ;;  %v2908_v57 = vsel %vm1920_vm15, %v2832_v44, %v2870_v26  ;;  %v5447_v38 = vmax.f32 %v2038_v24, 0.0  ;;  %vm1924_vm7 = vcmp.gt.f32.partialorder %v5418_v10, 0.25 }
 0x28e   : > { %v2643_v3 = vmul.f32 %v2605_v42, %v2263_v51  ;;  %v2946_v23 = vmul.f32 %v2908_v57, %v2908_v57  ;;  %v2379_v7 = vmul.f32 %v2341_v8, %v5430_v11  ;;  %v1963_v40 = vand.u32 2147483647, %v5436_v37 }
 0x28f   : > { %v3568_v21 = vpop.eup %3567  ;;  %v2492_v5 = vadd.f32 0.074953005, %v2454_v46  ;;  %v2114_v54 = vadd.f32 1e-30, %v5447_v38  ;;  %v5456_v53 = vsel %vm1924_vm7, %v5447_v38, %v5418_v10  ;;  %vm2719_vm8 = vcmp.lt.f32.partialorder %v5286_v9, 0.0 }
 0x290   : > { %v2681_v16 = vadd.f32 %v2643_v3, %v2263_v51  ;;  %v5459_v6 = vadd.f32 %v2971_v50, %v2946_v23  ;;  %v2417_v27 = vadd.f32 0.045470025, %v2379_v7  ;;  %v2304_v61 = vmul.f32 0.0421632, %v5456_v53 }
 0x291   : > { %v2530_v25 = vmul.f32 %v2492_v5, %v5410_v4  ;;  %v2188_v51 = vmul.f32 %v3568_v21, %v5393_v29  ;;  %3571 = vrsqrt.f32 %v2114_v54  ;;  %v5468_v50 = vmul.f32 %v5436_v37, %v5436_v37 }
 0x292   : > { %v2757_v14 = vmul.f32 2.0, %v2681_v16  ;;  %v2455_v32 = vmul.f32 %v2417_v27, %v5430_v11  ;;  %v2342_v26 = vadd.f32 0.024181312, %v2304_v61  ;;  %v2871_v30 = vsub.f32 1.5707964, %v2681_v16 }
 0x293   : > { %v2568_v31 = vadd.f32 0.16666752, %v2530_v25  ;;  %v2001_v1 = vmul.f32 0.5, %v1963_v40  ;;  %v1964_v29 = vand.u32 2147483647, %v5443_v17  ;;  %v2264_v42 = vsel %vm1922_vm4, %v2188_v51, %v5345_v52 }
 0x294   : > { %v2795_v33 = vsub.f32 3.1415927, %v2757_v14  ;;  %v2493_v18 = vadd.f32 0.074953005, %v2455_v32  ;;  %v2380_v49 = vmul.f32 %v2342_v26, %v5456_v53  ;;  %vm2720_vm9 = vcmp.lt.f32.partialorder %v5345_v52, 0.0 }
 0x295   : > { %v2606_v20 = vmul.f32 %v2568_v31, %v5410_v4  ;;  %v3570_v19 = vpop.eup %3569  ;;  %v2039_v24 = vsub.f32 0.5, %v2001_v1  ;;  %v5479_v63 = vmul.f32 %v5443_v17, %v5443_v17  ;;  %v2002_v21 = vmul.f32 0.5, %v1964_v29 }
 0x296   : > { %v2833_v9 = vsel %vm2719_vm8, %v2795_v33, %v2757_v14  ;;  %v2189_v44 = vmul.f32 %v3570_v19, %v2075_v2  ;;  %v2531_v46 = vmul.f32 %v2493_v18, %v5430_v11  ;;  %v2418_v57 = vadd.f32 0.045470025, %v2380_v49 }
 0x297   : > { %v2909_v4 = vsel %vm1921_vm2, %v2833_v9, %v2871_v30  ;;  %v2644_v22 = vmul.f32 %v2606_v20, %v2264_v42  ;;  %v5484_v3 = vmax.f32 %v2039_v24, 0.0  ;;  %vm1925_vm10 = vcmp.gt.f32.partialorder %v5468_v50, 0.25 }
 0x298   : > { %v2947_v8 = vmul.f32 %v2909_v4, %v2909_v4  ;;  %v2569_v5 = vadd.f32 0.16666752, %v2531_v46  ;;  %v5489_v7 = vadd.f32 %v4909_v60, %v4906_v0  ;;  %v2456_v58 = vmul.f32 %v2418_v57, %v5456_v53 }
 0x299   : > { %v2682_v23 = vadd.f32 %v2644_v22, %v2264_v42  ;;  %v2115_v2 = vadd.f32 1e-30, %v5484_v3  ;;  %v5499_v54 = vsel %vm1925_vm10, %v5484_v3, %v5468_v50  ;;  %vm1926_vm11 = vcmp.gt.f32.partialorder %v5479_v63, 0.25 }
 0x29a   : > { %v5491_v16 = vadd.f32 %v2995_v43, %v2947_v8  ;;  %v2607_v25 = vmul.f32 %v2569_v5, %v5430_v11  ;;  %v2305_v27 = vmul.f32 0.0421632, %v5499_v54  ;;  %v2265_v60 = vsel %vm1923_vm5, %v2189_v44, %v5349_v62 }
 0x29b   : > { %v2758_v40 = vmul.f32 2.0, %v2682_v23  ;;  %v3572_v0 = vpop.eup %3571  ;;  %vm2721_vm12 = vcmp.lt.f32.partialorder %v5349_v62, 0.0  ;;  %v2494_v43 = vadd.f32 0.074953005, %v2456_v58  ;;  %3573 = vrsqrt.f32 %v2115_v2 }
 0x29c   : > { %v2040_v61 = vsub.f32 0.5, %v2002_v21  ;;  %v2645_v51 = vmul.f32 %v2607_v25, %v2265_v60  ;;  %v2190_v31 = vmul.f32 %v3572_v0, %v5447_v38  ;;  %v2343_v32 = vadd.f32 0.024181312, %v2305_v27 }
 0x29d   : > { %v2796_v14 = vsub.f32 3.1415927, %v2758_v40  ;;  %v2872_v11 = vsub.f32 1.5707964, %v2682_v23  ;;  %v2532_v26 = vmul.f32 %v2494_v43, %v5456_v53  ;;  %v1965_v30 = vand.u32 2147483647, %v5489_v7 }
 0x29e   : > { %v5510_v33 = vmax.f32 %v2040_v61, 0.0  ;;  %v2683_v20 = vadd.f32 %v2645_v51, %v2265_v60  ;;  %v2381_v18 = vmul.f32 %v2343_v32, %v5499_v54  ;;  %v5518_v49 = vmul.f32 %v5489_v7, %v5489_v7 }
 0x29f   : > { %v2834_v1 = vsel %vm2720_vm9, %v2796_v14, %v2758_v40  ;;  %v2570_v29 = vadd.f32 0.16666752, %v2532_v26  ;;  %v2266_v24 = vsel %vm1924_vm7, %v2190_v31, %v5353_v59  ;;  %v2003_v44 = vmul.f32 0.5, %v1965_v30 }
 0x2a0   : > { %v2910_v38 = vsel %vm1922_vm4, %v2834_v1, %v2872_v11  ;;  %v2116_v19 = vadd.f32 1e-30, %v5510_v33  ;;  %v5527_v9 = vsel %vm1926_vm11, %v5510_v33, %v5479_v63  ;;  %v2759_v42 = vmul.f32 2.0, %v2683_v20 }
 0x2a1   : > { %v2948_v52 = vmul.f32 %v2910_v38, %v2910_v38  ;;  %v2419_v4 = vadd.f32 0.045470025, %v2381_v18  ;;  %v2608_v22 = vmul.f32 %v2570_v29, %v5456_v53  ;;  %v2306_v39 = vmul.f32 0.0421632, %v5527_v9 }
 0x2a2   : > { %3575 = vrsqrt.f32 %v2116_v19  ;;  %v2797_v8 = vsub.f32 3.1415927, %v2759_v42  ;;  %v2873_v57 = vsub.f32 1.5707964, %v2683_v20  ;;  %v2041_v58 = vsub.f32 0.5, %v2003_v44 }
 0x2a3   : > { %v2973_v46 = vadd.f32 %v5459_v6, %v2948_v52  ;;  %v2457_v21 = vmul.f32 %v2419_v4, %v5499_v54  ;;  %v2646_v23 = vmul.f32 %v2608_v22, %v2266_v24  ;;  %v2344_v5 = vadd.f32 0.024181312, %v2306_v39 }
 0x2a4   : > { %v5538_v2 = vadd.f32 %v4962_v28, %v4960_v41  ;;  %v2835_v53 = vsel %vm2721_vm12, %v2797_v8, %v2759_v42  ;;  %v5544_v25 = vadd.f32 %v5005_v48, %v5000_v36  ;;  %v5548_v6 = vadd.f32 %v5027_v15, %v5025_v35 }
 0x2a5   : > { %v2495_v40 = vadd.f32 0.074953005, %v2457_v21  ;;  %v3574_v27 = vpop.eup %3573  ;;  %v2911_v0 = vsel %vm1923_vm5, %v2835_v53, %v2873_v57  ;;  %v2684_v60 = vadd.f32 %v2646_v23, %v2266_v24  ;;  %v2382_v41 = vmul.f32 %v2344_v5, %v5527_v9 }
 0x2a6   : > { %v5553_v28 = vmax.f32 %v2041_v58, 0.0  ;;  %v2949_v62 = vmul.f32 %v2911_v0, %v2911_v0  ;;  %vm1927_vm13 = vcmp.gt.f32.partialorder %v5518_v49, 0.25  ;;  %v2191_v48 = vmul.f32 %v3574_v27, %v5484_v3 }
 0x2a7   : > { %v2533_v43 = vmul.f32 %v2495_v40, %v5499_v54  ;;  %v2760_v36 = vmul.f32 2.0, %v2684_v60  ;;  %v2420_v61 = vadd.f32 0.045470025, %v2382_v41  ;;  %vm2722_vm14 = vcmp.lt.f32.partialorder %v5353_v59, 0.0 }
 0x2a8   : > { %v5562_v35 = vsel %vm1927_vm13, %v5553_v28, %v5518_v49  ;;  %v5565_v15 = vadd.f32 %v5491_v16, %v2949_v62  ;;  %v2117_v14 = vadd.f32 1e-30, %v5553_v28  ;;  %v5573_v32 = vmul.f32 %v5538_v2, %v5538_v2 }
 0x2a9   : > { %v2571_v47 = vadd.f32 0.16666752, %v2533_v43  ;;  %v2798_v51 = vsub.f32 3.1415927, %v2760_v36  ;;  %v2458_v31 = vmul.f32 %v2420_v61, %v5527_v9  ;;  %v2307_v3 = vmul.f32 0.0421632, %v5562_v35 }
 0x2aa   : > { %v2874_v11 = vsub.f32 1.5707964, %v2684_v60  ;;  %3577 = vrsqrt.f32 %v2117_v14  ;;  %v1966_v16 = vand.u32 2147483647, %v5538_v2  ;;  %v2267_v1 = vsel %vm1925_vm10, %v2191_v48, %v5436_v37 }
 0x2ab   : > { %v2609_v26 = vmul.f32 %v2571_v47, %v5499_v54  ;;  %v2836_v59 = vsel %vm2722_vm14, %v2798_v51, %v2760_v36  ;;  %v2496_v20 = vadd.f32 0.074953005, %v2458_v31  ;;  %v2345_v18 = vadd.f32 0.024181312, %v2307_v3 }
 0x2ac   : > { %v3576_v30 = vpop.eup %3575  ;;  %v2912_v38 = vsel %vm1924_vm7, %v2836_v59, %v2874_v11  ;;  %v2004_v19 = vmul.f32 0.5, %v1966_v16  ;;  %v5584_v52 = vmul.f32 %v5544_v25, %v5544_v25  ;;  %vm2723_vm15 = vcmp.lt.f32.partialorder %v5436_v37, 0.0 }
 0x2ad   : > { %v2647_v29 = vmul.f32 %v2609_v26, %v2267_v1  ;;  %v2950_v54 = vmul.f32 %v2912_v38, %v2912_v38  ;;  %v2192_v42 = vmul.f32 %v3576_v30, %v5510_v33  ;;  %v2534_v24 = vmul.f32 %v2496_v20, %v5527_v9 }
 0x2ae   : > { %v2383_v4 = vmul.f32 %v2345_v18, %v5562_v35  ;;  %v2042_v39 = vsub.f32 0.5, %v2004_v19  ;;  %v1967_v10 = vand.u32 2147483647, %v5544_v25  ;;  %vm1928_vm0 = vcmp.gt.f32.partialorder %v5573_v32, 0.25 }
 0x2af   : > { %v2685_v22 = vadd.f32 %v2647_v29, %v2267_v1  ;;  %v5591_v44 = vadd.f32 %v2973_v46, %v2950_v54  ;;  %v2572_v8 = vadd.f32 0.16666752, %v2534_v24  ;;  %vm1929_vm1 = vcmp.gt.f32.partialorder %v5584_v52, 0.25 }
 0x2b0   : > { %v2421_v57 = vadd.f32 0.045470025, %v2383_v4  ;;  %v5594_v23 = vmax.f32 %v2042_v39, 0.0  ;;  %v2005_v33 = vmul.f32 0.5, %v1967_v10  ;;  %v2268_v5 = vsel %vm1926_vm11, %v2192_v42, %v5443_v17 }
 0x2b1   : > { %v2761_v21 = vmul.f32 2.0, %v2685_v22  ;;  %v2610_v58 = vmul.f32 %v2572_v8, %v5527_v9  ;;  %v1968_v46 = vand.u32 2147483647, %v5548_v6  ;;  %vm2724_vm2 = vcmp.lt.f32.partialorder %v5443_v17, 0.0 }
 0x2b2   : > { %v2459_v53 = vmul.f32 %v2421_v57, %v5562_v35  ;;  %v2118_v27 = vadd.f32 1e-30, %v5594_v23  ;;  %v5609_v0 = vsel %vm1928_vm0, %v5594_v23, %v5573_v32  ;;  %v2043_v60 = vsub.f32 0.5, %v2005_v33 }
 0x2b3   : > { %v2799_v40 = vsub.f32 3.1415927, %v2761_v21  ;;  %v2875_v41 = vsub.f32 1.5707964, %v2685_v22  ;;  %v2648_v62 = vmul.f32 %v2610_v58, %v2268_v5  ;;  %v2308_v9 = vmul.f32 0.0421632, %v5609_v0 }
 0x2b4   : > { %v2497_v43 = vadd.f32 0.074953005, %v2459_v53  ;;  %v3578_v36 = vpop.eup %3577  ;;  %3579 = vrsqrt.f32 %v2118_v27  ;;  %v5614_v61 = vmax.f32 %v2043_v60, 0.0  ;;  %v2006_v47 = vmul.f32 0.5, %v1968_v46 }
 0x2b5   : > { %v2837_v48 = vsel %vm2723_vm15, %v2799_v40, %v2761_v21  ;;  %v2686_v51 = vadd.f32 %v2648_v62, %v2268_v5  ;;  %v2193_v31 = vmul.f32 %v3578_v36, %v5553_v28  ;;  %v2346_v26 = vadd.f32 0.024181312, %v2308_v9 }
 0x2b6   : > { %v2913_v14 = vsel %vm1925_vm10, %v2837_v48, %v2875_v41  ;;  %v2535_v3 = vmul.f32 %v2497_v43, %v5562_v35  ;;  %v2119_v16 = vadd.f32 1e-30, %v5614_v61  ;;  %v5625_v37 = vsel %vm1929_vm1, %v5614_v61, %v5584_v52 }
 0x2b7   : > { %v2951_v11 = vmul.f32 %v2913_v14, %v2913_v14  ;;  %v2762_v30 = vmul.f32 2.0, %v2686_v51  ;;  %v2876_v59 = vsub.f32 1.5707964, %v2686_v51  ;;  %v5629_v50 = vmul.f32 %v5548_v6, %v5548_v6 }
 0x2b8   : > { %v2573_v1 = vadd.f32 0.16666752, %v2535_v3  ;;  %v2384_v20 = vmul.f32 %v2346_v26, %v5609_v0  ;;  %3581 = vrsqrt.f32 %v2119_v16  ;;  %v2309_v18 = vmul.f32 0.0421632, %v5625_v37 }
 0x2b9   : > { %v2998_v28 = vadd.f32 %v5565_v15, %v2951_v11  ;;  %v2800_v38 = vsub.f32 3.1415927, %v2762_v30  ;;  %v2269_v29 = vsel %vm1927_vm13, %v2193_v31, %v5489_v7  ;;  %v2044_v54 = vsub.f32 0.5, %v2006_v47 }
 0x2ba   : > { %v2611_v19 = vmul.f32 %v2573_v1, %v5562_v35  ;;  %v2422_v42 = vadd.f32 0.045470025, %v2384_v20  ;;  %v2347_v24 = vadd.f32 0.024181312, %v2309_v18  ;;  %v5640_v4 = vadd.f32 %v5069_v13, %v5067_v12 }
 0x2bb   : > { %v5644_v15 = vadd.f32 %v5121_v34, %v5119_v56  ;;  %v2838_v22 = vsel %vm2724_vm2, %v2800_v38, %v2762_v30  ;;  %v5648_v10 = vmax.f32 %v2044_v54, 0.0  ;;  %v5652_v35 = vadd.f32 %v5136_v55, %v5134_v45 }
 0x2bc   : > { %v2649_v39 = vmul.f32 %v2611_v19, %v2269_v29  ;;  %v2914_v8 = vsel %vm1926_vm11, %v2838_v22, %v2876_v59  ;;  %v2460_v12 = vmul.f32 %v2422_v42, %v5609_v0  ;;  %v2385_v13 = vmul.f32 %v2347_v24, %v5625_v37 }
 0x2bd   : > { %vm1930_vm3 = vcmp.gt.f32.partialorder %v5629_v50, 0.25  ;;  %v2952_v56 = vmul.f32 %v2914_v8, %v2914_v8  ;;  %v2120_v17 = vadd.f32 1e-30, %v5648_v10  ;;  %vm2725_vm4 = vcmp.lt.f32.partialorder %v5489_v7, 0.0 }
 0x2be   : > { %v2687_v34 = vadd.f32 %v2649_v39, %v2269_v29  ;;  %v5664_v57 = vsel %vm1930_vm3, %v5648_v10, %v5629_v50  ;;  %v3580_v45 = vpop.eup %3579  ;;  %v2498_v55 = vadd.f32 0.074953005, %v2460_v12  ;;  %v2423_v63 = vadd.f32 0.045470025, %v2385_v13 }
 0x2bf   : > { %v2310_v21 = vmul.f32 0.0421632, %v5664_v57  ;;  %v5668_v33 = vadd.f32 %v5591_v44, %v2952_v56  ;;  %v2194_v58 = vmul.f32 %v3580_v45, %v5594_v23  ;;  %3583 = vrsqrt.f32 %v2120_v17 }
 0x2c0   : > { %v2763_v5 = vmul.f32 2.0, %v2687_v34  ;;  %v2536_v53 = vmul.f32 %v2498_v55, %v5609_v0  ;;  %v2461_v46 = vmul.f32 %v2423_v63, %v5625_v37  ;;  %v5676_v60 = vmul.f32 %v5640_v4, %v5640_v4 }
 0x2c1   : > { %v2348_v40 = vadd.f32 0.024181312, %v2310_v21  ;;  %v1969_v41 = vand.u32 2147483647, %v5640_v4  ;;  %v2877_v62 = vsub.f32 1.5707964, %v2687_v34  ;;  %v2270_v48 = vsel %vm1928_vm0, %v2194_v58, %v5538_v2 }
 0x2c2   : > { %v2801_v27 = vsub.f32 3.1415927, %v2763_v5  ;;  %v3582_v44 = vpop.eup %3581  ;;  %v2574_v43 = vadd.f32 0.16666752, %v2536_v53  ;;  %v2499_v9 = vadd.f32 0.074953005, %v2461_v46  ;;  %v5685_v7 = vmul.f32 %v5644_v15, %v5644_v15 }
 0x2c3   : > { %v2386_v23 = vmul.f32 %v2348_v40, %v5664_v57  ;;  %v2007_v47 = vmul.f32 0.5, %v1969_v41  ;;  %vm2726_vm5 = vcmp.lt.f32.partialorder %v5538_v2, 0.0  ;;  %v2195_v26 = vmul.f32 %v3582_v44, %v5614_v61 }
 0x2c4   : > { %v2839_v36 = vsel %vm2725_vm4, %v2801_v27, %v2763_v5  ;;  %v2612_v51 = vmul.f32 %v2574_v43, %v5609_v0  ;;  %v2537_v31 = vmul.f32 %v2499_v9, %v5625_v37  ;;  %v1970_v30 = vand.u32 2147483647, %v5644_v15 }
 0x2c5   : > { %v2915_v14 = vsel %vm1927_vm13, %v2839_v36, %v2877_v62  ;;  %v2424_v3 = vadd.f32 0.045470025, %v2386_v23  ;;  %v2045_v16 = vsub.f32 0.5, %v2007_v47  ;;  %vm1931_vm6 = vcmp.gt.f32.partialorder %v5676_v60, 0.25 }
 0x2c6   : > { %v2953_v11 = vmul.f32 %v2915_v14, %v2915_v14  ;;  %v2650_v59 = vmul.f32 %v2612_v51, %v2270_v48  ;;  %v2575_v1 = vadd.f32 0.16666752, %v2537_v31  ;;  %vm1932_vm7 = vcmp.gt.f32.partialorder %v5685_v7, 0.25 }
 0x2c7   : > { %v2462_v20 = vmul.f32 %v2424_v3, %v5664_v57  ;;  %v5696_v18 = vmax.f32 %v2045_v16, 0.0  ;;  %v2008_v0 = vmul.f32 0.5, %v1970_v30  ;;  %v1971_v61 = vand.u32 2147483647, %v5652_v35 }
 0x2c8   : > { %v2999_v49 = vadd.f32 %v2998_v28, %v2953_v11  ;;  %v2688_v38 = vadd.f32 %v2650_v59, %v2270_v48  ;;  %v2613_v29 = vmul.f32 %v2575_v1, %v5625_v37  ;;  %v2271_v54 = vsel %vm1929_vm1, %v2195_v26, %v5544_v25 }
 0x2c9   : > { %v2500_v19 = vadd.f32 0.074953005, %v2462_v20  ;;  %vm2727_vm8 = vcmp.lt.f32.partialorder %v5544_v25, 0.0  ;;  %v2121_v42 = vadd.f32 1e-30, %v5696_v18  ;;  %v5710_v28 = vsel %vm1931_vm6, %v5696_v18, %v5676_v60  ;;  %v3584_v22 = vpop.eup %3583 }
 0x2ca   : > { %v2046_v24 = vsub.f32 0.5, %v2008_v0  ;;  %v2764_v37 = vmul.f32 2.0, %v2688_v38  ;;  %v2651_v39 = vmul.f32 %v2613_v29, %v2271_v54  ;;  %v5715_v12 = vmul.f32 %v5652_v35, %v5652_v35 }
 0x2cb   : > { %v2538_v8 = vmul.f32 %v2500_v19, %v5664_v57  ;;  %v2196_v13 = vmul.f32 %v3584_v22, %v5648_v10  ;;  %3585 = vrsqrt.f32 %v2121_v42  ;;  %v2311_v56 = vmul.f32 0.0421632, %v5710_v28 }
 0x2cc   : > { %v2084_v34 = vmax.f32 %v2046_v24, 0.0  ;;  %v2802_v17 = vsub.f32 3.1415927, %v2764_v37  ;;  %v2689_v45 = vadd.f32 %v2651_v39, %v2271_v54  ;;  %v2009_v63 = vmul.f32 0.5, %v1971_v61 }
 0x2cd   : > { %v2576_v55 = vadd.f32 0.16666752, %v2538_v8  ;;  %v2878_v21 = vsub.f32 1.5707964, %v2688_v38  ;;  %v2349_v5 = vadd.f32 0.024181312, %v2311_v56  ;;  %v2272_v10 = vsel %vm1930_vm3, %v2196_v13, %v5548_v6 }
 0x2ce   : > { %v2122_v58 = vadd.f32 1e-30, %v2084_v34  ;;  %v2236_v53 = vsel %vm1932_vm7, %v2084_v34, %v5685_v7  ;;  %v2840_v46 = vsel %vm2726_vm5, %v2802_v17, %v2764_v37  ;;  %v2765_v40 = vmul.f32 2.0, %v2689_v45 }
 0x2cf   : > { %v2614_v27 = vmul.f32 %v2576_v55, %v5664_v57  ;;  %v2916_v41 = vsel %vm1928_vm0, %v2840_v46, %v2878_v21  ;;  %v2387_v44 = vmul.f32 %v2349_v5, %v5710_v28  ;;  %v2312_v62 = vmul.f32 0.0421632, %v2236_v53 }
 0x2d0   : > { %3587 = vrsqrt.f32 %v2122_v58  ;;  %v2954_v43 = vmul.f32 %v2916_v41, %v2916_v41  ;;  %v2803_v9 = vsub.f32 3.1415927, %v2765_v40  ;;  %v2047_v36 = vsub.f32 0.5, %v2009_v63 }
 0x2d1   : > { %v2652_v23 = vmul.f32 %v2614_v27, %v2272_v10  ;;  %v2879_v2 = vsub.f32 1.5707964, %v2689_v45  ;;  %v2425_v48 = vadd.f32 0.045470025, %v2387_v44  ;;  %v2350_v47 = vadd.f32 0.024181312, %v2312_v62 }
 0x2d2   : > { %v2976_v14 = vadd.f32 %v5668_v33, %v2954_v43  ;;  %v2841_v51 = vsel %vm2727_vm8, %v2803_v9, %v2765_v40  ;;  %v2085_v31 = vmax.f32 %v2047_v36, 0.0  ;;  %vm1933_vm9 = vcmp.gt.f32.partialorder %v5715_v12, 0.25 }
 0x2d3   : > { %v2690_v57 = vadd.f32 %v2652_v23, %v2272_v10  ;;  %v2917_v32 = vsel %vm1929_vm1, %v2841_v51, %v2879_v2  ;;  %v2463_v3 = vmul.f32 %v2425_v48, %v5710_v28  ;;  %v2388_v11 = vmul.f32 %v2350_v47, %v2236_v53 }
 0x2d4   : > { %v2955_v26 = vmul.f32 %v2917_v32, %v2917_v32  ;;  %v2123_v30 = vadd.f32 1e-30, %v2085_v31  ;;  %v2237_v25 = vsel %vm1933_vm9, %v2085_v31, %v5715_v12  ;;  %vm2728_vm10 = vcmp.lt.f32.partialorder %v5548_v6, 0.0 }
 0x2d5   : > { %v2766_v16 = vmul.f32 2.0, %v2690_v57  ;;  %v3586_v59 = vpop.eup %3585  ;;  %v2501_v1 = vadd.f32 0.074953005, %v2463_v3  ;;  %v2426_v20 = vadd.f32 0.045470025, %v2388_v11  ;;  %vm2729_vm11 = vcmp.lt.f32.partialorder %v5640_v4, 0.0 }
 0x2d6   : > { %v3000_v33 = vadd.f32 %v2999_v49, %v2955_v26  ;;  %v2880_v0 = vsub.f32 1.5707964, %v2690_v57  ;;  %v2313_v19 = vmul.f32 0.0421632, %v2237_v25  ;;  %v2197_v54 = vmul.f32 %v3586_v59, %v5696_v18 }
 0x2d7   : > { %v2804_v52 = vsub.f32 3.1415927, %v2766_v16  ;;  %v2539_v38 = vmul.f32 %v2501_v1, %v5710_v28  ;;  %v2464_v29 = vmul.f32 %v2426_v20, %v2236_v53  ;;  %3589 = vrsqrt.f32 %v2123_v30 }
 0x2d8   : > { %v2351_v39 = vadd.f32 0.024181312, %v2313_v19  ;;  %v2273_v17 = vsel %vm1931_vm6, %v2197_v54, %v5640_v4  ;;  %vm2730_vm12 = vcmp.lt.f32.partialorder %v5644_v15, 0.0  ;;  %vm2731_vm13 = vcmp.lt.f32.partialorder %v5652_v35, 0.0 }
 0x2d9   : > { %v2842_v61 = vsel %vm2728_vm10, %v2804_v52, %v2766_v16  ;;  %v2577_v22 = vadd.f32 0.16666752, %v2539_v38  ;;  %v2502_v37 = vadd.f32 0.074953005, %v2464_v29  ;;  %v3689_v38 = vmov 1966171168  }
 0x2da   : > { %v3588_v42 = vpop.eup %3587  ;;  %v2918_v24 = vsel %vm1930_vm3, %v2842_v61, %v2880_v0  ;;  %v2389_v13 = vmul.f32 %v2351_v39, %v2237_v25  ;;  %v3013_v29 = vunpack.c.l.s4 %v3689_v38  ;;  %v3015_v19 = vlaneseq }
 0x2db   : > { %v2956_v49 = vmul.f32 %v2918_v24, %v2918_v24  ;;  %v2615_v6 = vmul.f32 %v2577_v22, %v5710_v28  ;;  %v2540_v8 = vmul.f32 %v2502_v37, %v2236_v53  ;;  %v2198_v45 = vmul.f32 %v3588_v42, %v2084_v34 }
 0x2dc   : > { %v2427_v63 = vadd.f32 0.045470025, %v2389_v13  ;;  %v3014_v42 = vunpack.c.0.s8 %v3013_v29  ;;  %v3016_v24 = vshrl.u32 %v3015_v19, 7  ;;  %vm3030_vm14 = vcmp.lt.s32.totalorder %v3015_v19, 256 }
 0x2dd   : > { %v2977_v56 = vadd.f32 %v2976_v14, %v2956_v49  ;;  %v2653_v18 = vmul.f32 %v2615_v6, %v2273_v17  ;;  %v2578_v55 = vadd.f32 0.16666752, %v2540_v8  ;;  %v2274_v58 = vsel %vm1932_vm7, %v2198_v45, %v5644_v15  ;;  %v2960_v8 = vld [vmem:[%s3819_s28] sm:$0x3] }
 0x2de   : > { %v2465_v5 = vmul.f32 %v2427_v63, %v2237_v25  ;;  %v3017_v39 = vsub.s32 %v3014_v42, %v3016_v24 }
 0x2df   : > { %v2691_v21 = vadd.f32 %v2653_v18, %v2273_v17  ;;  %v2616_v50 = vmul.f32 %v2578_v55, %v2236_v53 }
 0x2e0   : > { %v2503_v10 = vadd.f32 0.074953005, %v2465_v5 }
 0x2e1   : > { %v2767_v46 = vmul.f32 2.0, %v2691_v21  ;;  %v2654_v28 = vmul.f32 %v2616_v50, %v2274_v58  ;;  %v3590_v40 = vpop.eup %3589  ;;  %v2881_v44 = vsub.f32 1.5707964, %v2691_v21 }
 0x2e2   : > { %v2541_v34 = vmul.f32 %v2503_v10, %v2237_v25  ;;  %v2199_v9 = vmul.f32 %v3590_v40, %v2085_v31 }
 0x2e3   : > { %v2805_v27 = vsub.f32 3.1415927, %v2767_v46  ;;  %v2692_v41 = vadd.f32 %v2654_v28, %v2274_v58 }
 0x2e4   : > { %v2579_v23 = vadd.f32 0.16666752, %v2541_v34  ;;  %v2275_v4 = vsel %vm1933_vm9, %v2199_v9, %v5652_v35 }
 0x2e5   : > { %v2843_v62 = vsel %vm2729_vm11, %v2805_v27, %v2767_v46  ;;  %v2768_v43 = vmul.f32 2.0, %v2692_v41  ;;  %v2882_v48 = vsub.f32 1.5707964, %v2692_v41 }
 0x2e6   : > { %v2919_v53 = vsel %vm1931_vm6, %v2843_v62, %v2881_v44  ;;  %v2617_v47 = vmul.f32 %v2579_v23, %v2237_v25 }
 0x2e7   : > { %v2957_v36 = vmul.f32 %v2919_v53, %v2919_v53  ;;  %v2806_v2 = vsub.f32 3.1415927, %v2768_v43 }
 0x2e8   : > { %v2655_v31 = vmul.f32 %v2617_v47, %v2275_v4 }
 0x2e9   : > { %v3001_v14 = vadd.f32 %v3000_v33, %v2957_v36  ;;  %v2844_v51 = vsel %vm2730_vm12, %v2806_v2, %v2768_v43 }
 0x2ea   : > { %v2920_v57 = vsel %vm1932_vm7, %v2844_v51, %v2882_v48  ;;  %v2693_v60 = vadd.f32 %v2655_v31, %v2275_v4 }
 0x2eb   : > { %v2958_v32 = vmul.f32 %v2920_v57, %v2920_v57 }
 0x2ec   : > { %v2769_v11 = vmul.f32 2.0, %v2693_v60  ;;  %v2883_v15 = vsub.f32 1.5707964, %v2693_v60 }
 0x2ed   : > { %v2978_v3 = vadd.f32 %v2977_v56, %v2958_v32 }
 0x2ee   : > { %v2807_v16 = vsub.f32 3.1415927, %v2769_v11 }
 0x2ef   : > { %v2979_v26 = vrot.slane %v2978_v3, 4 }
 0x2f0   : > { %v2845_v59 = vsel %vm2731_vm13, %v2807_v16, %v2769_v11 }
 0x2f1   : > { %v2980_v30 = vadd.f32 %v2979_v26, %v2978_v3  ;;  %v2921_v1 = vsel %vm1933_vm9, %v2845_v59, %v2883_v15 }
 0x2f2   : > { %v2959_v20 = vmul.f32 %v2921_v1, %v2921_v1 }
 0x2f3   : > { %v2981_v25 = vrot.slane %v2980_v30, 2 }
 0x2f4   : > { %v3002_v33 = vadd.f32 %v3001_v14, %v2959_v20 }
 0x2f5   : > { %v2982_v52 = vadd.f32 %v2981_v25, %v2980_v30 }
 0x2f6   : > { %v3003_v7 = vrot.slane %v3002_v33, 4 }
 0x2f7   : > { %v2983_v61 = vrot.slane %v2982_v52, 1 }
 0x2f8   : > { %v3004_v0 = vadd.f32 %v3003_v7, %v3002_v33 }
 0x2f9   : > { %v2984_v12 = vadd.f32 %v2983_v61, %v2982_v52 }
 0x2fa   : > { %v3005_v54 = vrot.slane %v3004_v0, 2 }
 0x2fc   : > { %v3006_v35 = vadd.f32 %v3005_v54, %v3004_v0 }
 0x2fe   : > { %v3007_v22 = vrot.slane %v3006_v35, 1 }
 0x300   : > { %v3008_v37 = vadd.f32 %v3007_v22, %v3006_v35 }
 0x302   : > { %v3011_v49 = vcombine.low %v2984_v12, %v3008_v37 }
 0x304   : > { %v3018_v6 = vrot.slane %v3011_v49, %v3017_v39 }
 0x306   : > { %v3025_v13 = vrot.slane %v3018_v6, %v3017_v39 }
 0x308   : > { %v3027_v56 = vadd.f32 %v3025_v13, %v2960_v8 }
 0x30a   : > { %3032 = vst.msk [vmem:[%s3819_s28] sm:$0x3] %vm3030_vm14, %v3027_v56 }
 0x30b   : > { %3604 = shalt.err (!%p3601_p11)
}
 0x30c   : > { %s3605_s6 = scalar_lea.hbm %s5771_s4, 32  ;;  %s3609_s24 = scalar_lea.hbm %s5828_s2, 64 }
 0x30d   : > { %p3606_p12 = scmp.ne.s32.totalorder %s5771_s4, %s3605_s6  ;;  %p3610_p1 = scmp.lt.u32.totalorder %s5771_s4, %s5828_s2 }
 0x30e   : > { %p3611_p2 = scmp.lt.u32.totalorder %s3609_s24, %s3605_s6  ;;  %p3613_p4 = scmp.lt.u32.totalorder %s3605_s6, %s5771_s4 }
 0x30f   : > { %p3607_p13 = pnand %p3606_p12, %p3762_p7 }
 0x310   : > { %p3612_p3 = por %p3611_p2, %p3610_p1 }
 0x311   : > { %p3608_p0 = pneg %p3607_p13 }
 0x312   : > { %p3614_p5 = por %p3613_p4, %p3612_p3 }
 0x314   : > { %p3615_p6 = pnand %p3614_p5, %p3608_p0 }
 0x316   : > { %3618 = shalt.err (!%p3615_p6)
}
 0x317   : > { %3441 = dma.vmem_to_hbm [thread:$0]  (%p3762_p7), %s5773_s29, 32, %s5771_s4, %s3034_s5  }
 0x318 PF: > { %p3447_p8 = scmp.ge.s32.totalorder %s3685_s16, 2  ;;  %s3060_s28 = sand.u32 1, %s3657_s9  }
 0x319   : > { %s3061_s12 = scalar_lea.sflag [#allocation4], %s3060_s28 }
 0x31a   : > { %p3444_p10 = pnand %p3447_p8, %p3768_p9 }
 0x31c   : > { %3652 = dma.done.wait (!%p3444_p10), %s3061_s12, 32  }
 0x31d   : > { %3654 = vsyncadd (!%p3444_p10), %s3061_s12, 4294967264  ;;  %s15_s16 = sadd.s32 1, %s3685_s16   ;;  %s5902_s9 = smov %s3661_s10 }
 0x31e   : > { %p12_p11 = scmp.ge.s32.totalorder %s15_s16, 6   ;;  %s5903_s10 = smov %s3665_s11 }
 0x31f   : > { %s5904_s11 = smov %s3776_s26  ;;  %s5905_s12 = smov %s3677_s14 }
 0x320   : > { %s5906_s13 = smov %s3681_s15  ;;  %s5907_s14 = smov %s5910_s19 }
 0x321   : > { %s5908_s15 = smov %s5914_s20  ;;  %14 = sbr.rel (!%p12_p11) target bundleno = 5 (0x5), region = 98 }
 0x328   :  { %3066 = vsyncpa [#allocation4], 1 }
 0x329   :  { %3068 = vsyncpa [#allocation4 + $0x1], 1 }

</bundles_post_ra>
